<compile_context>
chip_gen: v7x
topology: tpu7x:2x2x1
jax: 0.10.0
libtpu: 0.0.40
codegen_flags: <defaults>
</compile_context>

<pallas_src>
import math
import functools

import jax
import jax.numpy as jnp
from jax.experimental import pallas as pl
from jax.experimental.pallas import tpu as pltpu


_MASK_VALUE = -1e30          # large finite negative instead of -inf (NaN-safe)


# ----------------------------- hardware queries -------------------------------

@functools.lru_cache(maxsize=None)
def _vmem_limit():
    """vmem_limit_bytes: 64 MiB on 128-MiB chips, ~85% of capacity otherwise."""
    cap = None
    try:
        cap = int(pltpu.get_tpu_info().vmem_capacity_bytes)
    except Exception:
        cap = None
    if cap is None:
        try:
            kind = jax.devices()[0].device_kind.lower()
            cap = (64 << 20) if "v7" in kind else (128 << 20)
        except Exception:
            cap = 128 << 20
    if cap >= (128 << 20):
        return 64 << 20
    return int(cap * 0.85)


@functools.lru_cache(maxsize=None)
def _num_tensorcores():
    """2 TensorCores on v7x / v4 / v5p; 1 on v5e / v6e."""
    try:
        kind = jax.devices()[0].device_kind.lower()
    except Exception:
        return 1
    return 2 if any(t in kind for t in ("v7", "v4", "v5p", "v5 p")) else 1


# ----------------------------- in-kernel helpers -----------------------------

def _layernorm(x, w, b, eps=1e-5):
    # matches torch.nn.functional.layer_norm (biased variance, eps=1e-5)
    mu = jnp.mean(x, axis=-1, keepdims=True)
    xc = x - mu
    var = jnp.mean(xc * xc, axis=-1, keepdims=True)
    return xc * jax.lax.rsqrt(var + eps) * w + b


def _erf(x):
    # Abramowitz & Stegun 7.1.26 rational approximation of erf
    # (max abs error ~1.5e-7).  exp() and the approx reciprocal go to the EUP.
    p = 0.3275911
    a1, a2, a3, a4, a5 = (0.254829592, -0.284496736, 1.421413741,
                          -1.453152027, 1.061405429)
    sgn = jnp.where(x >= 0.0, 1.0, -1.0)
    ax = jnp.abs(x)
    t = pl.reciprocal(1.0 + p * ax, approx=True)
    poly = ((((a5 * t + a4) * t + a3) * t + a2) * t + a1) * t
    return sgn * (1.0 - poly * jnp.exp(-ax * ax))


def _gelu_exact(x):
    # matches torch.nn.GELU() default (erf form)
    return 0.5 * x * (1.0 + _erf(x * 0.7071067811865476))


# ------------------------------ Pallas kernels -------------------------------

def _block_kernel(n_head,
                  x_ref,
                  ln1w_ref, ln1b_ref, wqkv_ref, bqkv_ref, wap_ref, bap_ref,
                  ln2w_ref, ln2b_ref, wfc_ref, bfc_ref, wpr_ref, bpr_ref,
                  o_ref, qkv_scr, y_scr):
    """One full transformer Block (ln1 -> attn -> +res -> ln2 -> MLP -> +res)
    for a block of BB batch elements (flattened to BB*T matmul rows)."""
    BB, T, C = x_ref.shape
    hd = C // n_head
    scale = 1.0 / math.sqrt(hd)
    bf16 = jnp.bfloat16

    x = x_ref[...].reshape(BB * T, C)                       # (BB*T, C) f32

    # ---- causal self-attention ----
    h = _layernorm(x, ln1w_ref[...], ln1b_ref[...])
    qkv = jnp.dot(h.astype(bf16), wqkv_ref[...],
                  preferred_element_type=jnp.float32) + bqkv_ref[...]  # (BB*T, 3C) f32

    # Stage bf16 qkv in VMEM scratch (frees the f32 temporary); fold the
    # 1/sqrt(hd) scale into q here (one C-wide multiply, not T*T per head).
    qkv_scr[:, :C] = (qkv[:, :C] * scale).astype(bf16)
    qkv_scr[:, C:] = qkv[:, C:].astype(bf16)

    row = jax.lax.broadcasted_iota(jnp.int32, (T, T), 0)
    col = jax.lax.broadcasted_iota(jnp.int32, (T, T), 1)
    causal = (row >= col)[None, :, :]                        # (1, T, T)

    for hh in range(n_head):                                 # static unrolled
        q = qkv_scr[:, hh * hd:(hh + 1) * hd].reshape(BB, T, hd)
        k = qkv_scr[:, C + hh * hd:C + (hh + 1) * hd].reshape(BB, T, hd)
        v = qkv_scr[:, 2 * C + hh * hd:2 * C + (hh + 1) * hd].reshape(BB, T, hd)

        att = jnp.einsum('bqd,bkd->bqk', q, k,
                         preferred_element_type=jnp.float32)  # scale already in q
        att = jnp.where(causal, att, _MASK_VALUE)
        m = jnp.max(att, axis=-1, keepdims=True)
        e = jnp.exp(att - m)
        inv = pl.reciprocal(jnp.sum(e, axis=-1, keepdims=True), approx=True)
        p = (e * inv).astype(bf16)
        yh = jnp.einsum('bqk,bkd->bqd', p, v,
                        preferred_element_type=jnp.float32)  # (BB, T, hd)
        # Write each head's slice into the bf16 VMEM scratch slab.
        y_scr[:, hh * hd:(hh + 1) * hd] = yh.reshape(BB * T, hd).astype(bf16)

    y = jnp.dot(y_scr[...], wap_ref[...],
                preferred_element_type=jnp.float32) + bap_ref[...]
    x = x + y                                                # residual

    # ---- MLP ----
    h2 = _layernorm(x, ln2w_ref[...], ln2b_ref[...])
    f = jnp.dot(h2.astype(bf16), wfc_ref[...],
                preferred_element_type=jnp.float32) + bfc_ref[...]
    f = _gelu_exact(f)                                       # f32 elementwise
    mo = jnp.dot(f.astype(bf16), wpr_ref[...],
                 preferred_element_type=jnp.float32) + bpr_ref[...]
    x = x + mo                                               # residual

    o_ref[...] = x.reshape(BB, T, C).astype(o_ref.dtype)


def _lnf_kernel(x_ref, w_ref, b_ref, o_ref):
    """ln_f on the last-token activations; emits bf16 so the head matmul is
    bf16 x bf16 and the LN is computed exactly once (not per vocab tile)."""
    o_ref[...] = _layernorm(x_ref[...], w_ref[...], b_ref[...]).astype(o_ref.dtype)


def _head_kernel(h_ref, wte_ref, o_ref):
    """Tied lm_head on pre-normalized last-token activations, one vocab tile.

    Contracts against the (tile_v, C) bf16 wte slice on the shared C axis, so
    no transposed copy of the embedding table is ever materialized."""
    o_ref[...] = jax.lax.dot_general(
        h_ref[...], wte_ref[...],
        (((1,), (1,)), ((), ())),
        preferred_element_type=jnp.float32).astype(o_ref.dtype)


# ------------------------------ Python wrappers -------------------------------

def _pick_bb(B, n_cores, max_bb=16):
    """Batch-block size.  On 1-TC chips the grid is a serial loop, so use one
    grid step (bb = B) for maximum matmul M; on 2-TC chips keep >= n_cores
    grid steps so both TensorCores get work."""
    bb = min(B, max_bb)
    while B % bb:
        bb -= 1
    if n_cores > 1:
        while bb > 1 and B // bb < n_cores:
            bb -= 1
            while B % bb:
                bb -= 1
    return max(bb, 1)


def _pick_tile_v(Vp, max_tile=2048):
    """Lane-dense (multiple of 128) vocab tile; >= 2 grid steps when possible."""
    tile = min(max_tile, Vp)
    if Vp >= 2 * 128:
        tile = min(tile, (Vp // 2 // 128) * 128)
    return max(tile, 128)


def _block_call(x, layer, n_head, bb, single_buffer_weights):
    B, T, C = x.shape
    weight_args = (layer['ln1_w'], layer['ln1_b'],
                   layer['w_qkv'], layer['b_qkv'],
                   layer['w_attn_proj'], layer['b_attn_proj'],
                   layer['ln2_w'], layer['ln2_b'],
                   layer['w_fc'], layer['b_fc'],
                   layer['w_mlp_proj'], layer['b_mlp_proj'])

    if single_buffer_weights:
        # Grid-invariant weights: single-buffer them (halves weight VMEM).
        def wspec(w):
            return pl.BlockSpec(w.shape, lambda b: (0, 0),
                                pipeline_mode=pl.Buffered(1))
    else:
        def wspec(w):
            return pl.BlockSpec(w.shape, lambda b: (0, 0))

    in_specs = [pl.BlockSpec((bb, T, C), lambda b: (b, 0, 0))]
    in_specs += [wspec(w) for w in weight_args]
    out_spec = pl.BlockSpec((bb, T, C), lambda b: (b, 0, 0))

    return pl.pallas_call(
        functools.partial(_block_kernel, n_head),
        out_shape=jax.ShapeDtypeStruct((B, T, C), x.dtype),
        grid=(B // bb,),
        in_specs=in_specs,
        out_specs=out_spec,
        scratch_shapes=[pltpu.VMEM((bb * T, 3 * C), jnp.bfloat16),   # qkv stage
                        pltpu.VMEM((bb * T, C), jnp.bfloat16)],      # head outputs
        compiler_params=pltpu.CompilerParams(
            dimension_semantics=("parallel",),
            vmem_limit_bytes=_vmem_limit()),
    )(x, *weight_args)


# One-time feature flag: fall back gracefully if this JAX build does not
# support pipeline_mode=pl.Buffered(1) on the classic pallas_call path.
_SINGLE_BUFFER_OK = [hasattr(pl, "Buffered")]


def transformer_block(x, layer, n_head, bb):
    if _SINGLE_BUFFER_OK[0]:
        try:
            return _block_call(x, layer, n_head, bb, True)
        except Exception:
            _SINGLE_BUFFER_OK[0] = False
    return _block_call(x, layer, n_head, bb, False)


def final_logits(x_last, lnf_w, lnf_b, wte_head, V):
    B, C = x_last.shape
    Vp = wte_head.shape[0]                       # padded to a multiple of 128

    # ln_f once (not per vocab tile), emitted in bf16.
    h = pl.pallas_call(
        _lnf_kernel,
        out_shape=jax.ShapeDtypeStruct((B, C), jnp.bfloat16),
    )(x_last, lnf_w, lnf_b)

    tile_v = _pick_tile_v(Vp)
    grid_v = pl.cdiv(Vp, tile_v)
    logits = pl.pallas_call(
        _head_kernel,
        out_shape=jax.ShapeDtypeStruct((B, Vp), jnp.float32),
        grid=(grid_v,),
        in_specs=[pl.BlockSpec((B, C), lambda v: (0, 0)),
                  pl.BlockSpec((tile_v, C), lambda v: (v, 0))],
        out_specs=pl.BlockSpec((B, tile_v), lambda v: (0, v)),
        compiler_params=pltpu.CompilerParams(
            dimension_semantics=("parallel",),
            vmem_limit_bytes=_vmem_limit()),
    )(h, wte_head)
    return logits[:, :V]


def dgpt_forward(params, idx, n_head, block_size):
    B, T = idx.shape
    assert T <= block_size
    C = params['wte'].shape[1]
    assert C % n_head == 0
    # Embedding gathers kept as plain-JAX glue (data-dependent indexing).
    tok = jnp.take(params['wte'], idx, axis=0)        # (B, T, C)
    pos = params['wpe'][:T][None, :, :]               # (1, T, C)
    x = tok + pos                                     # dropout p=0.0 -> identity
    bb = _pick_bb(B, _num_tensorcores())
    for layer in params['blocks']:
        x = transformer_block(x, layer, n_head, bb)
    x_last = x[:, -1, :]                              # last token only
    logits = final_logits(x_last, params['lnf_w'], params['lnf_b'],
                          params['wte_head'], params['wte'].shape[0])  # (B, V)
    return logits[:, None, :], None                   # ((B, 1, V), loss=None)


# ------------------------------ parameter init --------------------------------

def init_params(key, cfg):
    C, V, L, BS = cfg['n_embd'], cfg['vocab_size'], cfg['n_layer'], cfg['block_size']
    std = 0.02
    proj_std = 0.02 / math.sqrt(2 * L)                # c_proj special init
    keys = jax.random.split(key, 2 + 4 * L)
    bf16 = jnp.bfloat16

    wte = std * jax.random.normal(keys[0], (V, C), jnp.float32)
    # Persistent bf16 copy of wte for the HBM-bandwidth-bound lm_head, padded
    # so the vocab axis is a multiple of 128 (lane-dense output tiles).
    Vp = ((V + 127) // 128) * 128
    wte_head = jnp.zeros((Vp, C), bf16).at[:V].set(wte.astype(bf16))

    params = {
        'wte': wte,                                   # f32 for the embedding gather
        'wte_head': wte_head,                         # bf16, V padded to 128
        'wpe': std * jax.random.normal(keys[1], (BS, C), jnp.float32),
        'lnf_w': jnp.ones((1, C), jnp.float32),
        'lnf_b': jnp.zeros((1, C), jnp.float32),
        'blocks': [],
    }
    for l in range(L):
        k0, k1, k2, k3 = keys[2 + 4 * l: 6 + 4 * l]
        params['blocks'].append({
            'ln1_w': jnp.ones((1, C), jnp.float32),
            'ln1_b': jnp.zeros((1, C), jnp.float32),
            # per-worker c_attn slices concatenated -> full (C, 3C) projection;
            # projection weights stored bf16 (halved HBM/VMEM, MXU-native).
            'w_qkv': (std * jax.random.normal(k0, (C, 3 * C), jnp.float32)).astype(bf16),
            'b_qkv': jnp.zeros((1, 3 * C), jnp.float32),
            'w_attn_proj': (proj_std * jax.random.normal(k1, (C, C), jnp.float32)).astype(bf16),
            'b_attn_proj': jnp.zeros((1, C), jnp.float32),
            'ln2_w': jnp.ones((1, C), jnp.float32),
            'ln2_b': jnp.zeros((1, C), jnp.float32),
            'w_fc': (std * jax.random.normal(k2, (C, 4 * C), jnp.float32)).astype(bf16),
            'b_fc': jnp.zeros((1, 4 * C), jnp.float32),
            'w_mlp_proj': (proj_std * jax.random.normal(k3, (4 * C, C), jnp.float32)).astype(bf16),
            'b_mlp_proj': jnp.zeros((1, C), jnp.float32),
        })
    return params


# ----------------------------------- main -------------------------------------

if __name__ == "__main__":
    cfg = dict(vocab_size=256, block_size=16, n_layer=2, n_head=4, n_embd=128,
               dropout=0.0, bias=True, number_of_workers=2)  # workers emulated
    key = jax.random.PRNGKey(0)
    pkey, ikey = jax.random.split(key)
    params = init_params(pkey, cfg)

    B, T = 2, 8
    idx = jax.random.randint(ikey, (B, T), 0, cfg['vocab_size'], dtype=jnp.int32)

    logits, loss = dgpt_forward(params, idx, cfg['n_head'], cfg['block_size'])
    logits = jax.block_until_ready(logits)
    assert logits.shape == (B, 1, cfg['vocab_size'])
    assert loss is None
    print("KERNEL_OK")
</pallas_src>

<mosaic_0001>
module attributes {stable_mosaic.version = 11 : i64} {
  func.func @_block_kernel(%arg0: i32, %arg1: memref<2x8x128xf32, #tpu.memory_space<vmem>>, %arg2: memref<1x128xf32, #tpu.memory_space<vmem>>, %arg3: memref<1x128xf32, #tpu.memory_space<vmem>>, %arg4: memref<128x384xbf16, #tpu.memory_space<vmem>>, %arg5: memref<1x384xf32, #tpu.memory_space<vmem>>, %arg6: memref<128x128xbf16, #tpu.memory_space<vmem>>, %arg7: memref<1x128xf32, #tpu.memory_space<vmem>>, %arg8: memref<1x128xf32, #tpu.memory_space<vmem>>, %arg9: memref<1x128xf32, #tpu.memory_space<vmem>>, %arg10: memref<128x512xbf16, #tpu.memory_space<vmem>>, %arg11: memref<1x512xf32, #tpu.memory_space<vmem>>, %arg12: memref<512x128xbf16, #tpu.memory_space<vmem>>, %arg13: memref<1x128xf32, #tpu.memory_space<vmem>>, %arg14: memref<2x8x128xf32, #tpu.memory_space<vmem>>, %arg15: memref<16x384xbf16, #tpu.memory_space<vmem>>, %arg16: memref<16x128xbf16, #tpu.memory_space<vmem>>) attributes {dimension_semantics = [#tpu.dimension_semantics<parallel>], iteration_bounds = array<i64: 1>, scalar_prefetch = 0 : i64, scratch_operands = 2 : i64, tpu.core_type = #tpu.core_type<tc>, window_params = [{transform_indices = @transform_0, window_bounds = array<i64: 2, 8, 128>}, {pipeline_mode = #tpu.pipeline_mode<synchronous>, transform_indices = @transform_1, window_bounds = array<i64: 1, 128>}, {pipeline_mode = #tpu.pipeline_mode<synchronous>, transform_indices = @transform_2, window_bounds = array<i64: 1, 128>}, {pipeline_mode = #tpu.pipeline_mode<synchronous>, transform_indices = @transform_3, window_bounds = array<i64: 128, 384>}, {pipeline_mode = #tpu.pipeline_mode<synchronous>, transform_indices = @transform_4, window_bounds = array<i64: 1, 384>}, {pipeline_mode = #tpu.pipeline_mode<synchronous>, transform_indices = @transform_5, window_bounds = array<i64: 128, 128>}, {pipeline_mode = #tpu.pipeline_mode<synchronous>, transform_indices = @transform_6, window_bounds = array<i64: 1, 128>}, {pipeline_mode = #tpu.pipeline_mode<synchronous>, transform_indices = @transform_7, window_bounds = array<i64: 1, 128>}, {pipeline_mode = #tpu.pipeline_mode<synchronous>, transform_indices = @transform_8, window_bounds = array<i64: 1, 128>}, {pipeline_mode = #tpu.pipeline_mode<synchronous>, transform_indices = @transform_9, window_bounds = array<i64: 128, 512>}, {pipeline_mode = #tpu.pipeline_mode<synchronous>, transform_indices = @transform_10, window_bounds = array<i64: 1, 512>}, {pipeline_mode = #tpu.pipeline_mode<synchronous>, transform_indices = @transform_11, window_bounds = array<i64: 512, 128>}, {pipeline_mode = #tpu.pipeline_mode<synchronous>, transform_indices = @transform_12, window_bounds = array<i64: 1, 128>}, {transform_indices = @transform_13, window_bounds = array<i64: 2, 8, 128>}]} {
    %c0 = arith.constant 0 : index
    %c0_0 = arith.constant 0 : index
    %c0_1 = arith.constant 0 : index
    %0 = vector.load %arg1[%c0, %c0_0, %c0_1] : memref<2x8x128xf32, #tpu.memory_space<vmem>>, vector<2x8x128xf32>
    %1 = vector.shape_cast %0 : vector<2x8x128xf32> to vector<16x128xf32>
    %c0_2 = arith.constant 0 : index
    %c0_3 = arith.constant 0 : index
    %2 = vector.load %arg2[%c0_2, %c0_3] : memref<1x128xf32, #tpu.memory_space<vmem>>, vector<1x128xf32>
    %c0_4 = arith.constant 0 : index
    %c0_5 = arith.constant 0 : index
    %3 = vector.load %arg3[%c0_4, %c0_5] : memref<1x128xf32, #tpu.memory_space<vmem>>, vector<1x128xf32>
    %cst = arith.constant dense<0.000000e+00> : vector<16xf32>
    %4 = vector.multi_reduction <add>, %1, %cst [1] : vector<16x128xf32> to vector<16xf32>
    %5 = vector.shape_cast %4 : vector<16xf32> to vector<16x1xf32>
    %cst_6 = arith.constant 1.280000e+02 : f32
    %6 = vector.broadcast %cst_6 : f32 to vector<16x1xf32>
    %7 = arith.divf %5, %6 : vector<16x1xf32>
    %8 = vector.broadcast %7 : vector<16x1xf32> to vector<16x128xf32>
    %9 = arith.subf %1, %8 : vector<16x128xf32>
    %10 = arith.mulf %9, %9 : vector<16x128xf32>
    %cst_7 = arith.constant dense<0.000000e+00> : vector<16xf32>
    %11 = vector.multi_reduction <add>, %10, %cst_7 [1] : vector<16x128xf32> to vector<16xf32>
    %12 = vector.shape_cast %11 : vector<16xf32> to vector<16x1xf32>
    %cst_8 = arith.constant 1.280000e+02 : f32
    %13 = vector.broadcast %cst_8 : f32 to vector<16x1xf32>
    %14 = arith.divf %12, %13 : vector<16x1xf32>
    %cst_9 = arith.constant 9.99999974E-6 : f32
    %15 = vector.broadcast %cst_9 : f32 to vector<16x1xf32>
    %16 = arith.addf %14, %15 : vector<16x1xf32>
    %17 = math.rsqrt %16 : vector<16x1xf32>
    %18 = vector.broadcast %17 : vector<16x1xf32> to vector<16x128xf32>
    %19 = arith.mulf %9, %18 : vector<16x128xf32>
    %20 = vector.broadcast %2 : vector<1x128xf32> to vector<16x128xf32>
    %21 = arith.mulf %19, %20 : vector<16x128xf32>
    %22 = vector.broadcast %3 : vector<1x128xf32> to vector<16x128xf32>
    %23 = arith.addf %21, %22 : vector<16x128xf32>
    %24 = arith.truncf %23 : vector<16x128xf32> to vector<16x128xbf16>
    %c0_10 = arith.constant 0 : index
    %c0_11 = arith.constant 0 : index
    %25 = vector.load %arg4[%c0_10, %c0_11] : memref<128x384xbf16, #tpu.memory_space<vmem>>, vector<128x384xbf16>
    %cst_12 = arith.constant dense<0.000000e+00> : vector<16x384xf32>
    %26 = tpu.matmul %24, %25, %cst_12 {dimension_numbers = #tpu.dot_dimension_numbers<[1], [0], [0], [1], [0, 0, 1, 1], [], []>} : vector<16x128xbf16>, vector<128x384xbf16>, vector<16x384xf32> -> vector<16x384xf32>
    %c0_13 = arith.constant 0 : index
    %c0_14 = arith.constant 0 : index
    %27 = vector.load %arg5[%c0_13, %c0_14] : memref<1x384xf32, #tpu.memory_space<vmem>>, vector<1x384xf32>
    %28 = vector.broadcast %27 : vector<1x384xf32> to vector<16x384xf32>
    %29 = arith.addf %26, %28 : vector<16x384xf32>
    %30 = vector.extract_strided_slice %29 {offsets = [0, 0], sizes = [16, 128], strides = [1, 1]} : vector<16x384xf32> to vector<16x128xf32>
    %cst_15 = arith.constant 0.176776692 : f32
    %31 = vector.broadcast %cst_15 : f32 to vector<16x128xf32>
    %32 = arith.mulf %30, %31 : vector<16x128xf32>
    %33 = arith.truncf %32 : vector<16x128xf32> to vector<16x128xbf16>
    %c0_16 = arith.constant 0 : index
    %c0_17 = arith.constant 0 : index
    %34 = vector.load %arg15[%c0_16, %c0_17] : memref<16x384xbf16, #tpu.memory_space<vmem>>, vector<16x128xbf16>
    tpu.vector_store %arg15[%c0_16, %c0_17], %33 {strides = array<i32>} : memref<16x384xbf16, #tpu.memory_space<vmem>>, vector<16x128xbf16>,
    %35 = vector.extract_strided_slice %29 {offsets = [0, 128], sizes = [16, 256], strides = [1, 1]} : vector<16x384xf32> to vector<16x256xf32>
    %36 = arith.truncf %35 : vector<16x256xf32> to vector<16x256xbf16>
    %c0_18 = arith.constant 0 : index
    %c128 = arith.constant 128 : index
    %37 = vector.load %arg15[%c0_18, %c128] : memref<16x384xbf16, #tpu.memory_space<vmem>>, vector<16x256xbf16>
    tpu.vector_store %arg15[%c0_18, %c128], %36 {strides = array<i32>} : memref<16x384xbf16, #tpu.memory_space<vmem>>, vector<16x256xbf16>,
    %38 = tpu.iota {dimensions = array<i32: 0>} : vector<8x8xi32>
    %39 = tpu.iota {dimensions = array<i32: 1>} : vector<8x8xi32>
    %40 = arith.cmpi sge, %38, %39 : vector<8x8xi32>
    %41 = vector.shape_cast %40 : vector<8x8xi1> to vector<1x8x8xi1>
    %c0_19 = arith.constant 0 : index
    %c0_20 = arith.constant 0 : index
    %42 = vector.load %arg15[%c0_19, %c0_20] : memref<16x384xbf16, #tpu.memory_space<vmem>>, vector<16x32xbf16>
    %43 = vector.shape_cast %42 : vector<16x32xbf16> to vector<2x8x32xbf16>
    %c0_21 = arith.constant 0 : index
    %c128_22 = arith.constant 128 : index
    %44 = vector.load %arg15[%c0_21, %c128_22] : memref<16x384xbf16, #tpu.memory_space<vmem>>, vector<16x32xbf16>
    %45 = vector.shape_cast %44 : vector<16x32xbf16> to vector<2x8x32xbf16>
    %c0_23 = arith.constant 0 : index
    %c256 = arith.constant 256 : index
    %46 = vector.load %arg15[%c0_23, %c256] : memref<16x384xbf16, #tpu.memory_space<vmem>>, vector<16x32xbf16>
    %47 = vector.shape_cast %46 : vector<16x32xbf16> to vector<2x8x32xbf16>
    "tpu.trace_start"() <{level = 10 : i32, message = "bqd,bkd->bqk"}> : () -> ()
    %cst_24 = arith.constant dense<0.000000e+00> : vector<2x8x8xf32>
    %48 = tpu.matmul %43, %45, %cst_24 {dimension_numbers = #tpu.dot_dimension_numbers<[2], [2], [1], [1], [0, 0, 0, 1, 1, 1], [0], [0]>} : vector<2x8x32xbf16>, vector<2x8x32xbf16>, vector<2x8x8xf32> -> vector<2x8x8xf32>
    %cst_25 = arith.constant -1.000000e+30 : f32
    "tpu.trace_stop"() : () -> ()
    %49 = vector.shape_cast %41 : vector<1x8x8xi1> to vector<1x8x8xi1>
    %50 = vector.broadcast %49 : vector<1x8x8xi1> to vector<2x8x8xi1>
    %51 = vector.broadcast %cst_25 : f32 to vector<2x8x8xf32>
    %52 = arith.select %50, %48, %51 : vector<2x8x8xi1>, vector<2x8x8xf32>
    %cst_26 = arith.constant dense<0xFF800000> : vector<2x8xf32>
    %53 = vector.multi_reduction <maximumf>, %52, %cst_26 [2] : vector<2x8x8xf32> to vector<2x8xf32>
    %54 = vector.shape_cast %53 : vector<2x8xf32> to vector<2x8x1xf32>
    %55 = vector.broadcast %54 : vector<2x8x1xf32> to vector<2x8x8xf32>
    %56 = arith.subf %52, %55 : vector<2x8x8xf32>
    %57 = math.exp %56 : vector<2x8x8xf32>
    %cst_27 = arith.constant dense<0.000000e+00> : vector<2x8xf32>
    %58 = vector.multi_reduction <add>, %57, %cst_27 [2] : vector<2x8x8xf32> to vector<2x8xf32>
    %59 = vector.shape_cast %58 : vector<2x8xf32> to vector<2x8x1xf32>
    %60 = tpu.reciprocal %59 {approx = true} : vector<2x8x1xf32> -> vector<2x8x1xf32>
    %61 = vector.broadcast %60 : vector<2x8x1xf32> to vector<2x8x8xf32>
    %62 = arith.mulf %57, %61 : vector<2x8x8xf32>
    %63 = arith.truncf %62 : vector<2x8x8xf32> to vector<2x8x8xbf16>
    "tpu.trace_start"() <{level = 10 : i32, message = "bqk,bkd->bqd"}> : () -> ()
    %cst_28 = arith.constant dense<0.000000e+00> : vector<2x8x32xf32>
    %64 = tpu.matmul %63, %47, %cst_28 {dimension_numbers = #tpu.dot_dimension_numbers<[2], [1], [1], [2], [0, 0, 0, 1, 1, 2], [0], [0]>} : vector<2x8x8xbf16>, vector<2x8x32xbf16>, vector<2x8x32xf32> -> vector<2x8x32xf32>
    "tpu.trace_stop"() : () -> ()
    %65 = vector.shape_cast %64 : vector<2x8x32xf32> to vector<16x32xf32>
    %66 = arith.truncf %65 : vector<16x32xf32> to vector<16x32xbf16>
    %c0_29 = arith.constant 0 : index
    %c0_30 = arith.constant 0 : index
    %67 = vector.load %arg16[%c0_29, %c0_30] : memref<16x128xbf16, #tpu.memory_space<vmem>>, vector<16x32xbf16>
    tpu.vector_store %arg16[%c0_29, %c0_30], %66 {strides = array<i32>} : memref<16x128xbf16, #tpu.memory_space<vmem>>, vector<16x32xbf16>,
    %c0_31 = arith.constant 0 : index
    %c32 = arith.constant 32 : index
    %68 = vector.load %arg15[%c0_31, %c32] : memref<16x384xbf16, #tpu.memory_space<vmem>>, vector<16x32xbf16>
    %69 = vector.shape_cast %68 : vector<16x32xbf16> to vector<2x8x32xbf16>
    %c0_32 = arith.constant 0 : index
    %c160 = arith.constant 160 : index
    %70 = vector.load %arg15[%c0_32, %c160] : memref<16x384xbf16, #tpu.memory_space<vmem>>, vector<16x32xbf16>
    %71 = vector.shape_cast %70 : vector<16x32xbf16> to vector<2x8x32xbf16>
    %c0_33 = arith.constant 0 : index
    %c288 = arith.constant 288 : index
    %72 = vector.load %arg15[%c0_33, %c288] : memref<16x384xbf16, #tpu.memory_space<vmem>>, vector<16x32xbf16>
    %73 = vector.shape_cast %72 : vector<16x32xbf16> to vector<2x8x32xbf16>
    "tpu.trace_start"() <{level = 10 : i32, message = "bqd,bkd->bqk"}> : () -> ()
    %cst_34 = arith.constant dense<0.000000e+00> : vector<2x8x8xf32>
    %74 = tpu.matmul %69, %71, %cst_34 {dimension_numbers = #tpu.dot_dimension_numbers<[2], [2], [1], [1], [0, 0, 0, 1, 1, 1], [0], [0]>} : vector<2x8x32xbf16>, vector<2x8x32xbf16>, vector<2x8x8xf32> -> vector<2x8x8xf32>
    %cst_35 = arith.constant -1.000000e+30 : f32
    "tpu.trace_stop"() : () -> ()
    %75 = vector.shape_cast %41 : vector<1x8x8xi1> to vector<1x8x8xi1>
    %76 = vector.broadcast %75 : vector<1x8x8xi1> to vector<2x8x8xi1>
    %77 = vector.broadcast %cst_35 : f32 to vector<2x8x8xf32>
    %78 = arith.select %76, %74, %77 : vector<2x8x8xi1>, vector<2x8x8xf32>
    %cst_36 = arith.constant dense<0xFF800000> : vector<2x8xf32>
    %79 = vector.multi_reduction <maximumf>, %78, %cst_36 [2] : vector<2x8x8xf32> to vector<2x8xf32>
    %80 = vector.shape_cast %79 : vector<2x8xf32> to vector<2x8x1xf32>
    %81 = vector.broadcast %80 : vector<2x8x1xf32> to vector<2x8x8xf32>
    %82 = arith.subf %78, %81 : vector<2x8x8xf32>
    %83 = math.exp %82 : vector<2x8x8xf32>
    %cst_37 = arith.constant dense<0.000000e+00> : vector<2x8xf32>
    %84 = vector.multi_reduction <add>, %83, %cst_37 [2] : vector<2x8x8xf32> to vector<2x8xf32>
    %85 = vector.shape_cast %84 : vector<2x8xf32> to vector<2x8x1xf32>
    %86 = tpu.reciprocal %85 {approx = true} : vector<2x8x1xf32> -> vector<2x8x1xf32>
    %87 = vector.broadcast %86 : vector<2x8x1xf32> to vector<2x8x8xf32>
    %88 = arith.mulf %83, %87 : vector<2x8x8xf32>
    %89 = arith.truncf %88 : vector<2x8x8xf32> to vector<2x8x8xbf16>
    "tpu.trace_start"() <{level = 10 : i32, message = "bqk,bkd->bqd"}> : () -> ()
    %cst_38 = arith.constant dense<0.000000e+00> : vector<2x8x32xf32>
    %90 = tpu.matmul %89, %73, %cst_38 {dimension_numbers = #tpu.dot_dimension_numbers<[2], [1], [1], [2], [0, 0, 0, 1, 1, 2], [0], [0]>} : vector<2x8x8xbf16>, vector<2x8x32xbf16>, vector<2x8x32xf32> -> vector<2x8x32xf32>
    "tpu.trace_stop"() : () -> ()
    %91 = vector.shape_cast %90 : vector<2x8x32xf32> to vector<16x32xf32>
    %92 = arith.truncf %91 : vector<16x32xf32> to vector<16x32xbf16>
    %c0_39 = arith.constant 0 : index
    %c32_40 = arith.constant 32 : index
    %93 = vector.load %arg16[%c0_39, %c32_40] : memref<16x128xbf16, #tpu.memory_space<vmem>>, vector<16x32xbf16>
    tpu.vector_store %arg16[%c0_39, %c32_40], %92 {strides = array<i32>} : memref<16x128xbf16, #tpu.memory_space<vmem>>, vector<16x32xbf16>,
    %c0_41 = arith.constant 0 : index
    %c64 = arith.constant 64 : index
    %94 = vector.load %arg15[%c0_41, %c64] : memref<16x384xbf16, #tpu.memory_space<vmem>>, vector<16x32xbf16>
    %95 = vector.shape_cast %94 : vector<16x32xbf16> to vector<2x8x32xbf16>
    %c0_42 = arith.constant 0 : index
    %c192 = arith.constant 192 : index
    %96 = vector.load %arg15[%c0_42, %c192] : memref<16x384xbf16, #tpu.memory_space<vmem>>, vector<16x32xbf16>
    %97 = vector.shape_cast %96 : vector<16x32xbf16> to vector<2x8x32xbf16>
    %c0_43 = arith.constant 0 : index
    %c320 = arith.constant 320 : index
    %98 = vector.load %arg15[%c0_43, %c320] : memref<16x384xbf16, #tpu.memory_space<vmem>>, vector<16x32xbf16>
    %99 = vector.shape_cast %98 : vector<16x32xbf16> to vector<2x8x32xbf16>
    "tpu.trace_start"() <{level = 10 : i32, message = "bqd,bkd->bqk"}> : () -> ()
    %cst_44 = arith.constant dense<0.000000e+00> : vector<2x8x8xf32>
    %100 = tpu.matmul %95, %97, %cst_44 {dimension_numbers = #tpu.dot_dimension_numbers<[2], [2], [1], [1], [0, 0, 0, 1, 1, 1], [0], [0]>} : vector<2x8x32xbf16>, vector<2x8x32xbf16>, vector<2x8x8xf32> -> vector<2x8x8xf32>
    %cst_45 = arith.constant -1.000000e+30 : f32
    "tpu.trace_stop"() : () -> ()
    %101 = vector.shape_cast %41 : vector<1x8x8xi1> to vector<1x8x8xi1>
    %102 = vector.broadcast %101 : vector<1x8x8xi1> to vector<2x8x8xi1>
    %103 = vector.broadcast %cst_45 : f32 to vector<2x8x8xf32>
    %104 = arith.select %102, %100, %103 : vector<2x8x8xi1>, vector<2x8x8xf32>
    %cst_46 = arith.constant dense<0xFF800000> : vector<2x8xf32>
    %105 = vector.multi_reduction <maximumf>, %104, %cst_46 [2] : vector<2x8x8xf32> to vector<2x8xf32>
    %106 = vector.shape_cast %105 : vector<2x8xf32> to vector<2x8x1xf32>
    %107 = vector.broadcast %106 : vector<2x8x1xf32> to vector<2x8x8xf32>
    %108 = arith.subf %104, %107 : vector<2x8x8xf32>
    %109 = math.exp %108 : vector<2x8x8xf32>
    %cst_47 = arith.constant dense<0.000000e+00> : vector<2x8xf32>
    %110 = vector.multi_reduction <add>, %109, %cst_47 [2] : vector<2x8x8xf32> to vector<2x8xf32>
    %111 = vector.shape_cast %110 : vector<2x8xf32> to vector<2x8x1xf32>
    %112 = tpu.reciprocal %111 {approx = true} : vector<2x8x1xf32> -> vector<2x8x1xf32>
    %113 = vector.broadcast %112 : vector<2x8x1xf32> to vector<2x8x8xf32>
    %114 = arith.mulf %109, %113 : vector<2x8x8xf32>
    %115 = arith.truncf %114 : vector<2x8x8xf32> to vector<2x8x8xbf16>
    "tpu.trace_start"() <{level = 10 : i32, message = "bqk,bkd->bqd"}> : () -> ()
    %cst_48 = arith.constant dense<0.000000e+00> : vector<2x8x32xf32>
    %116 = tpu.matmul %115, %99, %cst_48 {dimension_numbers = #tpu.dot_dimension_numbers<[2], [1], [1], [2], [0, 0, 0, 1, 1, 2], [0], [0]>} : vector<2x8x8xbf16>, vector<2x8x32xbf16>, vector<2x8x32xf32> -> vector<2x8x32xf32>
    "tpu.trace_stop"() : () -> ()
    %117 = vector.shape_cast %116 : vector<2x8x32xf32> to vector<16x32xf32>
    %118 = arith.truncf %117 : vector<16x32xf32> to vector<16x32xbf16>
    %c0_49 = arith.constant 0 : index
    %c64_50 = arith.constant 64 : index
    %119 = vector.load %arg16[%c0_49, %c64_50] : memref<16x128xbf16, #tpu.memory_space<vmem>>, vector<16x32xbf16>
    tpu.vector_store %arg16[%c0_49, %c64_50], %118 {strides = array<i32>} : memref<16x128xbf16, #tpu.memory_space<vmem>>, vector<16x32xbf16>,
    %c0_51 = arith.constant 0 : index
    %c96 = arith.constant 96 : index
    %120 = vector.load %arg15[%c0_51, %c96] : memref<16x384xbf16, #tpu.memory_space<vmem>>, vector<16x32xbf16>
    %121 = vector.shape_cast %120 : vector<16x32xbf16> to vector<2x8x32xbf16>
    %c0_52 = arith.constant 0 : index
    %c224 = arith.constant 224 : index
    %122 = vector.load %arg15[%c0_52, %c224] : memref<16x384xbf16, #tpu.memory_space<vmem>>, vector<16x32xbf16>
    %123 = vector.shape_cast %122 : vector<16x32xbf16> to vector<2x8x32xbf16>
    %c0_53 = arith.constant 0 : index
    %c352 = arith.constant 352 : index
    %124 = vector.load %arg15[%c0_53, %c352] : memref<16x384xbf16, #tpu.memory_space<vmem>>, vector<16x32xbf16>
    %125 = vector.shape_cast %124 : vector<16x32xbf16> to vector<2x8x32xbf16>
    "tpu.trace_start"() <{level = 10 : i32, message = "bqd,bkd->bqk"}> : () -> ()
    %cst_54 = arith.constant dense<0.000000e+00> : vector<2x8x8xf32>
    %126 = tpu.matmul %121, %123, %cst_54 {dimension_numbers = #tpu.dot_dimension_numbers<[2], [2], [1], [1], [0, 0, 0, 1, 1, 1], [0], [0]>} : vector<2x8x32xbf16>, vector<2x8x32xbf16>, vector<2x8x8xf32> -> vector<2x8x8xf32>
    %cst_55 = arith.constant -1.000000e+30 : f32
    "tpu.trace_stop"() : () -> ()
    %127 = vector.shape_cast %41 : vector<1x8x8xi1> to vector<1x8x8xi1>
    %128 = vector.broadcast %127 : vector<1x8x8xi1> to vector<2x8x8xi1>
    %129 = vector.broadcast %cst_55 : f32 to vector<2x8x8xf32>
    %130 = arith.select %128, %126, %129 : vector<2x8x8xi1>, vector<2x8x8xf32>
    %cst_56 = arith.constant dense<0xFF800000> : vector<2x8xf32>
    %131 = vector.multi_reduction <maximumf>, %130, %cst_56 [2] : vector<2x8x8xf32> to vector<2x8xf32>
    %132 = vector.shape_cast %131 : vector<2x8xf32> to vector<2x8x1xf32>
    %133 = vector.broadcast %132 : vector<2x8x1xf32> to vector<2x8x8xf32>
    %134 = arith.subf %130, %133 : vector<2x8x8xf32>
    %135 = math.exp %134 : vector<2x8x8xf32>
    %cst_57 = arith.constant dense<0.000000e+00> : vector<2x8xf32>
    %136 = vector.multi_reduction <add>, %135, %cst_57 [2] : vector<2x8x8xf32> to vector<2x8xf32>
    %137 = vector.shape_cast %136 : vector<2x8xf32> to vector<2x8x1xf32>
    %138 = tpu.reciprocal %137 {approx = true} : vector<2x8x1xf32> -> vector<2x8x1xf32>
    %139 = vector.broadcast %138 : vector<2x8x1xf32> to vector<2x8x8xf32>
    %140 = arith.mulf %135, %139 : vector<2x8x8xf32>
    %141 = arith.truncf %140 : vector<2x8x8xf32> to vector<2x8x8xbf16>
    "tpu.trace_start"() <{level = 10 : i32, message = "bqk,bkd->bqd"}> : () -> ()
    %cst_58 = arith.constant dense<0.000000e+00> : vector<2x8x32xf32>
    %142 = tpu.matmul %141, %125, %cst_58 {dimension_numbers = #tpu.dot_dimension_numbers<[2], [1], [1], [2], [0, 0, 0, 1, 1, 2], [0], [0]>} : vector<2x8x8xbf16>, vector<2x8x32xbf16>, vector<2x8x32xf32> -> vector<2x8x32xf32>
    "tpu.trace_stop"() : () -> ()
    %143 = vector.shape_cast %142 : vector<2x8x32xf32> to vector<16x32xf32>
    %144 = arith.truncf %143 : vector<16x32xf32> to vector<16x32xbf16>
    %c0_59 = arith.constant 0 : index
    %c96_60 = arith.constant 96 : index
    %145 = vector.load %arg16[%c0_59, %c96_60] : memref<16x128xbf16, #tpu.memory_space<vmem>>, vector<16x32xbf16>
    tpu.vector_store %arg16[%c0_59, %c96_60], %144 {strides = array<i32>} : memref<16x128xbf16, #tpu.memory_space<vmem>>, vector<16x32xbf16>,
    %c0_61 = arith.constant 0 : index
    %c0_62 = arith.constant 0 : index
    %146 = vector.load %arg16[%c0_61, %c0_62] : memref<16x128xbf16, #tpu.memory_space<vmem>>, vector<16x128xbf16>
    %c0_63 = arith.constant 0 : index
    %c0_64 = arith.constant 0 : index
    %147 = vector.load %arg6[%c0_63, %c0_64] : memref<128x128xbf16, #tpu.memory_space<vmem>>, vector<128x128xbf16>
    %cst_65 = arith.constant dense<0.000000e+00> : vector<16x128xf32>
    %148 = tpu.matmul %146, %147, %cst_65 {dimension_numbers = #tpu.dot_dimension_numbers<[1], [0], [0], [1], [0, 0, 1, 1], [], []>} : vector<16x128xbf16>, vector<128x128xbf16>, vector<16x128xf32> -> vector<16x128xf32>
    %c0_66 = arith.constant 0 : index
    %c0_67 = arith.constant 0 : index
    %149 = vector.load %arg7[%c0_66, %c0_67] : memref<1x128xf32, #tpu.memory_space<vmem>>, vector<1x128xf32>
    %150 = vector.broadcast %149 : vector<1x128xf32> to vector<16x128xf32>
    %151 = arith.addf %148, %150 : vector<16x128xf32>
    %152 = arith.addf %1, %151 : vector<16x128xf32>
    %c0_68 = arith.constant 0 : index
    %c0_69 = arith.constant 0 : index
    %153 = vector.load %arg8[%c0_68, %c0_69] : memref<1x128xf32, #tpu.memory_space<vmem>>, vector<1x128xf32>
    %c0_70 = arith.constant 0 : index
    %c0_71 = arith.constant 0 : index
    %154 = vector.load %arg9[%c0_70, %c0_71] : memref<1x128xf32, #tpu.memory_space<vmem>>, vector<1x128xf32>
    %cst_72 = arith.constant dense<0.000000e+00> : vector<16xf32>
    %155 = vector.multi_reduction <add>, %152, %cst_72 [1] : vector<16x128xf32> to vector<16xf32>
    %156 = vector.shape_cast %155 : vector<16xf32> to vector<16x1xf32>
    %cst_73 = arith.constant 1.280000e+02 : f32
    %157 = vector.broadcast %cst_73 : f32 to vector<16x1xf32>
    %158 = arith.divf %156, %157 : vector<16x1xf32>
    %159 = vector.broadcast %158 : vector<16x1xf32> to vector<16x128xf32>
    %160 = arith.subf %152, %159 : vector<16x128xf32>
    %161 = arith.mulf %160, %160 : vector<16x128xf32>
    %cst_74 = arith.constant dense<0.000000e+00> : vector<16xf32>
    %162 = vector.multi_reduction <add>, %161, %cst_74 [1] : vector<16x128xf32> to vector<16xf32>
    %163 = vector.shape_cast %162 : vector<16xf32> to vector<16x1xf32>
    %cst_75 = arith.constant 1.280000e+02 : f32
    %164 = vector.broadcast %cst_75 : f32 to vector<16x1xf32>
    %165 = arith.divf %163, %164 : vector<16x1xf32>
    %cst_76 = arith.constant 9.99999974E-6 : f32
    %166 = vector.broadcast %cst_76 : f32 to vector<16x1xf32>
    %167 = arith.addf %165, %166 : vector<16x1xf32>
    %168 = math.rsqrt %167 : vector<16x1xf32>
    %169 = vector.broadcast %168 : vector<16x1xf32> to vector<16x128xf32>
    %170 = arith.mulf %160, %169 : vector<16x128xf32>
    %171 = vector.broadcast %153 : vector<1x128xf32> to vector<16x128xf32>
    %172 = arith.mulf %170, %171 : vector<16x128xf32>
    %173 = vector.broadcast %154 : vector<1x128xf32> to vector<16x128xf32>
    %174 = arith.addf %172, %173 : vector<16x128xf32>
    %175 = arith.truncf %174 : vector<16x128xf32> to vector<16x128xbf16>
    %c0_77 = arith.constant 0 : index
    %c0_78 = arith.constant 0 : index
    %176 = vector.load %arg10[%c0_77, %c0_78] : memref<128x512xbf16, #tpu.memory_space<vmem>>, vector<128x512xbf16>
    %cst_79 = arith.constant dense<0.000000e+00> : vector<16x512xf32>
    %177 = tpu.matmul %175, %176, %cst_79 {dimension_numbers = #tpu.dot_dimension_numbers<[1], [0], [0], [1], [0, 0, 1, 1], [], []>} : vector<16x128xbf16>, vector<128x512xbf16>, vector<16x512xf32> -> vector<16x512xf32>
    %c0_80 = arith.constant 0 : index
    %c0_81 = arith.constant 0 : index
    %178 = vector.load %arg11[%c0_80, %c0_81] : memref<1x512xf32, #tpu.memory_space<vmem>>, vector<1x512xf32>
    %179 = vector.broadcast %178 : vector<1x512xf32> to vector<16x512xf32>
    %180 = arith.addf %177, %179 : vector<16x512xf32>
    %cst_82 = arith.constant 5.000000e-01 : f32
    %181 = vector.broadcast %cst_82 : f32 to vector<16x512xf32>
    %182 = arith.mulf %181, %180 : vector<16x512xf32>
    %cst_83 = arith.constant 0.707106769 : f32
    %183 = vector.broadcast %cst_83 : f32 to vector<16x512xf32>
    %184 = arith.mulf %180, %183 : vector<16x512xf32>
    %cst_84 = arith.constant 0.000000e+00 : f32
    %185 = vector.broadcast %cst_84 : f32 to vector<16x512xf32>
    %186 = arith.cmpf oge, %184, %185 : vector<16x512xf32>
    %cst_85 = arith.constant 1.000000e+00 : f32
    %cst_86 = arith.constant -1.000000e+00 : f32
    %187 = vector.broadcast %cst_85 : f32 to vector<16x512xf32>
    %188 = vector.broadcast %cst_86 : f32 to vector<16x512xf32>
    %189 = arith.select %186, %187, %188 : vector<16x512xi1>, vector<16x512xf32>
    %190 = math.absf %184 : vector<16x512xf32>
    %cst_87 = arith.constant 0.327591091 : f32
    %191 = vector.broadcast %cst_87 : f32 to vector<16x512xf32>
    %192 = arith.mulf %191, %190 : vector<16x512xf32>
    %cst_88 = arith.constant 1.000000e+00 : f32
    %193 = vector.broadcast %cst_88 : f32 to vector<16x512xf32>
    %194 = arith.addf %193, %192 : vector<16x512xf32>
    %195 = tpu.reciprocal %194 {approx = true} : vector<16x512xf32> -> vector<16x512xf32>
    %cst_89 = arith.constant 1.06140542 : f32
    %196 = vector.broadcast %cst_89 : f32 to vector<16x512xf32>
    %197 = arith.mulf %196, %195 : vector<16x512xf32>
    %cst_90 = arith.constant -1.45315206 : f32
    %198 = vector.broadcast %cst_90 : f32 to vector<16x512xf32>
    %199 = arith.addf %197, %198 : vector<16x512xf32>
    %200 = arith.mulf %199, %195 : vector<16x512xf32>
    %cst_91 = arith.constant 1.42141378 : f32
    %201 = vector.broadcast %cst_91 : f32 to vector<16x512xf32>
    %202 = arith.addf %200, %201 : vector<16x512xf32>
    %203 = arith.mulf %202, %195 : vector<16x512xf32>
    %cst_92 = arith.constant -0.284496725 : f32
    %204 = vector.broadcast %cst_92 : f32 to vector<16x512xf32>
    %205 = arith.addf %203, %204 : vector<16x512xf32>
    %206 = arith.mulf %205, %195 : vector<16x512xf32>
    %cst_93 = arith.constant 0.254829586 : f32
    %207 = vector.broadcast %cst_93 : f32 to vector<16x512xf32>
    %208 = arith.addf %206, %207 : vector<16x512xf32>
    %209 = arith.mulf %208, %195 : vector<16x512xf32>
    %cst_94 = arith.constant 0.000000e+00 : f32
    %210 = vector.broadcast %cst_94 : f32 to vector<16x512xf32>
    %211 = arith.subf %210, %190 : vector<16x512xf32>
    %212 = arith.mulf %211, %190 : vector<16x512xf32>
    %213 = math.exp %212 : vector<16x512xf32>
    %214 = arith.mulf %209, %213 : vector<16x512xf32>
    %cst_95 = arith.constant 1.000000e+00 : f32
    %215 = vector.broadcast %cst_95 : f32 to vector<16x512xf32>
    %216 = arith.subf %215, %214 : vector<16x512xf32>
    %217 = arith.mulf %189, %216 : vector<16x512xf32>
    %cst_96 = arith.constant 1.000000e+00 : f32
    %218 = vector.broadcast %cst_96 : f32 to vector<16x512xf32>
    %219 = arith.addf %218, %217 : vector<16x512xf32>
    %220 = arith.mulf %182, %219 : vector<16x512xf32>
    %221 = arith.truncf %220 : vector<16x512xf32> to vector<16x512xbf16>
    %c0_97 = arith.constant 0 : index
    %c0_98 = arith.constant 0 : index
    %222 = vector.load %arg12[%c0_97, %c0_98] : memref<512x128xbf16, #tpu.memory_space<vmem>>, vector<512x128xbf16>
    %cst_99 = arith.constant dense<0.000000e+00> : vector<16x128xf32>
    %223 = tpu.matmul %221, %222, %cst_99 {dimension_numbers = #tpu.dot_dimension_numbers<[1], [0], [0], [1], [0, 0, 1, 1], [], []>} : vector<16x512xbf16>, vector<512x128xbf16>, vector<16x128xf32> -> vector<16x128xf32>
    %c0_100 = arith.constant 0 : index
    %c0_101 = arith.constant 0 : index
    %224 = vector.load %arg13[%c0_100, %c0_101] : memref<1x128xf32, #tpu.memory_space<vmem>>, vector<1x128xf32>
    %225 = vector.broadcast %224 : vector<1x128xf32> to vector<16x128xf32>
    %226 = arith.addf %223, %225 : vector<16x128xf32>
    %227 = arith.addf %152, %226 : vector<16x128xf32>
    %228 = vector.shape_cast %227 : vector<16x128xf32> to vector<2x8x128xf32>
    %c0_102 = arith.constant 0 : index
    %c0_103 = arith.constant 0 : index
    %c0_104 = arith.constant 0 : index
    %229 = vector.load %arg14[%c0_102, %c0_103, %c0_104] : memref<2x8x128xf32, #tpu.memory_space<vmem>>, vector<2x8x128xf32>
    tpu.vector_store %arg14[%c0_102, %c0_103, %c0_104], %228 {strides = array<i32>} : memref<2x8x128xf32, #tpu.memory_space<vmem>>, vector<2x8x128xf32>,
    return
  }
  func.func @transform_0(%arg0: i32) -> (i32, i32, i32) {
    %c0_i32 = arith.constant 0 : i32
    %c0_i32_0 = arith.constant 0 : i32
    %c0_i32_1 = arith.constant 0 : i32
    return %arg0, %c0_i32, %c0_i32_0 : i32, i32, i32
  }
  func.func @transform_1(%arg0: i32) -> (i32, i32) {
    %c0_i32 = arith.constant 0 : i32
    %c0_i32_0 = arith.constant 0 : i32
    %c0_i32_1 = arith.constant 0 : i32
    return %c0_i32, %c0_i32_0 : i32, i32
  }
  func.func @transform_2(%arg0: i32) -> (i32, i32) {
    %c0_i32 = arith.constant 0 : i32
    %c0_i32_0 = arith.constant 0 : i32
    %c0_i32_1 = arith.constant 0 : i32
    return %c0_i32, %c0_i32_0 : i32, i32
  }
  func.func @transform_3(%arg0: i32) -> (i32, i32) {
    %c0_i32 = arith.constant 0 : i32
    %c0_i32_0 = arith.constant 0 : i32
    %c0_i32_1 = arith.constant 0 : i32
    return %c0_i32, %c0_i32_0 : i32, i32
  }
  func.func @transform_4(%arg0: i32) -> (i32, i32) {
    %c0_i32 = arith.constant 0 : i32
    %c0_i32_0 = arith.constant 0 : i32
    %c0_i32_1 = arith.constant 0 : i32
    return %c0_i32, %c0_i32_0 : i32, i32
  }
  func.func @transform_5(%arg0: i32) -> (i32, i32) {
    %c0_i32 = arith.constant 0 : i32
    %c0_i32_0 = arith.constant 0 : i32
    %c0_i32_1 = arith.constant 0 : i32
    return %c0_i32, %c0_i32_0 : i32, i32
  }
  func.func @transform_6(%arg0: i32) -> (i32, i32) {
    %c0_i32 = arith.constant 0 : i32
    %c0_i32_0 = arith.constant 0 : i32
    %c0_i32_1 = arith.constant 0 : i32
    return %c0_i32, %c0_i32_0 : i32, i32
  }
  func.func @transform_7(%arg0: i32) -> (i32, i32) {
    %c0_i32 = arith.constant 0 : i32
    %c0_i32_0 = arith.constant 0 : i32
    %c0_i32_1 = arith.constant 0 : i32
    return %c0_i32, %c0_i32_0 : i32, i32
  }
  func.func @transform_8(%arg0: i32) -> (i32, i32) {
    %c0_i32 = arith.constant 0 : i32
    %c0_i32_0 = arith.constant 0 : i32
    %c0_i32_1 = arith.constant 0 : i32
    return %c0_i32, %c0_i32_0 : i32, i32
  }
  func.func @transform_9(%arg0: i32) -> (i32, i32) {
    %c0_i32 = arith.constant 0 : i32
    %c0_i32_0 = arith.constant 0 : i32
    %c0_i32_1 = arith.constant 0 : i32
    return %c0_i32, %c0_i32_0 : i32, i32
  }
  func.func @transform_10(%arg0: i32) -> (i32, i32) {
    %c0_i32 = arith.constant 0 : i32
    %c0_i32_0 = arith.constant 0 : i32
    %c0_i32_1 = arith.constant 0 : i32
    return %c0_i32, %c0_i32_0 : i32, i32
  }
  func.func @transform_11(%arg0: i32) -> (i32, i32) {
    %c0_i32 = arith.constant 0 : i32
    %c0_i32_0 = arith.constant 0 : i32
    %c0_i32_1 = arith.constant 0 : i32
    return %c0_i32, %c0_i32_0 : i32, i32
  }
  func.func @transform_12(%arg0: i32) -> (i32, i32) {
    %c0_i32 = arith.constant 0 : i32
    %c0_i32_0 = arith.constant 0 : i32
    %c0_i32_1 = arith.constant 0 : i32
    return %c0_i32, %c0_i32_0 : i32, i32
  }
  func.func @transform_13(%arg0: i32) -> (i32, i32, i32) {
    %c0_i32 = arith.constant 0 : i32
    %c0_i32_0 = arith.constant 0 : i32
    %c0_i32_1 = arith.constant 0 : i32
    return %arg0, %c0_i32, %c0_i32_0 : i32, i32, i32
  }
}

module attributes {stable_mosaic.version = 11 : i64} {
  func.func @_block_kernel(%arg0: i32, %arg1: memref<2x8x128xf32, #tpu.memory_space<vmem>>, %arg2: memref<1x128xf32, #tpu.memory_space<vmem>>, %arg3: memref<1x128xf32, #tpu.memory_space<vmem>>, %arg4: memref<128x384xbf16, #tpu.memory_space<vmem>>, %arg5: memref<1x384xf32, #tpu.memory_space<vmem>>, %arg6: memref<128x128xbf16, #tpu.memory_space<vmem>>, %arg7: memref<1x128xf32, #tpu.memory_space<vmem>>, %arg8: memref<1x128xf32, #tpu.memory_space<vmem>>, %arg9: memref<1x128xf32, #tpu.memory_space<vmem>>, %arg10: memref<128x512xbf16, #tpu.memory_space<vmem>>, %arg11: memref<1x512xf32, #tpu.memory_space<vmem>>, %arg12: memref<512x128xbf16, #tpu.memory_space<vmem>>, %arg13: memref<1x128xf32, #tpu.memory_space<vmem>>, %arg14: memref<2x8x128xf32, #tpu.memory_space<vmem>>, %arg15: memref<16x384xbf16, #tpu.memory_space<vmem>>, %arg16: memref<16x128xbf16, #tpu.memory_space<vmem>>) attributes {dimension_semantics = [#tpu.dimension_semantics<parallel>], iteration_bounds = array<i64: 1>, scalar_prefetch = 0 : i64, scratch_operands = 2 : i64, tpu.core_type = #tpu.core_type<tc>, window_params = [{transform_indices = @transform_0, window_bounds = array<i64: 2, 8, 128>}, {pipeline_mode = #tpu.pipeline_mode<synchronous>, transform_indices = @transform_1, window_bounds = array<i64: 1, 128>}, {pipeline_mode = #tpu.pipeline_mode<synchronous>, transform_indices = @transform_2, window_bounds = array<i64: 1, 128>}, {pipeline_mode = #tpu.pipeline_mode<synchronous>, transform_indices = @transform_3, window_bounds = array<i64: 128, 384>}, {pipeline_mode = #tpu.pipeline_mode<synchronous>, transform_indices = @transform_4, window_bounds = array<i64: 1, 384>}, {pipeline_mode = #tpu.pipeline_mode<synchronous>, transform_indices = @transform_5, window_bounds = array<i64: 128, 128>}, {pipeline_mode = #tpu.pipeline_mode<synchronous>, transform_indices = @transform_6, window_bounds = array<i64: 1, 128>}, {pipeline_mode = #tpu.pipeline_mode<synchronous>, transform_indices = @transform_7, window_bounds = array<i64: 1, 128>}, {pipeline_mode = #tpu.pipeline_mode<synchronous>, transform_indices = @transform_8, window_bounds = array<i64: 1, 128>}, {pipeline_mode = #tpu.pipeline_mode<synchronous>, transform_indices = @transform_9, window_bounds = array<i64: 128, 512>}, {pipeline_mode = #tpu.pipeline_mode<synchronous>, transform_indices = @transform_10, window_bounds = array<i64: 1, 512>}, {pipeline_mode = #tpu.pipeline_mode<synchronous>, transform_indices = @transform_11, window_bounds = array<i64: 512, 128>}, {pipeline_mode = #tpu.pipeline_mode<synchronous>, transform_indices = @transform_12, window_bounds = array<i64: 1, 128>}, {transform_indices = @transform_13, window_bounds = array<i64: 2, 8, 128>}]} {
    %c0 = arith.constant 0 : index
    %c0_0 = arith.constant 0 : index
    %c0_1 = arith.constant 0 : index
    %0 = vector.load %arg1[%c0, %c0_0, %c0_1] : memref<2x8x128xf32, #tpu.memory_space<vmem>>, vector<2x8x128xf32>
    %1 = vector.shape_cast %0 : vector<2x8x128xf32> to vector<16x128xf32>
    %c0_2 = arith.constant 0 : index
    %c0_3 = arith.constant 0 : index
    %2 = vector.load %arg2[%c0_2, %c0_3] : memref<1x128xf32, #tpu.memory_space<vmem>>, vector<1x128xf32>
    %c0_4 = arith.constant 0 : index
    %c0_5 = arith.constant 0 : index
    %3 = vector.load %arg3[%c0_4, %c0_5] : memref<1x128xf32, #tpu.memory_space<vmem>>, vector<1x128xf32>
    %cst = arith.constant dense<0.000000e+00> : vector<16xf32>
    %4 = vector.multi_reduction <add>, %1, %cst [1] : vector<16x128xf32> to vector<16xf32>
    %5 = vector.shape_cast %4 : vector<16xf32> to vector<16x1xf32>
    %cst_6 = arith.constant 1.280000e+02 : f32
    %6 = vector.broadcast %cst_6 : f32 to vector<16x1xf32>
    %7 = arith.divf %5, %6 : vector<16x1xf32>
    %8 = vector.broadcast %7 : vector<16x1xf32> to vector<16x128xf32>
    %9 = arith.subf %1, %8 : vector<16x128xf32>
    %10 = arith.mulf %9, %9 : vector<16x128xf32>
    %cst_7 = arith.constant dense<0.000000e+00> : vector<16xf32>
    %11 = vector.multi_reduction <add>, %10, %cst_7 [1] : vector<16x128xf32> to vector<16xf32>
    %12 = vector.shape_cast %11 : vector<16xf32> to vector<16x1xf32>
    %cst_8 = arith.constant 1.280000e+02 : f32
    %13 = vector.broadcast %cst_8 : f32 to vector<16x1xf32>
    %14 = arith.divf %12, %13 : vector<16x1xf32>
    %cst_9 = arith.constant 9.99999974E-6 : f32
    %15 = vector.broadcast %cst_9 : f32 to vector<16x1xf32>
    %16 = arith.addf %14, %15 : vector<16x1xf32>
    %17 = math.rsqrt %16 : vector<16x1xf32>
    %18 = vector.broadcast %17 : vector<16x1xf32> to vector<16x128xf32>
    %19 = arith.mulf %9, %18 : vector<16x128xf32>
    %20 = vector.broadcast %2 : vector<1x128xf32> to vector<16x128xf32>
    %21 = arith.mulf %19, %20 : vector<16x128xf32>
    %22 = vector.broadcast %3 : vector<1x128xf32> to vector<16x128xf32>
    %23 = arith.addf %21, %22 : vector<16x128xf32>
    %24 = arith.truncf %23 : vector<16x128xf32> to vector<16x128xbf16>
    %c0_10 = arith.constant 0 : index
    %c0_11 = arith.constant 0 : index
    %25 = vector.load %arg4[%c0_10, %c0_11] : memref<128x384xbf16, #tpu.memory_space<vmem>>, vector<128x384xbf16>
    %cst_12 = arith.constant dense<0.000000e+00> : vector<16x384xf32>
    %26 = tpu.matmul %24, %25, %cst_12 {dimension_numbers = #tpu.dot_dimension_numbers<[1], [0], [0], [1], [0, 0, 1, 1], [], []>} : vector<16x128xbf16>, vector<128x384xbf16>, vector<16x384xf32> -> vector<16x384xf32>
    %c0_13 = arith.constant 0 : index
    %c0_14 = arith.constant 0 : index
    %27 = vector.load %arg5[%c0_13, %c0_14] : memref<1x384xf32, #tpu.memory_space<vmem>>, vector<1x384xf32>
    %28 = vector.broadcast %27 : vector<1x384xf32> to vector<16x384xf32>
    %29 = arith.addf %26, %28 : vector<16x384xf32>
    %30 = vector.extract_strided_slice %29 {offsets = [0, 0], sizes = [16, 128], strides = [1, 1]} : vector<16x384xf32> to vector<16x128xf32>
    %cst_15 = arith.constant 0.176776692 : f32
    %31 = vector.broadcast %cst_15 : f32 to vector<16x128xf32>
    %32 = arith.mulf %30, %31 : vector<16x128xf32>
    %33 = arith.truncf %32 : vector<16x128xf32> to vector<16x128xbf16>
    %c0_16 = arith.constant 0 : index
    %c0_17 = arith.constant 0 : index
    %34 = vector.load %arg15[%c0_16, %c0_17] : memref<16x384xbf16, #tpu.memory_space<vmem>>, vector<16x128xbf16>
    tpu.vector_store %arg15[%c0_16, %c0_17], %33 {strides = array<i32>} : memref<16x384xbf16, #tpu.memory_space<vmem>>, vector<16x128xbf16>,
    %35 = vector.extract_strided_slice %29 {offsets = [0, 128], sizes = [16, 256], strides = [1, 1]} : vector<16x384xf32> to vector<16x256xf32>
    %36 = arith.truncf %35 : vector<16x256xf32> to vector<16x256xbf16>
    %c0_18 = arith.constant 0 : index
    %c128 = arith.constant 128 : index
    %37 = vector.load %arg15[%c0_18, %c128] : memref<16x384xbf16, #tpu.memory_space<vmem>>, vector<16x256xbf16>
    tpu.vector_store %arg15[%c0_18, %c128], %36 {strides = array<i32>} : memref<16x384xbf16, #tpu.memory_space<vmem>>, vector<16x256xbf16>,
    %38 = tpu.iota {dimensions = array<i32: 0>} : vector<8x8xi32>
    %39 = tpu.iota {dimensions = array<i32: 1>} : vector<8x8xi32>
    %40 = arith.cmpi sge, %38, %39 : vector<8x8xi32>
    %41 = vector.shape_cast %40 : vector<8x8xi1> to vector<1x8x8xi1>
    %c0_19 = arith.constant 0 : index
    %c0_20 = arith.constant 0 : index
    %42 = vector.load %arg15[%c0_19, %c0_20] : memref<16x384xbf16, #tpu.memory_space<vmem>>, vector<16x32xbf16>
    %43 = vector.shape_cast %42 : vector<16x32xbf16> to vector<2x8x32xbf16>
    %c0_21 = arith.constant 0 : index
    %c128_22 = arith.constant 128 : index
    %44 = vector.load %arg15[%c0_21, %c128_22] : memref<16x384xbf16, #tpu.memory_space<vmem>>, vector<16x32xbf16>
    %45 = vector.shape_cast %44 : vector<16x32xbf16> to vector<2x8x32xbf16>
    %c0_23 = arith.constant 0 : index
    %c256 = arith.constant 256 : index
    %46 = vector.load %arg15[%c0_23, %c256] : memref<16x384xbf16, #tpu.memory_space<vmem>>, vector<16x32xbf16>
    %47 = vector.shape_cast %46 : vector<16x32xbf16> to vector<2x8x32xbf16>
    "tpu.trace_start"() <{level = 10 : i32, message = "bqd,bkd->bqk"}> : () -> ()
    %cst_24 = arith.constant dense<0.000000e+00> : vector<2x8x8xf32>
    %48 = tpu.matmul %43, %45, %cst_24 {dimension_numbers = #tpu.dot_dimension_numbers<[2], [2], [1], [1], [0, 0, 0, 1, 1, 1], [0], [0]>} : vector<2x8x32xbf16>, vector<2x8x32xbf16>, vector<2x8x8xf32> -> vector<2x8x8xf32>
    %cst_25 = arith.constant -1.000000e+30 : f32
    "tpu.trace_stop"() : () -> ()
    %49 = vector.shape_cast %41 : vector<1x8x8xi1> to vector<1x8x8xi1>
    %50 = vector.broadcast %49 : vector<1x8x8xi1> to vector<2x8x8xi1>
    %51 = vector.broadcast %cst_25 : f32 to vector<2x8x8xf32>
    %52 = arith.select %50, %48, %51 : vector<2x8x8xi1>, vector<2x8x8xf32>
    %cst_26 = arith.constant dense<0xFF800000> : vector<2x8xf32>
    %53 = vector.multi_reduction <maximumf>, %52, %cst_26 [2] : vector<2x8x8xf32> to vector<2x8xf32>
    %54 = vector.shape_cast %53 : vector<2x8xf32> to vector<2x8x1xf32>
    %55 = vector.broadcast %54 : vector<2x8x1xf32> to vector<2x8x8xf32>
    %56 = arith.subf %52, %55 : vector<2x8x8xf32>
    %57 = math.exp %56 : vector<2x8x8xf32>
    %cst_27 = arith.constant dense<0.000000e+00> : vector<2x8xf32>
    %58 = vector.multi_reduction <add>, %57, %cst_27 [2] : vector<2x8x8xf32> to vector<2x8xf32>
    %59 = vector.shape_cast %58 : vector<2x8xf32> to vector<2x8x1xf32>
    %60 = tpu.reciprocal %59 {approx = true} : vector<2x8x1xf32> -> vector<2x8x1xf32>
    %61 = vector.broadcast %60 : vector<2x8x1xf32> to vector<2x8x8xf32>
    %62 = arith.mulf %57, %61 : vector<2x8x8xf32>
    %63 = arith.truncf %62 : vector<2x8x8xf32> to vector<2x8x8xbf16>
    "tpu.trace_start"() <{level = 10 : i32, message = "bqk,bkd->bqd"}> : () -> ()
    %cst_28 = arith.constant dense<0.000000e+00> : vector<2x8x32xf32>
    %64 = tpu.matmul %63, %47, %cst_28 {dimension_numbers = #tpu.dot_dimension_numbers<[2], [1], [1], [2], [0, 0, 0, 1, 1, 2], [0], [0]>} : vector<2x8x8xbf16>, vector<2x8x32xbf16>, vector<2x8x32xf32> -> vector<2x8x32xf32>
    "tpu.trace_stop"() : () -> ()
    %65 = vector.shape_cast %64 : vector<2x8x32xf32> to vector<16x32xf32>
    %66 = arith.truncf %65 : vector<16x32xf32> to vector<16x32xbf16>
    %c0_29 = arith.constant 0 : index
    %c0_30 = arith.constant 0 : index
    %67 = vector.load %arg16[%c0_29, %c0_30] : memref<16x128xbf16, #tpu.memory_space<vmem>>, vector<16x32xbf16>
    tpu.vector_store %arg16[%c0_29, %c0_30], %66 {strides = array<i32>} : memref<16x128xbf16, #tpu.memory_space<vmem>>, vector<16x32xbf16>,
    %c0_31 = arith.constant 0 : index
    %c32 = arith.constant 32 : index
    %68 = vector.load %arg15[%c0_31, %c32] : memref<16x384xbf16, #tpu.memory_space<vmem>>, vector<16x32xbf16>
    %69 = vector.shape_cast %68 : vector<16x32xbf16> to vector<2x8x32xbf16>
    %c0_32 = arith.constant 0 : index
    %c160 = arith.constant 160 : index
    %70 = vector.load %arg15[%c0_32, %c160] : memref<16x384xbf16, #tpu.memory_space<vmem>>, vector<16x32xbf16>
    %71 = vector.shape_cast %70 : vector<16x32xbf16> to vector<2x8x32xbf16>
    %c0_33 = arith.constant 0 : index
    %c288 = arith.constant 288 : index
    %72 = vector.load %arg15[%c0_33, %c288] : memref<16x384xbf16, #tpu.memory_space<vmem>>, vector<16x32xbf16>
    %73 = vector.shape_cast %72 : vector<16x32xbf16> to vector<2x8x32xbf16>
    "tpu.trace_start"() <{level = 10 : i32, message = "bqd,bkd->bqk"}> : () -> ()
    %cst_34 = arith.constant dense<0.000000e+00> : vector<2x8x8xf32>
    %74 = tpu.matmul %69, %71, %cst_34 {dimension_numbers = #tpu.dot_dimension_numbers<[2], [2], [1], [1], [0, 0, 0, 1, 1, 1], [0], [0]>} : vector<2x8x32xbf16>, vector<2x8x32xbf16>, vector<2x8x8xf32> -> vector<2x8x8xf32>
    %cst_35 = arith.constant -1.000000e+30 : f32
    "tpu.trace_stop"() : () -> ()
    %75 = vector.shape_cast %41 : vector<1x8x8xi1> to vector<1x8x8xi1>
    %76 = vector.broadcast %75 : vector<1x8x8xi1> to vector<2x8x8xi1>
    %77 = vector.broadcast %cst_35 : f32 to vector<2x8x8xf32>
    %78 = arith.select %76, %74, %77 : vector<2x8x8xi1>, vector<2x8x8xf32>
    %cst_36 = arith.constant dense<0xFF800000> : vector<2x8xf32>
    %79 = vector.multi_reduction <maximumf>, %78, %cst_36 [2] : vector<2x8x8xf32> to vector<2x8xf32>
    %80 = vector.shape_cast %79 : vector<2x8xf32> to vector<2x8x1xf32>
    %81 = vector.broadcast %80 : vector<2x8x1xf32> to vector<2x8x8xf32>
    %82 = arith.subf %78, %81 : vector<2x8x8xf32>
    %83 = math.exp %82 : vector<2x8x8xf32>
    %cst_37 = arith.constant dense<0.000000e+00> : vector<2x8xf32>
    %84 = vector.multi_reduction <add>, %83, %cst_37 [2] : vector<2x8x8xf32> to vector<2x8xf32>
    %85 = vector.shape_cast %84 : vector<2x8xf32> to vector<2x8x1xf32>
    %86 = tpu.reciprocal %85 {approx = true} : vector<2x8x1xf32> -> vector<2x8x1xf32>
    %87 = vector.broadcast %86 : vector<2x8x1xf32> to vector<2x8x8xf32>
    %88 = arith.mulf %83, %87 : vector<2x8x8xf32>
    %89 = arith.truncf %88 : vector<2x8x8xf32> to vector<2x8x8xbf16>
    "tpu.trace_start"() <{level = 10 : i32, message = "bqk,bkd->bqd"}> : () -> ()
    %cst_38 = arith.constant dense<0.000000e+00> : vector<2x8x32xf32>
    %90 = tpu.matmul %89, %73, %cst_38 {dimension_numbers = #tpu.dot_dimension_numbers<[2], [1], [1], [2], [0, 0, 0, 1, 1, 2], [0], [0]>} : vector<2x8x8xbf16>, vector<2x8x32xbf16>, vector<2x8x32xf32> -> vector<2x8x32xf32>
    "tpu.trace_stop"() : () -> ()
    %91 = vector.shape_cast %90 : vector<2x8x32xf32> to vector<16x32xf32>
    %92 = arith.truncf %91 : vector<16x32xf32> to vector<16x32xbf16>
    %c0_39 = arith.constant 0 : index
    %c32_40 = arith.constant 32 : index
    %93 = vector.load %arg16[%c0_39, %c32_40] : memref<16x128xbf16, #tpu.memory_space<vmem>>, vector<16x32xbf16>
    tpu.vector_store %arg16[%c0_39, %c32_40], %92 {strides = array<i32>} : memref<16x128xbf16, #tpu.memory_space<vmem>>, vector<16x32xbf16>,
    %c0_41 = arith.constant 0 : index
    %c64 = arith.constant 64 : index
    %94 = vector.load %arg15[%c0_41, %c64] : memref<16x384xbf16, #tpu.memory_space<vmem>>, vector<16x32xbf16>
    %95 = vector.shape_cast %94 : vector<16x32xbf16> to vector<2x8x32xbf16>
    %c0_42 = arith.constant 0 : index
    %c192 = arith.constant 192 : index
    %96 = vector.load %arg15[%c0_42, %c192] : memref<16x384xbf16, #tpu.memory_space<vmem>>, vector<16x32xbf16>
    %97 = vector.shape_cast %96 : vector<16x32xbf16> to vector<2x8x32xbf16>
    %c0_43 = arith.constant 0 : index
    %c320 = arith.constant 320 : index
    %98 = vector.load %arg15[%c0_43, %c320] : memref<16x384xbf16, #tpu.memory_space<vmem>>, vector<16x32xbf16>
    %99 = vector.shape_cast %98 : vector<16x32xbf16> to vector<2x8x32xbf16>
    "tpu.trace_start"() <{level = 10 : i32, message = "bqd,bkd->bqk"}> : () -> ()
    %cst_44 = arith.constant dense<0.000000e+00> : vector<2x8x8xf32>
    %100 = tpu.matmul %95, %97, %cst_44 {dimension_numbers = #tpu.dot_dimension_numbers<[2], [2], [1], [1], [0, 0, 0, 1, 1, 1], [0], [0]>} : vector<2x8x32xbf16>, vector<2x8x32xbf16>, vector<2x8x8xf32> -> vector<2x8x8xf32>
    %cst_45 = arith.constant -1.000000e+30 : f32
    "tpu.trace_stop"() : () -> ()
    %101 = vector.shape_cast %41 : vector<1x8x8xi1> to vector<1x8x8xi1>
    %102 = vector.broadcast %101 : vector<1x8x8xi1> to vector<2x8x8xi1>
    %103 = vector.broadcast %cst_45 : f32 to vector<2x8x8xf32>
    %104 = arith.select %102, %100, %103 : vector<2x8x8xi1>, vector<2x8x8xf32>
    %cst_46 = arith.constant dense<0xFF800000> : vector<2x8xf32>
    %105 = vector.multi_reduction <maximumf>, %104, %cst_46 [2] : vector<2x8x8xf32> to vector<2x8xf32>
    %106 = vector.shape_cast %105 : vector<2x8xf32> to vector<2x8x1xf32>
    %107 = vector.broadcast %106 : vector<2x8x1xf32> to vector<2x8x8xf32>
    %108 = arith.subf %104, %107 : vector<2x8x8xf32>
    %109 = math.exp %108 : vector<2x8x8xf32>
    %cst_47 = arith.constant dense<0.000000e+00> : vector<2x8xf32>
    %110 = vector.multi_reduction <add>, %109, %cst_47 [2] : vector<2x8x8xf32> to vector<2x8xf32>
    %111 = vector.shape_cast %110 : vector<2x8xf32> to vector<2x8x1xf32>
    %112 = tpu.reciprocal %111 {approx = true} : vector<2x8x1xf32> -> vector<2x8x1xf32>
    %113 = vector.broadcast %112 : vector<2x8x1xf32> to vector<2x8x8xf32>
    %114 = arith.mulf %109, %113 : vector<2x8x8xf32>
    %115 = arith.truncf %114 : vector<2x8x8xf32> to vector<2x8x8xbf16>
    "tpu.trace_start"() <{level = 10 : i32, message = "bqk,bkd->bqd"}> : () -> ()
    %cst_48 = arith.constant dense<0.000000e+00> : vector<2x8x32xf32>
    %116 = tpu.matmul %115, %99, %cst_48 {dimension_numbers = #tpu.dot_dimension_numbers<[2], [1], [1], [2], [0, 0, 0, 1, 1, 2], [0], [0]>} : vector<2x8x8xbf16>, vector<2x8x32xbf16>, vector<2x8x32xf32> -> vector<2x8x32xf32>
    "tpu.trace_stop"() : () -> ()
    %117 = vector.shape_cast %116 : vector<2x8x32xf32> to vector<16x32xf32>
    %118 = arith.truncf %117 : vector<16x32xf32> to vector<16x32xbf16>
    %c0_49 = arith.constant 0 : index
    %c64_50 = arith.constant 64 : index
    %119 = vector.load %arg16[%c0_49, %c64_50] : memref<16x128xbf16, #tpu.memory_space<vmem>>, vector<16x32xbf16>
    tpu.vector_store %arg16[%c0_49, %c64_50], %118 {strides = array<i32>} : memref<16x128xbf16, #tpu.memory_space<vmem>>, vector<16x32xbf16>,
    %c0_51 = arith.constant 0 : index
    %c96 = arith.constant 96 : index
    %120 = vector.load %arg15[%c0_51, %c96] : memref<16x384xbf16, #tpu.memory_space<vmem>>, vector<16x32xbf16>
    %121 = vector.shape_cast %120 : vector<16x32xbf16> to vector<2x8x32xbf16>
    %c0_52 = arith.constant 0 : index
    %c224 = arith.constant 224 : index
    %122 = vector.load %arg15[%c0_52, %c224] : memref<16x384xbf16, #tpu.memory_space<vmem>>, vector<16x32xbf16>
    %123 = vector.shape_cast %122 : vector<16x32xbf16> to vector<2x8x32xbf16>
    %c0_53 = arith.constant 0 : index
    %c352 = arith.constant 352 : index
    %124 = vector.load %arg15[%c0_53, %c352] : memref<16x384xbf16, #tpu.memory_space<vmem>>, vector<16x32xbf16>
    %125 = vector.shape_cast %124 : vector<16x32xbf16> to vector<2x8x32xbf16>
    "tpu.trace_start"() <{level = 10 : i32, message = "bqd,bkd->bqk"}> : () -> ()
    %cst_54 = arith.constant dense<0.000000e+00> : vector<2x8x8xf32>
    %126 = tpu.matmul %121, %123, %cst_54 {dimension_numbers = #tpu.dot_dimension_numbers<[2], [2], [1], [1], [0, 0, 0, 1, 1, 1], [0], [0]>} : vector<2x8x32xbf16>, vector<2x8x32xbf16>, vector<2x8x8xf32> -> vector<2x8x8xf32>
    %cst_55 = arith.constant -1.000000e+30 : f32
    "tpu.trace_stop"() : () -> ()
    %127 = vector.shape_cast %41 : vector<1x8x8xi1> to vector<1x8x8xi1>
    %128 = vector.broadcast %127 : vector<1x8x8xi1> to vector<2x8x8xi1>
    %129 = vector.broadcast %cst_55 : f32 to vector<2x8x8xf32>
    %130 = arith.select %128, %126, %129 : vector<2x8x8xi1>, vector<2x8x8xf32>
    %cst_56 = arith.constant dense<0xFF800000> : vector<2x8xf32>
    %131 = vector.multi_reduction <maximumf>, %130, %cst_56 [2] : vector<2x8x8xf32> to vector<2x8xf32>
    %132 = vector.shape_cast %131 : vector<2x8xf32> to vector<2x8x1xf32>
    %133 = vector.broadcast %132 : vector<2x8x1xf32> to vector<2x8x8xf32>
    %134 = arith.subf %130, %133 : vector<2x8x8xf32>
    %135 = math.exp %134 : vector<2x8x8xf32>
    %cst_57 = arith.constant dense<0.000000e+00> : vector<2x8xf32>
    %136 = vector.multi_reduction <add>, %135, %cst_57 [2] : vector<2x8x8xf32> to vector<2x8xf32>
    %137 = vector.shape_cast %136 : vector<2x8xf32> to vector<2x8x1xf32>
    %138 = tpu.reciprocal %137 {approx = true} : vector<2x8x1xf32> -> vector<2x8x1xf32>
    %139 = vector.broadcast %138 : vector<2x8x1xf32> to vector<2x8x8xf32>
    %140 = arith.mulf %135, %139 : vector<2x8x8xf32>
    %141 = arith.truncf %140 : vector<2x8x8xf32> to vector<2x8x8xbf16>
    "tpu.trace_start"() <{level = 10 : i32, message = "bqk,bkd->bqd"}> : () -> ()
    %cst_58 = arith.constant dense<0.000000e+00> : vector<2x8x32xf32>
    %142 = tpu.matmul %141, %125, %cst_58 {dimension_numbers = #tpu.dot_dimension_numbers<[2], [1], [1], [2], [0, 0, 0, 1, 1, 2], [0], [0]>} : vector<2x8x8xbf16>, vector<2x8x32xbf16>, vector<2x8x32xf32> -> vector<2x8x32xf32>
    "tpu.trace_stop"() : () -> ()
    %143 = vector.shape_cast %142 : vector<2x8x32xf32> to vector<16x32xf32>
    %144 = arith.truncf %143 : vector<16x32xf32> to vector<16x32xbf16>
    %c0_59 = arith.constant 0 : index
    %c96_60 = arith.constant 96 : index
    %145 = vector.load %arg16[%c0_59, %c96_60] : memref<16x128xbf16, #tpu.memory_space<vmem>>, vector<16x32xbf16>
    tpu.vector_store %arg16[%c0_59, %c96_60], %144 {strides = array<i32>} : memref<16x128xbf16, #tpu.memory_space<vmem>>, vector<16x32xbf16>,
    %c0_61 = arith.constant 0 : index
    %c0_62 = arith.constant 0 : index
    %146 = vector.load %arg16[%c0_61, %c0_62] : memref<16x128xbf16, #tpu.memory_space<vmem>>, vector<16x128xbf16>
    %c0_63 = arith.constant 0 : index
    %c0_64 = arith.constant 0 : index
    %147 = vector.load %arg6[%c0_63, %c0_64] : memref<128x128xbf16, #tpu.memory_space<vmem>>, vector<128x128xbf16>
    %cst_65 = arith.constant dense<0.000000e+00> : vector<16x128xf32>
    %148 = tpu.matmul %146, %147, %cst_65 {dimension_numbers = #tpu.dot_dimension_numbers<[1], [0], [0], [1], [0, 0, 1, 1], [], []>} : vector<16x128xbf16>, vector<128x128xbf16>, vector<16x128xf32> -> vector<16x128xf32>
    %c0_66 = arith.constant 0 : index
    %c0_67 = arith.constant 0 : index
    %149 = vector.load %arg7[%c0_66, %c0_67] : memref<1x128xf32, #tpu.memory_space<vmem>>, vector<1x128xf32>
    %150 = vector.broadcast %149 : vector<1x128xf32> to vector<16x128xf32>
    %151 = arith.addf %148, %150 : vector<16x128xf32>
    %152 = arith.addf %1, %151 : vector<16x128xf32>
    %c0_68 = arith.constant 0 : index
    %c0_69 = arith.constant 0 : index
    %153 = vector.load %arg8[%c0_68, %c0_69] : memref<1x128xf32, #tpu.memory_space<vmem>>, vector<1x128xf32>
    %c0_70 = arith.constant 0 : index
    %c0_71 = arith.constant 0 : index
    %154 = vector.load %arg9[%c0_70, %c0_71] : memref<1x128xf32, #tpu.memory_space<vmem>>, vector<1x128xf32>
    %cst_72 = arith.constant dense<0.000000e+00> : vector<16xf32>
    %155 = vector.multi_reduction <add>, %152, %cst_72 [1] : vector<16x128xf32> to vector<16xf32>
    %156 = vector.shape_cast %155 : vector<16xf32> to vector<16x1xf32>
    %cst_73 = arith.constant 1.280000e+02 : f32
    %157 = vector.broadcast %cst_73 : f32 to vector<16x1xf32>
    %158 = arith.divf %156, %157 : vector<16x1xf32>
    %159 = vector.broadcast %158 : vector<16x1xf32> to vector<16x128xf32>
    %160 = arith.subf %152, %159 : vector<16x128xf32>
    %161 = arith.mulf %160, %160 : vector<16x128xf32>
    %cst_74 = arith.constant dense<0.000000e+00> : vector<16xf32>
    %162 = vector.multi_reduction <add>, %161, %cst_74 [1] : vector<16x128xf32> to vector<16xf32>
    %163 = vector.shape_cast %162 : vector<16xf32> to vector<16x1xf32>
    %cst_75 = arith.constant 1.280000e+02 : f32
    %164 = vector.broadcast %cst_75 : f32 to vector<16x1xf32>
    %165 = arith.divf %163, %164 : vector<16x1xf32>
    %cst_76 = arith.constant 9.99999974E-6 : f32
    %166 = vector.broadcast %cst_76 : f32 to vector<16x1xf32>
    %167 = arith.addf %165, %166 : vector<16x1xf32>
    %168 = math.rsqrt %167 : vector<16x1xf32>
    %169 = vector.broadcast %168 : vector<16x1xf32> to vector<16x128xf32>
    %170 = arith.mulf %160, %169 : vector<16x128xf32>
    %171 = vector.broadcast %153 : vector<1x128xf32> to vector<16x128xf32>
    %172 = arith.mulf %170, %171 : vector<16x128xf32>
    %173 = vector.broadcast %154 : vector<1x128xf32> to vector<16x128xf32>
    %174 = arith.addf %172, %173 : vector<16x128xf32>
    %175 = arith.truncf %174 : vector<16x128xf32> to vector<16x128xbf16>
    %c0_77 = arith.constant 0 : index
    %c0_78 = arith.constant 0 : index
    %176 = vector.load %arg10[%c0_77, %c0_78] : memref<128x512xbf16, #tpu.memory_space<vmem>>, vector<128x512xbf16>
    %cst_79 = arith.constant dense<0.000000e+00> : vector<16x512xf32>
    %177 = tpu.matmul %175, %176, %cst_79 {dimension_numbers = #tpu.dot_dimension_numbers<[1], [0], [0], [1], [0, 0, 1, 1], [], []>} : vector<16x128xbf16>, vector<128x512xbf16>, vector<16x512xf32> -> vector<16x512xf32>
    %c0_80 = arith.constant 0 : index
    %c0_81 = arith.constant 0 : index
    %178 = vector.load %arg11[%c0_80, %c0_81] : memref<1x512xf32, #tpu.memory_space<vmem>>, vector<1x512xf32>
    %179 = vector.broadcast %178 : vector<1x512xf32> to vector<16x512xf32>
    %180 = arith.addf %177, %179 : vector<16x512xf32>
    %cst_82 = arith.constant 5.000000e-01 : f32
    %181 = vector.broadcast %cst_82 : f32 to vector<16x512xf32>
    %182 = arith.mulf %181, %180 : vector<16x512xf32>
    %cst_83 = arith.constant 0.707106769 : f32
    %183 = vector.broadcast %cst_83 : f32 to vector<16x512xf32>
    %184 = arith.mulf %180, %183 : vector<16x512xf32>
    %cst_84 = arith.constant 0.000000e+00 : f32
    %185 = vector.broadcast %cst_84 : f32 to vector<16x512xf32>
    %186 = arith.cmpf oge, %184, %185 : vector<16x512xf32>
    %cst_85 = arith.constant 1.000000e+00 : f32
    %cst_86 = arith.constant -1.000000e+00 : f32
    %187 = vector.broadcast %cst_85 : f32 to vector<16x512xf32>
    %188 = vector.broadcast %cst_86 : f32 to vector<16x512xf32>
    %189 = arith.select %186, %187, %188 : vector<16x512xi1>, vector<16x512xf32>
    %190 = math.absf %184 : vector<16x512xf32>
    %cst_87 = arith.constant 0.327591091 : f32
    %191 = vector.broadcast %cst_87 : f32 to vector<16x512xf32>
    %192 = arith.mulf %191, %190 : vector<16x512xf32>
    %cst_88 = arith.constant 1.000000e+00 : f32
    %193 = vector.broadcast %cst_88 : f32 to vector<16x512xf32>
    %194 = arith.addf %193, %192 : vector<16x512xf32>
    %195 = tpu.reciprocal %194 {approx = true} : vector<16x512xf32> -> vector<16x512xf32>
    %cst_89 = arith.constant 1.06140542 : f32
    %196 = vector.broadcast %cst_89 : f32 to vector<16x512xf32>
    %197 = arith.mulf %196, %195 : vector<16x512xf32>
    %cst_90 = arith.constant -1.45315206 : f32
    %198 = vector.broadcast %cst_90 : f32 to vector<16x512xf32>
    %199 = arith.addf %197, %198 : vector<16x512xf32>
    %200 = arith.mulf %199, %195 : vector<16x512xf32>
    %cst_91 = arith.constant 1.42141378 : f32
    %201 = vector.broadcast %cst_91 : f32 to vector<16x512xf32>
    %202 = arith.addf %200, %201 : vector<16x512xf32>
    %203 = arith.mulf %202, %195 : vector<16x512xf32>
    %cst_92 = arith.constant -0.284496725 : f32
    %204 = vector.broadcast %cst_92 : f32 to vector<16x512xf32>
    %205 = arith.addf %203, %204 : vector<16x512xf32>
    %206 = arith.mulf %205, %195 : vector<16x512xf32>
    %cst_93 = arith.constant 0.254829586 : f32
    %207 = vector.broadcast %cst_93 : f32 to vector<16x512xf32>
    %208 = arith.addf %206, %207 : vector<16x512xf32>
    %209 = arith.mulf %208, %195 : vector<16x512xf32>
    %cst_94 = arith.constant 0.000000e+00 : f32
    %210 = vector.broadcast %cst_94 : f32 to vector<16x512xf32>
    %211 = arith.subf %210, %190 : vector<16x512xf32>
    %212 = arith.mulf %211, %190 : vector<16x512xf32>
    %213 = math.exp %212 : vector<16x512xf32>
    %214 = arith.mulf %209, %213 : vector<16x512xf32>
    %cst_95 = arith.constant 1.000000e+00 : f32
    %215 = vector.broadcast %cst_95 : f32 to vector<16x512xf32>
    %216 = arith.subf %215, %214 : vector<16x512xf32>
    %217 = arith.mulf %189, %216 : vector<16x512xf32>
    %cst_96 = arith.constant 1.000000e+00 : f32
    %218 = vector.broadcast %cst_96 : f32 to vector<16x512xf32>
    %219 = arith.addf %218, %217 : vector<16x512xf32>
    %220 = arith.mulf %182, %219 : vector<16x512xf32>
    %221 = arith.truncf %220 : vector<16x512xf32> to vector<16x512xbf16>
    %c0_97 = arith.constant 0 : index
    %c0_98 = arith.constant 0 : index
    %222 = vector.load %arg12[%c0_97, %c0_98] : memref<512x128xbf16, #tpu.memory_space<vmem>>, vector<512x128xbf16>
    %cst_99 = arith.constant dense<0.000000e+00> : vector<16x128xf32>
    %223 = tpu.matmul %221, %222, %cst_99 {dimension_numbers = #tpu.dot_dimension_numbers<[1], [0], [0], [1], [0, 0, 1, 1], [], []>} : vector<16x512xbf16>, vector<512x128xbf16>, vector<16x128xf32> -> vector<16x128xf32>
    %c0_100 = arith.constant 0 : index
    %c0_101 = arith.constant 0 : index
    %224 = vector.load %arg13[%c0_100, %c0_101] : memref<1x128xf32, #tpu.memory_space<vmem>>, vector<1x128xf32>
    %225 = vector.broadcast %224 : vector<1x128xf32> to vector<16x128xf32>
    %226 = arith.addf %223, %225 : vector<16x128xf32>
    %227 = arith.addf %152, %226 : vector<16x128xf32>
    %228 = vector.shape_cast %227 : vector<16x128xf32> to vector<2x8x128xf32>
    %c0_102 = arith.constant 0 : index
    %c0_103 = arith.constant 0 : index
    %c0_104 = arith.constant 0 : index
    %229 = vector.load %arg14[%c0_102, %c0_103, %c0_104] : memref<2x8x128xf32, #tpu.memory_space<vmem>>, vector<2x8x128xf32>
    tpu.vector_store %arg14[%c0_102, %c0_103, %c0_104], %228 {strides = array<i32>} : memref<2x8x128xf32, #tpu.memory_space<vmem>>, vector<2x8x128xf32>,
    return
  }
  func.func @transform_0(%arg0: i32) -> (i32, i32, i32) {
    %c0_i32 = arith.constant 0 : i32
    %c0_i32_0 = arith.constant 0 : i32
    %c0_i32_1 = arith.constant 0 : i32
    return %arg0, %c0_i32, %c0_i32_0 : i32, i32, i32
  }
  func.func @transform_1(%arg0: i32) -> (i32, i32) {
    %c0_i32 = arith.constant 0 : i32
    %c0_i32_0 = arith.constant 0 : i32
    %c0_i32_1 = arith.constant 0 : i32
    return %c0_i32, %c0_i32_0 : i32, i32
  }
  func.func @transform_2(%arg0: i32) -> (i32, i32) {
    %c0_i32 = arith.constant 0 : i32
    %c0_i32_0 = arith.constant 0 : i32
    %c0_i32_1 = arith.constant 0 : i32
    return %c0_i32, %c0_i32_0 : i32, i32
  }
  func.func @transform_3(%arg0: i32) -> (i32, i32) {
    %c0_i32 = arith.constant 0 : i32
    %c0_i32_0 = arith.constant 0 : i32
    %c0_i32_1 = arith.constant 0 : i32
    return %c0_i32, %c0_i32_0 : i32, i32
  }
  func.func @transform_4(%arg0: i32) -> (i32, i32) {
    %c0_i32 = arith.constant 0 : i32
    %c0_i32_0 = arith.constant 0 : i32
    %c0_i32_1 = arith.constant 0 : i32
    return %c0_i32, %c0_i32_0 : i32, i32
  }
  func.func @transform_5(%arg0: i32) -> (i32, i32) {
    %c0_i32 = arith.constant 0 : i32
    %c0_i32_0 = arith.constant 0 : i32
    %c0_i32_1 = arith.constant 0 : i32
    return %c0_i32, %c0_i32_0 : i32, i32
  }
  func.func @transform_6(%arg0: i32) -> (i32, i32) {
    %c0_i32 = arith.constant 0 : i32
    %c0_i32_0 = arith.constant 0 : i32
    %c0_i32_1 = arith.constant 0 : i32
    return %c0_i32, %c0_i32_0 : i32, i32
  }
  func.func @transform_7(%arg0: i32) -> (i32, i32) {
    %c0_i32 = arith.constant 0 : i32
    %c0_i32_0 = arith.constant 0 : i32
    %c0_i32_1 = arith.constant 0 : i32
    return %c0_i32, %c0_i32_0 : i32, i32
  }
  func.func @transform_8(%arg0: i32) -> (i32, i32) {
    %c0_i32 = arith.constant 0 : i32
    %c0_i32_0 = arith.constant 0 : i32
    %c0_i32_1 = arith.constant 0 : i32
    return %c0_i32, %c0_i32_0 : i32, i32
  }
  func.func @transform_9(%arg0: i32) -> (i32, i32) {
    %c0_i32 = arith.constant 0 : i32
    %c0_i32_0 = arith.constant 0 : i32
    %c0_i32_1 = arith.constant 0 : i32
    return %c0_i32, %c0_i32_0 : i32, i32
  }
  func.func @transform_10(%arg0: i32) -> (i32, i32) {
    %c0_i32 = arith.constant 0 : i32
    %c0_i32_0 = arith.constant 0 : i32
    %c0_i32_1 = arith.constant 0 : i32
    return %c0_i32, %c0_i32_0 : i32, i32
  }
  func.func @transform_11(%arg0: i32) -> (i32, i32) {
    %c0_i32 = arith.constant 0 : i32
    %c0_i32_0 = arith.constant 0 : i32
    %c0_i32_1 = arith.constant 0 : i32
    return %c0_i32, %c0_i32_0 : i32, i32
  }
  func.func @transform_12(%arg0: i32) -> (i32, i32) {
    %c0_i32 = arith.constant 0 : i32
    %c0_i32_0 = arith.constant 0 : i32
    %c0_i32_1 = arith.constant 0 : i32
    return %c0_i32, %c0_i32_0 : i32, i32
  }
  func.func @transform_13(%arg0: i32) -> (i32, i32, i32) {
    %c0_i32 = arith.constant 0 : i32
    %c0_i32_0 = arith.constant 0 : i32
    %c0_i32_1 = arith.constant 0 : i32
    return %arg0, %c0_i32, %c0_i32_0 : i32, i32, i32
  }
}

</mosaic_0001>

<bundles_post_ra>
// kernel: tpu_custom_call.1
= control target key start
LH: loop header
LB: loop body
LE: loop exit
PB: predicated region body
PF: predicated region fallthrough
CT: control target
= control target key end

     0   :  { %18 = vsyncpa [#allocation5], 0  ;;  %s4150_s0 = inlined_call_operand.hbm [shape: f32[2,8,128], index: 0, kind: input, shape index: {}]   ;;  %s4151_s1 = inlined_call_operand.hbm [shape: f32[1,128], index: 1, kind: input, shape index: {}]   ;;  %s4152_s2 = inlined_call_operand.hbm [shape: f32[1,128], index: 2, kind: input, shape index: {}]   ;;  %s4153_s3 = inlined_call_operand.hbm [shape: bf16[128,384], index: 3, kind: input, shape index: {}]   ;;  %s4154_s4 = inlined_call_operand.hbm [shape: f32[1,384], index: 4, kind: input, shape index: {}]   ;;  %s4155_s5 = inlined_call_operand.hbm [shape: bf16[128,128], index: 5, kind: input, shape index: {}]   ;;  %s4156_s6 = inlined_call_operand.hbm [shape: f32[1,128], index: 6, kind: input, shape index: {}]   ;;  %s4157_s7 = inlined_call_operand.hbm [shape: f32[1,128], index: 7, kind: input, shape index: {}]   ;;  %s4158_s8 = inlined_call_operand.hbm [shape: f32[1,128], index: 8, kind: input, shape index: {}]   ;;  %s4159_s9 = inlined_call_operand.hbm [shape: bf16[128,512], index: 9, kind: input, shape index: {}]   ;;  %s4160_s10 = inlined_call_operand.hbm [shape: f32[1,512], index: 10, kind: input, shape index: {}]   ;;  %s4161_s11 = inlined_call_operand.hbm [shape: bf16[512,128], index: 11, kind: input, shape index: {}]   ;;  %s4162_s12 = inlined_call_operand.hbm [shape: f32[1,128], index: 12, kind: input, shape index: {}]   ;;  %s4163_s13 = inlined_call_operand.hbm [shape: f32[2,8,128], index: 13, kind: output, shape index: {}]  }
   0x1   :  { %19 = vsyncpa [#allocation8], 0 }
   0x2   :  { %20 = vsyncpa [#allocation11], 0 }
   0x3   :  { %21 = vsyncpa [#allocation14], 0 }
   0x4   :  { %22 = vsyncpa [#allocation17], 0 }
   0x5   :  { %23 = vsyncpa [#allocation20], 0 }
   0x6   :  { %24 = vsyncpa [#allocation23], 0 }
   0x7   :  { %25 = vsyncpa [#allocation6], 0  ;;  %s3464_s25 = smov [#allocation7]   ;;  %s3465_s27 = smov [#allocation10]  }
   0x8   :  { %s44_s26 = sshll.u32 %s3464_s25, 4  ;;  %s63_s28 = sshll.u32 %s3465_s27, 4  ;;  %s45_s26 = int_to_ptr.vmem [resolvable:$true] %s44_s26  ;;  %s3562_s28 = int_to_ptr.vmem [resolvable:$true] %s63_s28 }
   0x9   :  { %s3140_s14 = scalar_lea.hbm %s4151_s1, 16 }
   0xa   :  { %p3141_p0 = scmp.ne.s32.totalorder %s4151_s1, %s3140_s14  ;;  %p3144_p1 = scmp.lt.u32.totalorder %s3140_s14, %s4151_s1 }
   0xc   :  { %p3146_p2 = pnand %p3144_p1, %p3141_p0 }
   0xe   :  { %3149 = shalt.err (!%p3146_p2)
}
   0xf   :  { %s3150_s19 = scalar_lea.vmem %s45_s26, 16  ;;  %s3154_s20 = scalar_lea.vmem %s45_s26, 32 }
  0x10   :  { %p3151_p3 = scmp.ne.s32.totalorder %s45_s26, %s3150_s19  ;;  %p3155_p4 = scmp.lt.s32.totalorder %s45_s26, %s45_s26 }
  0x11   :  { %p3156_p5 = scmp.lt.s32.totalorder %s3154_s20, %s3150_s19 }
  0x13   :  { %p3157_p6 = por %p3156_p5, %p3155_p4 }
  0x15   :  { %p3158_p7 = pnand %p3157_p6, %p3151_p3 }
  0x17   :  { %3161 = shalt.err (!%p3158_p7)
}
  0x18   :  { %47 = dma.hbm_to_vmem [thread:$0]  %s4151_s1, 16, %s45_s26, [#allocation8]  }
  0x19   :  { %s3162_s25 = scalar_lea.hbm %s4153_s3, 3072 }
  0x1a   :  { %p3163_p8 = scmp.ne.s32.totalorder %s4153_s3, %s3162_s25  ;;  %p3166_p9 = scmp.lt.u32.totalorder %s3162_s25, %s4153_s3 }
  0x1c   :  { %p3168_p10 = pnand %p3166_p9, %p3163_p8 }
  0x1e   :  { %3171 = shalt.err (!%p3168_p10)
}
  0x1f   :  { %s3172_s15 = scalar_lea.vmem %s3562_s28, 3072  ;;  %p3177_p12 = scmp.lt.s32.totalorder %s3562_s28, %s3562_s28 }
  0x20   :  { %p3173_p11 = scmp.ne.s32.totalorder %s3562_s28, %s3172_s15  ;;  %p3178_p13 = scmp.lt.s32.totalorder %s3172_s15, %s3172_s15 }
  0x22   :  { %p3179_p0 = por %p3178_p13, %p3177_p12 }
  0x24   :  { %p3180_p1 = pnand %p3179_p0, %p3173_p11 }
  0x26   :  { %3183 = shalt.err (!%p3180_p1)
}
  0x27   :  { %s3466_s1 = smov 192   ;;  %s3467_s26 = smov 12  }
  0x28   :  { %69 = dma.hbm_to_vmem [thread:$0]  %s4153_s3, 3072, %s3562_s28, [#allocation11], %s3466_s1, %s3466_s1, %s3467_s26  }
  0x29   :  { %s3468_s18 = smov [#allocation13]   ;;  %s3184_s22 = scalar_lea.hbm %s4155_s5, 1024 }
  0x2a   :  { %s85_s19 = sshll.u32 %s3468_s18, 4  ;;  %p3185_p2 = scmp.ne.s32.totalorder %s4155_s5, %s3184_s22  ;;  %s86_s19 = int_to_ptr.vmem [resolvable:$true] %s85_s19 }
  0x2b   :  { %p3188_p3 = scmp.lt.u32.totalorder %s3184_s22, %s4155_s5 }
  0x2d   :  { %p3190_p4 = pnand %p3188_p3, %p3185_p2 }
  0x2f   :  { %3193 = shalt.err (!%p3190_p4)
}
  0x30   :  { %s3194_s29 = scalar_lea.vmem %s86_s19, 1024  ;;  %p3199_p6 = scmp.lt.s32.totalorder %s86_s19, %s86_s19 }
  0x31   :  { %p3195_p5 = scmp.ne.s32.totalorder %s86_s19, %s3194_s29  ;;  %p3200_p7 = scmp.lt.s32.totalorder %s3194_s29, %s3194_s29 }
  0x33   :  { %p3201_p8 = por %p3200_p7, %p3199_p6 }
  0x35   :  { %p3202_p9 = pnand %p3201_p8, %p3195_p5 }
  0x37   :  { %3205 = shalt.err (!%p3202_p9)
}
  0x38   :  { %s3469_s3 = smov 64   ;;  %s3470_s28 = smov 4  }
  0x39   :  { %91 = dma.hbm_to_vmem [thread:$0]  %s4155_s5, 1024, %s86_s19, [#allocation14], %s3469_s3, %s3469_s3, %s3470_s28  }
  0x3a   :  { %s3471_s15 = smov [#allocation16]   ;;  %s3472_s26 = smov [#allocation19]  }
  0x3b   :  { %s108_s1 = sshll.u32 %s3471_s15, 4  ;;  %s127_s16 = sshll.u32 %s3472_s26, 4  ;;  %s109_s1 = int_to_ptr.vmem [resolvable:$true] %s108_s1  ;;  %s128_s16 = int_to_ptr.vmem [resolvable:$true] %s127_s16 }
  0x3c   :  { %s3206_s20 = scalar_lea.hbm %s4157_s7, 16 }
  0x3d   :  { %p3207_p10 = scmp.ne.s32.totalorder %s4157_s7, %s3206_s20  ;;  %p3210_p11 = scmp.lt.u32.totalorder %s3206_s20, %s4157_s7 }
  0x3f   :  { %p3212_p12 = pnand %p3210_p11, %p3207_p10 }
  0x41   :  { %3215 = shalt.err (!%p3212_p12)
}
  0x42   :  { %s3216_s5 = scalar_lea.vmem %s109_s1, 16  ;;  %s3220_s19 = scalar_lea.vmem %s109_s1, 32 }
  0x43   :  { %p3217_p13 = scmp.ne.s32.totalorder %s109_s1, %s3216_s5  ;;  %p3221_p0 = scmp.lt.s32.totalorder %s109_s1, %s109_s1 }
  0x44   :  { %p3222_p1 = scmp.lt.s32.totalorder %s3220_s19, %s3216_s5 }
  0x46   :  { %p3223_p2 = por %p3222_p1, %p3221_p0 }
  0x48   :  { %p3224_p3 = pnand %p3223_p2, %p3217_p13 }
  0x4a   :  { %3227 = shalt.err (!%p3224_p3)
}
  0x4b   :  { %111 = dma.hbm_to_vmem [thread:$0]  %s4157_s7, 16, %s109_s1, [#allocation17]  }
  0x4c   :  { %s3228_s14 = scalar_lea.hbm %s4159_s9, 4096 }
  0x4d   :  { %p3229_p4 = scmp.ne.s32.totalorder %s4159_s9, %s3228_s14  ;;  %p3232_p5 = scmp.lt.u32.totalorder %s3228_s14, %s4159_s9 }
  0x4f   :  { %p3234_p6 = pnand %p3232_p5, %p3229_p4 }
  0x51   :  { %3237 = shalt.err (!%p3234_p6)
}
  0x52   :  { %s3238_s20 = scalar_lea.vmem %s128_s16, 4096  ;;  %p3243_p8 = scmp.lt.s32.totalorder %s128_s16, %s128_s16 }
  0x53   :  { %p3239_p7 = scmp.ne.s32.totalorder %s128_s16, %s3238_s20  ;;  %p3244_p9 = scmp.lt.s32.totalorder %s3238_s20, %s3238_s20 }
  0x55   :  { %p3245_p10 = por %p3244_p9, %p3243_p8 }
  0x57   :  { %p3246_p11 = pnand %p3245_p10, %p3239_p7 }
  0x59   :  { %3249 = shalt.err (!%p3246_p11)
}
  0x5a   :  { %s3473_s7 = smov 256   ;;  %s3474_s1 = smov 16  }
  0x5b   :  { %133 = dma.hbm_to_vmem [thread:$0]  %s4159_s9, 4096, %s128_s16, [#allocation20], %s3473_s7, %s3473_s7, %s3474_s1  }
  0x5c   :  { %s3475_s23 = smov [#allocation22]   ;;  %s3476_s5 = smov [#allocation4]  }
  0x5d   :  { %s149_s24 = sshll.u32 %s3475_s23, 4  ;;  %s31_s19 = sshll.u32 %s3476_s5, 4  ;;  %s150_s24 = int_to_ptr.vmem [resolvable:$true] %s149_s24  ;;  %s32_s19 = int_to_ptr.vmem [resolvable:$true] %s31_s19 }
  0x5e   :  { %s3250_s29 = scalar_lea.hbm %s4161_s11, 4096 }
  0x5f   :  { %p3251_p12 = scmp.ne.s32.totalorder %s4161_s11, %s3250_s29  ;;  %p3254_p13 = scmp.lt.u32.totalorder %s3250_s29, %s4161_s11 }
  0x61   :  { %p3256_p0 = pnand %p3254_p13, %p3251_p12 }
  0x63   :  { %3259 = shalt.err (!%p3256_p0)
}
  0x64   :  { %s3260_s9 = scalar_lea.vmem %s150_s24, 4096  ;;  %p3265_p2 = scmp.lt.s32.totalorder %s150_s24, %s150_s24 }
  0x65   :  { %p3261_p1 = scmp.ne.s32.totalorder %s150_s24, %s3260_s9  ;;  %p3266_p3 = scmp.lt.s32.totalorder %s3260_s9, %s3260_s9 }
  0x67   :  { %p3267_p4 = por %p3266_p3, %p3265_p2 }
  0x69   :  { %p3268_p5 = pnand %p3267_p4, %p3261_p1 }
  0x6b   :  { %3271 = shalt.err (!%p3268_p5)
}
  0x6c   :  { %155 = dma.hbm_to_vmem [thread:$0]  %s4161_s11, 4096, %s150_s24, [#allocation23], %s3469_s3, %s3469_s3, %s3470_s28  }
  0x6d   :  { %s3272_s7 = scalar_lea.hbm %s4150_s0, 256 }
  0x6e   :  { %p3273_p6 = scmp.ne.s32.totalorder %s4150_s0, %s3272_s7  ;;  %p3276_p7 = scmp.lt.u32.totalorder %s3272_s7, %s4150_s0 }
  0x70   :  { %p3278_p8 = pnand %p3276_p7, %p3273_p6 }
  0x72   :  { %3281 = shalt.err (!%p3278_p8)
}
  0x73   :  { %s3282_s5 = scalar_lea.vmem %s32_s19, 256  ;;  %p3287_p10 = scmp.lt.s32.totalorder %s32_s19, %s32_s19 }
  0x74   :  { %p3283_p9 = scmp.ne.s32.totalorder %s32_s19, %s3282_s5  ;;  %p3288_p11 = scmp.lt.s32.totalorder %s3282_s5, %s3282_s5 }
  0x76   :  { %p3289_p12 = por %p3288_p11, %p3287_p10 }
  0x78   :  { %p3290_p13 = pnand %p3289_p12, %p3283_p9 }
  0x7a   :  { %3293 = shalt.err (!%p3290_p13)
}
  0x7b   :  { %s3477_s11 = smov 128   ;;  %s3478_s28 = smov 8  }
  0x7c   :  { %37 = dma.hbm_to_vmem [thread:$0]  %s4150_s0, 256, %s32_s19, [#allocation5], %s3477_s11, %s3477_s11, %s3478_s28  }
  0x7d   :  { %s3479_s27 = smov [#allocation9]   ;;  %s3480_s30 = smov [#allocation12]  }
  0x7e   :  { %s54_s29 = sshll.u32 %s3479_s27, 4  ;;  %s76_s14 = sshll.u32 %s3480_s30, 4  ;;  %s55_s29 = int_to_ptr.vmem [resolvable:$true] %s54_s29  ;;  %s77_s14 = int_to_ptr.vmem [resolvable:$true] %s76_s14 }
  0x7f   :  { %s3294_s9 = scalar_lea.hbm %s4152_s2, 16 }
  0x80   :  { %p3295_p0 = scmp.ne.s32.totalorder %s4152_s2, %s3294_s9  ;;  %p3298_p1 = scmp.lt.u32.totalorder %s3294_s9, %s4152_s2 }
  0x82   :  { %p3300_p2 = pnand %p3298_p1, %p3295_p0 }
  0x84   :  { %3303 = shalt.err (!%p3300_p2)
}
  0x85   :  { %s3304_s0 = scalar_lea.vmem %s55_s29, 16  ;;  %s3308_s19 = scalar_lea.vmem %s55_s29, 32 }
  0x86   :  { %p3305_p3 = scmp.ne.s32.totalorder %s55_s29, %s3304_s0  ;;  %p3309_p4 = scmp.lt.s32.totalorder %s55_s29, %s55_s29 }
  0x87   :  { %p3310_p5 = scmp.lt.s32.totalorder %s3308_s19, %s3304_s0 }
  0x89   :  { %p3311_p6 = por %p3310_p5, %p3309_p4 }
  0x8b   :  { %p3312_p7 = pnand %p3311_p6, %p3305_p3 }
  0x8d   :  { %3315 = shalt.err (!%p3312_p7)
}
  0x8e   :  { %57 = dma.hbm_to_vmem [thread:$0]  %s4152_s2, 16, %s55_s29, [#allocation8]  }
  0x8f   :  { %s3316_s23 = scalar_lea.hbm %s4154_s4, 48 }
  0x90   :  { %p3317_p8 = scmp.ne.s32.totalorder %s4154_s4, %s3316_s23  ;;  %p3320_p9 = scmp.lt.u32.totalorder %s3316_s23, %s4154_s4 }
  0x92   :  { %p3322_p10 = pnand %p3320_p9, %p3317_p8 }
  0x94   :  { %3325 = shalt.err (!%p3322_p10)
}
  0x95   :  { %s3326_s30 = scalar_lea.vmem %s77_s14, 48  ;;  %s3330_s15 = scalar_lea.vmem %s77_s14, 64 }
  0x96   :  { %p3327_p11 = scmp.ne.s32.totalorder %s77_s14, %s3326_s30  ;;  %p3331_p12 = scmp.lt.s32.totalorder %s77_s14, %s77_s14 }
  0x97   :  { %p3332_p13 = scmp.lt.s32.totalorder %s3330_s15, %s3326_s30 }
  0x99   :  { %p3333_p0 = por %p3332_p13, %p3331_p12 }
  0x9b   :  { %p3334_p1 = pnand %p3333_p0, %p3327_p11 }
  0x9d   :  { %3337 = shalt.err (!%p3334_p1)
}
  0x9e   :  { %79 = dma.hbm_to_vmem [thread:$0]  %s4154_s4, 48, %s77_s14, [#allocation11]  }
  0x9f   :  { %s3481_s26 = smov [#allocation15]   ;;  %s3482_s16 = smov [#allocation18]  }
  0xa0   :  { %s98_s9 = sshll.u32 %s3481_s26, 4  ;;  %s118_s17 = sshll.u32 %s3482_s16, 4  ;;  %s99_s9 = int_to_ptr.vmem [resolvable:$true] %s98_s9  ;;  %s119_s17 = int_to_ptr.vmem [resolvable:$true] %s118_s17 }
  0xa1   :  { %s3338_s0 = scalar_lea.hbm %s4156_s6, 16 }
  0xa2   :  { %p3339_p2 = scmp.ne.s32.totalorder %s4156_s6, %s3338_s0  ;;  %p3342_p3 = scmp.lt.u32.totalorder %s3338_s0, %s4156_s6 }
  0xa4   :  { %p3344_p4 = pnand %p3342_p3, %p3339_p2 }
  0xa6   :  { %3347 = shalt.err (!%p3344_p4)
}
  0xa7   :  { %s3348_s4 = scalar_lea.vmem %s99_s9, 16  ;;  %s3352_s14 = scalar_lea.vmem %s99_s9, 32 }
  0xa8   :  { %p3349_p5 = scmp.ne.s32.totalorder %s99_s9, %s3348_s4  ;;  %p3353_p6 = scmp.lt.s32.totalorder %s99_s9, %s99_s9 }
  0xa9   :  { %p3354_p7 = scmp.lt.s32.totalorder %s3352_s14, %s3348_s4 }
  0xab   :  { %p3355_p8 = por %p3354_p7, %p3353_p6 }
  0xad   :  { %p3356_p9 = pnand %p3355_p8, %p3349_p5 }
  0xaf   :  { %3359 = shalt.err (!%p3356_p9)
}
  0xb0   :  { %101 = dma.hbm_to_vmem [thread:$0]  %s4156_s6, 16, %s99_s9, [#allocation14]  }
  0xb1   :  { %s3360_s25 = scalar_lea.hbm %s4158_s8, 16 }
  0xb2   :  { %p3361_p10 = scmp.ne.s32.totalorder %s4158_s8, %s3360_s25  ;;  %p3364_p11 = scmp.lt.u32.totalorder %s3360_s25, %s4158_s8 }
  0xb4   :  { %p3366_p12 = pnand %p3364_p11, %p3361_p10 }
  0xb6   :  { %3369 = shalt.err (!%p3366_p12)
}
  0xb7   :  { %s3370_s29 = scalar_lea.vmem %s119_s17, 16  ;;  %s3374_s26 = scalar_lea.vmem %s119_s17, 32 }
  0xb8   :  { %p3371_p13 = scmp.ne.s32.totalorder %s119_s17, %s3370_s29  ;;  %p3375_p0 = scmp.lt.s32.totalorder %s119_s17, %s119_s17 }
  0xb9   :  { %p3376_p1 = scmp.lt.s32.totalorder %s3374_s26, %s3370_s29 }
  0xbb   :  { %p3377_p2 = por %p3376_p1, %p3375_p0 }
  0xbd   :  { %p3378_p3 = pnand %p3377_p2, %p3371_p13 }
  0xbf   :  { %3381 = shalt.err (!%p3378_p3)
}
  0xc0   :  { %121 = dma.hbm_to_vmem [thread:$0]  %s4158_s8, 16, %s119_s17, [#allocation17]  }
  0xc1   :  { %s3483_s16 = smov [#allocation21]   ;;  %s3484_s20 = smov [#allocation24]  }
  0xc2   :  { %s140_s18 = sshll.u32 %s3483_s16, 4  ;;  %s162_s0 = sshll.u32 %s3484_s20, 4  ;;  %s141_s18 = int_to_ptr.vmem [resolvable:$true] %s140_s18  ;;  %s163_s0 = int_to_ptr.vmem [resolvable:$true] %s162_s0 }
  0xc3   :  { %s3382_s1 = scalar_lea.hbm %s4160_s10, 64 }
  0xc4   :  { %p3383_p4 = scmp.ne.s32.totalorder %s4160_s10, %s3382_s1  ;;  %p3386_p5 = scmp.lt.u32.totalorder %s3382_s1, %s4160_s10 }
  0xc6   :  { %p3388_p6 = pnand %p3386_p5, %p3383_p4 }
  0xc8   :  { %3391 = shalt.err (!%p3388_p6)
}
  0xc9   :  { %s3392_s8 = scalar_lea.vmem %s141_s18, 64  ;;  %p3397_p8 = scmp.lt.s32.totalorder %s141_s18, %s141_s18 }
  0xca   :  { %p3393_p7 = scmp.ne.s32.totalorder %s141_s18, %s3392_s8  ;;  %p3398_p9 = scmp.lt.s32.totalorder %s3392_s8, %s3392_s8 }
  0xcc   :  { %p3399_p10 = por %p3398_p9, %p3397_p8 }
  0xce   :  { %p3400_p11 = pnand %p3399_p10, %p3393_p7 }
  0xd0   :  { %3403 = shalt.err (!%p3400_p11)
}
  0xd1   :  { %143 = dma.hbm_to_vmem [thread:$0]  %s4160_s10, 64, %s141_s18, [#allocation20]  }
  0xd2   :  { %s3404_s25 = scalar_lea.hbm %s4162_s12, 16 }
  0xd3   :  { %p3405_p12 = scmp.ne.s32.totalorder %s4162_s12, %s3404_s25  ;;  %p3408_p13 = scmp.lt.u32.totalorder %s3404_s25, %s4162_s12 }
  0xd5   :  { %p3410_p0 = pnand %p3408_p13, %p3405_p12 }
  0xd7   :  { %3413 = shalt.err (!%p3410_p0)
}
  0xd8   :  { %s3414_s29 = scalar_lea.vmem %s163_s0, 16  ;;  %s3418_s26 = scalar_lea.vmem %s163_s0, 32 }
  0xd9   :  { %p3415_p1 = scmp.ne.s32.totalorder %s163_s0, %s3414_s29  ;;  %p3419_p2 = scmp.lt.s32.totalorder %s163_s0, %s163_s0 }
  0xda   :  { %p3420_p3 = scmp.lt.s32.totalorder %s3418_s26, %s3414_s29 }
  0xdc   :  { %p3421_p4 = por %p3420_p3, %p3419_p2 }
  0xde   :  { %p3422_p5 = pnand %p3421_p4, %p3415_p1 }
  0xe0   :  { %3425 = shalt.err (!%p3422_p5)
}
  0xe1   :  { %165 = dma.hbm_to_vmem [thread:$0]  %s4162_s12, 16, %s163_s0, [#allocation23]  }
  0xe2   :  { %3448 = dma.done.wait [#allocation5], 256  }
  0xe3   :  { %3449 = vsyncadd [#allocation5], 4294967040 }
  0xe4   :  { %3450 = dma.done.wait [#allocation8], 32  }
  0xe5   :  { %3451 = vsyncadd [#allocation8], 4294967264 }
  0xe6   :  { %3452 = dma.done.wait [#allocation11], 3120  }
  0xe7   :  { %3453 = vsyncadd [#allocation11], 4294964176 }
  0xe8   :  { %3454 = dma.done.wait [#allocation14], 1040  }
  0xe9   :  { %3455 = vsyncadd [#allocation14], 4294966256 }
  0xea   :  { %3456 = dma.done.wait [#allocation17], 32  }
  0xeb   :  { %3457 = vsyncadd [#allocation17], 4294967264 }
  0xec   :  { %3458 = dma.done.wait [#allocation20], 4160  }
  0xed   :  { %3459 = vsyncadd [#allocation20], 4294963136 }
  0xee   :  { %3460 = dma.done.wait [#allocation23], 4112  }
  0xef   :  { %3461 = vsyncadd [#allocation23], 4294963184  ;;  %v206_v0 = vld [vmem:[#allocation4] sm:$0xff]  ;;  %v207_v1 = vld [vmem:[#allocation4 + $0x8] sm:$0xff]  ;;  %v3485_v4 = vmov 0.0   ;;  %v3486_v30 = vmov 0   ;;  %v284_v53 = vlaneseq }
  0xf0   :  { %210 = vadd.xlane.f32.xlu0 %v206_v0  ;;  %v2946_v2 = vld [vmem:[#allocation10 + $0x4] ss:$12 sps:$4 sm:$0xff]   ;;  %v2948_v3 = vld [vmem:[#allocation10] ss:$12 sps:$4 sm:$0xff]   ;;  %2782 = vmatprep.subr.bf16.mxu1 %v3485_v4  ;;  %v2949_v5 = vld [vmem:[#allocation10 + $0x8] ss:$12 sps:$4 sm:$0xff]  }
  0xf1   :  { %v2950_v6 = vld [vmem:[#allocation10 + $0x1c] ss:$12 sps:$4 sm:$0xff]   ;;  %427 = vmatprep.subr.bf16.mxu0 %v2946_v2  ;;  %2783 = vmatpush3.bf16.msra.mxu1 %v2949_v5  ;;  %v2952_v15 = vld [vmem:[#allocation10 + $0x18] ss:$12 sps:$4 sm:$0xff]   ;;  %v2953_v16 = vld [vmem:[#allocation10 + $0x20] ss:$12 sps:$4 sm:$0xff]  }
  0xf2   :  { %428 = vmatpush1.bf16.msra.mxu0 %v2948_v3  ;;  %2784 = vmatprep.subr.bf16.mxu1 %v3485_v4  ;;  %v2954_v17 = vld [vmem:[#allocation10 + $0x34] ss:$12 sps:$4 sm:$0xff]   ;;  %v2956_v18 = vld [vmem:[#allocation10 + $0x30] ss:$12 sps:$4 sm:$0xff]   ;;  %v2957_v19 = vld [vmem:[#allocation10 + $0x38] ss:$12 sps:$4 sm:$0xff]  }
  0xf3   :  { %429 = vmatprep.subr.bf16.mxu0 %v2950_v6  ;;  %v2958_v20 = vld [vmem:[#allocation10 + $0x4c] ss:$12 sps:$4 sm:$0xff]   ;;  %v2960_v21 = vld [vmem:[#allocation10 + $0x48] ss:$12 sps:$4 sm:$0xff]   ;;  %v2961_v22 = vld [vmem:[#allocation10 + $0x50] ss:$12 sps:$4 sm:$0xff]   ;;  %459 = vmatprep.mubr.bf16.mxu0 %v3486_v30 }
  0xf4   :  { %212 = vadd.xlane.f32.xlu0 %v207_v1  ;;  %v2962_v23 = vld [vmem:[#allocation10 + $0x64] ss:$12 sps:$4 sm:$0xff]   ;;  %v2964_v24 = vld [vmem:[#allocation10 + $0x60] ss:$12 sps:$4 sm:$0xff]   ;;  %v2965_v25 = vld [vmem:[#allocation10 + $0x68] ss:$12 sps:$4 sm:$0xff]  }
  0xf5   :  { %2785 = vmatpush3.bf16.msra.mxu1 %v2953_v16  ;;  %v2966_v26 = vld [vmem:[#allocation10 + $0x7c] ss:$12 sps:$4 sm:$0xff]   ;;  %v2968_v27 = vld [vmem:[#allocation10 + $0x78] ss:$12 sps:$4 sm:$0xff]   ;;  %v2969_v28 = vld [vmem:[#allocation10 + $0x80] ss:$12 sps:$4 sm:$0xff]  }
  0xf6   :  { %430 = vmatpush1.bf16.msra.mxu0 %v2952_v15  ;;  %2786 = vmatprep.subr.bf16.mxu1 %v3485_v4  ;;  %v2970_v29 = vld [vmem:[#allocation10 + $0x94] ss:$12 sps:$4 sm:$0xff]   ;;  %vm3487_vm0 = vmmov 0   ;;  %v2972_v31 = vld [vmem:[#allocation10 + $0x90] ss:$12 sps:$4 sm:$0xff]   ;;  %v3761_v54 = vshrl.u32 %v284_v53, 7 }
  0xf7   :  { %431 = vmatprep.subr.bf16.mxu0 %v2954_v17  ;;  %2798 = vmatprep.mubr.msk.bf16.mxu1 %vm3487_vm0, %v3485_v4  ;;  %v2973_v32 = vld [vmem:[#allocation10 + $0x98] ss:$12 sps:$4 sm:$0xff]   ;;  %v2976_v34 = vld [vmem:[#allocation10 + $0xa8] ss:$12 sps:$4 sm:$0xff]   ;;  %v2977_v35 = vld [vmem:[#allocation10 + $0xb0] ss:$12 sps:$4 sm:$0xff]  }
  0xf8   :  { %v2974_v33 = vld [vmem:[#allocation10 + $0xac] ss:$12 sps:$4 sm:$0xff]   ;;  %v2540_v44 = vld [vmem:[#allocation7] ss:$0 sm:$0xff]  ;;  %v2541_v48 = vld [vmem:[#allocation9] ss:$0 sm:$0xff] }
  0xf9   :  { %2787 = vmatpush3.bf16.msra.mxu1 %v2957_v19  ;;  %v290_v55 = vsub.s32 1, %v3761_v54  ;;  %v282_v56 = vld [vmem:[#allocation12] sm:$0x7]  ;;  %v286_v57 = vsub.s32 0, %v3761_v54  ;;  %v294_v58 = vsub.s32 2, %v3761_v54  ;;  %vm542_vm1 = vcmask 261120  }
  0xfa   :  { %432 = vmatpush1.bf16.msra.mxu0 %v2956_v18  ;;  %2788 = vmatprep.subr.bf16.mxu1 %v3485_v4  ;;  %vm667_vm2 = vcmask 1043456   ;;  %vm639_vm4 = vcmask 64512   ;;  %s3488_s12 = smov 96   ;;  %s3489_s9 = smov 32   ;;  %vm1004_vm5 = vcmask 523520   ;;  %vm1251_vm6 = vcmask 785920  }
  0xfb   :  { %433 = vmatprep.subr.bf16.mxu0 %v2958_v20  ;;  %v291_v59 = vrot.slane %v282_v56, %v290_v55  ;;  %v287_v60 = vrot.slane %v282_v56, %v286_v57  ;;  %v295_v63 = vrot.slane %v282_v56, %v294_v58  ;;  %vm1498_vm7 = vcmask 1048320  }
  0xfd   :  { %2789 = vmatpush3.bf16.msra.mxu1 %v2961_v22 }
  0xfe   :  { %434 = vmatpush1.bf16.msra.mxu0 %v2960_v21  ;;  %2790 = vmatprep.subr.bf16.mxu1 %v3485_v4 }
  0xff   :  { %435 = vmatprep.subr.bf16.mxu0 %v2962_v23  ;;  %v522_v23 = vand.u32 127, %v284_v53 }
 0x101   :  { %2791 = vmatpush3.bf16.msra.mxu1 %v2965_v25  ;;  %vm3802_vm3 = vcmp.ge.s32.totalorder %v3761_v54, %v522_v23 }
 0x102   :  { %436 = vmatpush1.bf16.msra.mxu0 %v2964_v24  ;;  %2792 = vmatprep.subr.bf16.mxu1 %v3485_v4 }
 0x103   :  { %437 = vmatprep.subr.bf16.mxu0 %v2966_v26 }
 0x105   :  { %2793 = vmatpush3.bf16.msra.mxu1 %v2969_v28 }
 0x106   :  { %438 = vmatpush1.bf16.msra.mxu0 %v2968_v27  ;;  %2794 = vmatprep.subr.bf16.mxu1 %v3485_v4 }
 0x107   :  { %439 = vmatprep.subr.bf16.mxu0 %v2970_v29 }
 0x109   :  { %2795 = vmatpush3.bf16.msra.mxu1 %v2973_v32 }
 0x10a   :  { %440 = vmatpush1.bf16.msra.mxu0 %v2972_v31  ;;  %2796 = vmatprep.subr.bf16.mxu1 %v3485_v4 }
 0x10b   :  { %441 = vmatprep.subr.bf16.mxu0 %v2974_v33 }
 0x10d   :  { %2797 = vmatpush3.bf16.msra.mxu1 %v2977_v35 }
 0x10e   :  { %442 = vmatpush1.bf16.msra.mxu0 %v2976_v34  ;;  %2802 = vmatprep.subr.bf16.mxu1 %v3485_v4 }
 0x10f   :  { %2826 = vmatprep.subr.bf16.mxu0 %v3485_v4 }
 0x17d   :  { %v211_v7 = vpop.xlane.xlu0 %210 }
 0x17e   :  { %v215_v8 = vmul.f32 0.0078125, %v211_v7 }
 0x180   :  { %v3736_v9 = vsub.f32 %v206_v0, %v215_v8 }
 0x181   :  { %v213_v10 = vpop.xlane.xlu0 %212 }
 0x182   :  { %v216_v11 = vmul.f32 0.0078125, %v213_v10  ;;  %v219_v12 = vmul.f32 %v3736_v9, %v3736_v9 }
 0x184   :  { %v3740_v13 = vsub.f32 %v207_v1, %v216_v11  ;;  %221 = vadd.xlane.f32.xlu1 %v219_v12 }
 0x186   :  { %v220_v14 = vmul.f32 %v3740_v13, %v3740_v13 }
 0x188   :  { %223 = vadd.xlane.f32.xlu1 %v220_v14 }
 0x211   :  { %v222_v36 = vpop.xlane.xlu1 %221 }
 0x212   :  { %v225_v37 = vmul.f32 0.0078125, %v222_v36 }
 0x214   :  { %v227_v38 = vadd.f32 1e-05, %v225_v37 }
 0x215   :  { %v224_v39 = vpop.xlane.xlu1 %223 }
 0x216   :  { %3066 = vrsqrt.f32 %v227_v38  ;;  %v226_v40 = vmul.f32 0.0078125, %v224_v39 }
 0x218   :  { %v228_v41 = vadd.f32 1e-05, %v226_v40 }
 0x21a   :  { %3068 = vrsqrt.f32 %v228_v41 }
 0x220   :  { %v3067_v42 = vpop.eup %3066 }
 0x221   :  { %v231_v43 = vmul.f32 %v3067_v42, %v3736_v9 }
 0x223   :  { %v239_v47 = vmul.f32 %v2540_v44, %v231_v43 }
 0x224   :  { %v3069_v45 = vpop.eup %3068 }
 0x225   :  { %v232_v46 = vmul.f32 %v3069_v45, %v3740_v13  ;;  %v247_v50 = vadd.f32 %v2541_v48, %v239_v47 }
 0x227   :  { %v240_v49 = vmul.f32 %v2540_v44, %v232_v46 }
 0x229   :  { %v248_v51 = vadd.f32 %v2541_v48, %v240_v49 }
 0x22b   :  { %v249_v52 = vpack.c.bf16 %v248_v51, %v247_v50 }
 0x22d   :  { %460 = vmatmul.mubr.bf16.vlgmr.msra.gmra.mrb[0].mxu0 %v249_v52  ;;  %2799 = vmatmul.mubr.bf16.vlgmr.msra.gmra.mrb[0].mxu1 %v249_v52 }
 0x22e   :  { %2804 = vmatprep.mubr.msk.bf16.mxu1 %vm3487_vm0, %v3485_v4  ;;  %2828 = vmatprep.mubr.msk.bf16.mxu0 %vm3487_vm0, %v3485_v4 }
 0x300   :  { %v461_v61 = vpop.f32.mrb[0].mxu0  ;;  %v504_v62 = vpop.f32.mrb[0].mxu1 }
 0x301   :  { %v463_v0 = vpop.f32.mrb[1].mxu0  ;;  %v2800_v1 = vpop.f32.mrb[1].mxu1  ;;  %v462_v9 = vadd.f32 %v461_v61, %v287_v60  ;;  %v505_v17 = vadd.f32 %v504_v62, %v295_v63 }
 0x302   :  { %v464_v2 = vadd.f32 %v463_v0, %v291_v59  ;;  %v465_v3 = vpop.f32.mrb[2].mxu0  ;;  %v507_v5 = vpop.f32.mrb[2].mxu1 }
 0x303   :  { %v3772_v6 = vadd.f32 %v507_v5, %v295_v63  ;;  %v467_v7 = vpop.f32.mrb[3].mxu0  ;;  %v2801_v8 = vpop.f32.mrb[3].mxu1  ;;  %v511_v13 = vmul.f32 0.17677669, %v462_v9  ;;  %v466_v16 = vadd.f32 %v465_v3, %v287_v60  ;;  %v3790_v20 = vpack.c.bf16 %v505_v17, %v505_v17 }
 0x304   :  { %v3774_v10 = vpack.c.bf16 %v464_v2, %v464_v2  ;;  %v468_v11 = vadd.f32 %v467_v7, %v291_v59 }
 0x305   :  { %v3781_v15 = vpack.c.bf16 %v511_v13, %v511_v13  ;;  %v512_v19 = vmul.f32 0.17677669, %v466_v16  ;;  %v669_v22 = vsel %vm667_vm2, %v3790_v20, 0  ;;  %v3826_v56 = vpack.c.bf16 %v3772_v6, %v3772_v6 }
 0x306   :  { %v547_v12 = vsel %vm542_vm1, %v3774_v10, 0  ;;  %v3779_v14 = vpack.c.bf16 %v468_v11, %v468_v11 }
 0x307   :  { %2803 = vmatpush3.bf16.xpose.msra.mxu1 %v547_v12  ;;  %v3792_v21 = vpack.c.bf16 %v512_v19, %v512_v19  ;;  %v715_v62 = vsel %vm667_vm2, %v3826_v56, 0 }
 0x308   :  { %2808 = vmatprep.subr.bf16.mxu1 %v3485_v4  ;;  %v593_v18 = vsel %vm542_vm1, %v3779_v14, 0 }
 0x30e   :  { %2805 = vmatmul.mubr.msk.bf16.vlgmr.msra.gmra.mrb[4].mxu1 %vm542_vm1, %v3781_v15 }
 0x30f   :  { %2809 = vmatpush3.bf16.xpose.msra.mxu1 %v593_v18  ;;  %2810 = vmatprep.mubr.msk.bf16.mxu1 %vm3487_vm0, %v3485_v4 }
 0x310   :  { %2814 = vmatprep.subr.bf16.mxu1 %v3485_v4 }
 0x316   :  { %2811 = vmatmul.mubr.msk.bf16.vlgmr.msra.gmra.mrb[8].mxu1 %vm542_vm1, %v3792_v21 }
 0x317   :  { %2815 = vmatpush3.bf16.msra.mxu1 %v669_v22  ;;  %2816 = vmatprep.mubr.msk.bf16.mxu1 %vm3487_vm0, %v3485_v4 }
 0x318   :  { %2820 = vmatprep.subr.bf16.mxu1 %v3485_v4 }
 0x3e1   :  { %v583_v25 = vpop.f32.mrb[4].mxu1 }
 0x3e2   :  { %v637_v26 = vsel %vm3802_vm3, %v583_v25, -1e+30  ;;  %v2806_v27 = vpop.f32.mrb[5].mxu1 }
 0x3e3   :  { %v586_v28 = vpop.f32.mrb[6].mxu1  ;;  %v640_v29 = vsel %vm639_vm4, %v637_v26, -inf }
 0x3e4   :  { %641 = vmax.xlane.f32.xlu0 %v640_v29  ;;  %v2807_v31 = vpop.f32.mrb[7].mxu1 }
 0x3e9   :  { %v629_v32 = vpop.f32.mrb[8].mxu1 }
 0x3ea   :  { %v638_v33 = vsel %vm3802_vm3, %v629_v32, -1e+30  ;;  %v2812_v34 = vpop.f32.mrb[9].mxu1 }
 0x3eb   :  { %v632_v35 = vpop.f32.mrb[10].mxu1  ;;  %v643_v36 = vsel %vm639_vm4, %v638_v33, -inf }
 0x3ec   :  { %644 = vmax.xlane.f32.xlu1 %v643_v36  ;;  %v2813_v37 = vpop.f32.mrb[11].mxu1 }
 0x3fd   :  { %827 = vrot.lane.b32.xlu1 %v3779_v14, %s3488_s12 }
 0x471   :  { %v642_v38 = vpop.xlane.xlu0 %641 }
 0x472   :  { %v646_v39 = vsub.f32 %v637_v26, %v642_v38 }
 0x474   :  { %v648_v40 = vmul.f32 1.442695, %v646_v39 }
 0x476   :  { %3070 = vpow2.f32 %v648_v40 }
 0x479   :  { %v645_v41 = vpop.xlane.xlu1 %644 }
 0x47a   :  { %v647_v42 = vsub.f32 %v638_v33, %v645_v41 }
 0x47c   :  { %v650_v43 = vmul.f32 1.442695, %v647_v42 }
 0x47d   :  { %v828_v49 = vpop.permute.xlu1 %827 }
 0x47e   :  { %3072 = vpow2.f32 %v650_v43  ;;  %v833_v2 = vsel %vm542_vm1, %v828_v49, 0 }
 0x480   :  { %v3071_v44 = vpop.eup %3070 }
 0x481   :  { %v652_v45 = vsel %vm639_vm4, %v3071_v44, 0.0 }
 0x482   :  { %653 = vadd.xlane.f32.xlu0 %v652_v45 }
 0x488   :  { %v3073_v46 = vpop.eup %3072 }
 0x489   :  { %v655_v47 = vsel %vm639_vm4, %v3073_v46, 0.0 }
 0x48a   :  { %656 = vadd.xlane.f32.xlu1 %v655_v47 }
 0x498   :  { %775 = vrot.lane.b32.xlu0 %v3774_v10, %s3488_s12 }
 0x49b   :  { %772 = vrot.lane.b32.xlu1 %v3781_v15, %s3488_s12 }
 0x49f   :  { %824 = vrot.lane.b32.xlu1 %v3792_v21, %s3488_s12 }
 0x50f   :  { %v654_v48 = vpop.xlane.xlu0 %653 }
 0x510   :  { %3074 = vrcp.f32 %v654_v48 }
 0x513   :  { %v776_v50 = vpop.permute.xlu0 %775 }
 0x514   :  { %v781_v51 = vsel %vm542_vm1, %v776_v50, 0 }
 0x515   :  { %2827 = vmatpush3.bf16.xpose.msra.mxu0 %v781_v51 }
 0x516   :  { %2838 = vmatprep.subr.bf16.mxu0 %v3485_v4 }
 0x517   :  { %v657_v52 = vpop.xlane.xlu1 %656 }
 0x518   :  { %3076 = vrcp.f32 %v657_v52 }
 0x51a   :  { %v3075_v53 = vpop.eup %3074 }
 0x51b   :  { %v660_v59 = vmul.f32 %v3075_v53, %v3071_v44  ;;  %v773_v60 = vpop.permute.xlu1 %772 }
 0x51c   :  { %2829 = vmatmul.mubr.msk.bf16.vlgmr.msra.gmra.mrb[4].mxu0 %vm542_vm1, %v773_v60 }
 0x51d   :  { %v662_v61 = vpack.c.bf16 %v660_v59, %v660_v59  ;;  %2840 = vmatprep.mubr.msk.bf16.mxu0 %vm3487_vm0, %v3485_v4 }
 0x51f   :  { %2817 = vmatmul.mubr.msk.bf16.vlgmr.msra.gmra.mrb[12].mxu1 %vm639_vm4, %v662_v61  ;;  %v825_v3 = vpop.permute.xlu1 %824 }
 0x520   :  { %2821 = vmatpush3.bf16.msra.mxu1 %v715_v62  ;;  %2822 = vmatprep.mubr.msk.bf16.mxu1 %vm3487_vm0, %v3485_v4 }
 0x521   :  { %2832 = vmatprep.subr.bf16.mxu1 %v3485_v4 }
 0x522   :  { %v3077_v63 = vpop.eup %3076 }
 0x523   :  { %v661_v0 = vmul.f32 %v3077_v63, %v3073_v46 }
 0x525   :  { %v663_v1 = vpack.c.bf16 %v661_v0, %v661_v0 }
 0x527   :  { %2823 = vmatmul.mubr.msk.bf16.vlgmr.msra.gmra.mrb[16].mxu1 %vm639_vm4, %v663_v1 }
 0x528   :  { %2834 = vmatprep.mubr.msk.bf16.mxu1 %vm3487_vm0, %v3485_v4 }
 0x529   :  { %2833 = vmatpush3.bf16.xpose.msra.mxu1 %v833_v2 }
 0x52a   :  { %2844 = vmatprep.subr.bf16.mxu1 %v3485_v4 }
 0x530   :  { %2835 = vmatmul.mubr.msk.bf16.vlgmr.msra.gmra.mrb[20].mxu1 %vm542_vm1, %v825_v3 }
 0x531   :  { %2846 = vmatprep.mubr.msk.bf16.mxu1 %vm3487_vm0, %v3485_v4 }
 0x5ef   :  { %v817_v5 = vpop.f32.mrb[4].mxu0 }
 0x5f0   :  { %v875_v6 = vsel %vm3802_vm3, %v817_v5, -1e+30  ;;  %v2830_v7 = vpop.f32.mrb[5].mxu0 }
 0x5f1   :  { %v820_v8 = vpop.f32.mrb[6].mxu0  ;;  %v877_v9 = vsel %vm639_vm4, %v875_v6, -inf }
 0x5f2   :  { %878 = vmax.xlane.f32.xlu0 %v877_v9  ;;  %v705_v11 = vpop.f32.mrb[12].mxu1  ;;  %v2831_v12 = vpop.f32.mrb[7].mxu0 }
 0x5f3   :  { %v2818_v13 = vpop.f32.mrb[13].mxu1 }
 0x5f4   :  { %v708_v16 = vpop.f32.mrb[14].mxu1 }
 0x5f5   :  { %v2819_v17 = vpop.f32.mrb[15].mxu1 }
 0x5fa   :  { %v751_v18 = vpop.f32.mrb[16].mxu1 }
 0x5fb   :  { %v757_v19 = vpack.c.bf16 %v751_v18, %v705_v11  ;;  %v2824_v22 = vpop.f32.mrb[17].mxu1 }
 0x5fc   :  { %v754_v23 = vpop.f32.mrb[18].mxu1 }
 0x5fd   :  { %758 = vst.msk [vmem:[#allocation3] sm:$0xff] %vm542_vm1, %v757_v19  ;;  %v2825_v25 = vpop.f32.mrb[19].mxu1 }
 0x603   :  { %v869_v26 = vpop.f32.mrb[20].mxu1 }
 0x604   :  { %v876_v27 = vsel %vm3802_vm3, %v869_v26, -1e+30  ;;  %v2836_v28 = vpop.f32.mrb[21].mxu1 }
 0x605   :  { %v872_v29 = vpop.f32.mrb[22].mxu1  ;;  %v880_v31 = vsel %vm639_vm4, %v876_v27, -inf }
 0x606   :  { %881 = vmax.xlane.f32.xlu1 %v880_v31  ;;  %v2837_v32 = vpop.f32.mrb[23].mxu1 }
 0x617   :  { %951 = vrot.lane.b32.xlu1 %v3826_v56, %s3488_s12 }
 0x61b   :  { %1022 = vrot.lane.b32.xlu1 %v3774_v10, %s3469_s3 }
 0x61f   :  { %1074 = vrot.lane.b32.xlu1 %v3779_v14, %s3469_s3 }
 0x623   :  { %1071 = vrot.lane.b32.xlu1 %v3792_v21, %s3469_s3 }
 0x67f   :  { %v879_v33 = vpop.xlane.xlu0 %878 }
 0x680   :  { %v883_v34 = vsub.f32 %v875_v6, %v879_v33 }
 0x682   :  { %v885_v35 = vmul.f32 1.442695, %v883_v34 }
 0x684   :  { %3078 = vpow2.f32 %v885_v35 }
 0x68e   :  { %v3079_v36 = vpop.eup %3078 }
 0x68f   :  { %v889_v37 = vsel %vm639_vm4, %v3079_v36, 0.0 }
 0x690   :  { %890 = vadd.xlane.f32.xlu0 %v889_v37 }
 0x693   :  { %v882_v38 = vpop.xlane.xlu1 %881 }
 0x694   :  { %v884_v39 = vsub.f32 %v876_v27, %v882_v38 }
 0x696   :  { %v887_v40 = vmul.f32 1.442695, %v884_v39 }
 0x697   :  { %v952_v41 = vpop.permute.xlu1 %951 }
 0x698   :  { %3080 = vpow2.f32 %v887_v40  ;;  %v957_v42 = vsel %vm667_vm2, %v952_v41, 0 }
 0x699   :  { %2845 = vmatpush3.bf16.msra.mxu1 %v957_v42 }
 0x69a   :  { %2856 = vmatprep.subr.bf16.mxu1 %v3485_v4 }
 0x69b   :  { %v1023_v51 = vpop.permute.xlu1 %1022 }
 0x69c   :  { %v1028_v61 = vsel %vm542_vm1, %v1023_v51, 0 }
 0x69f   :  { %v1075_v60 = vpop.permute.xlu1 %1074 }
 0x6a0   :  { %v1080_v63 = vsel %vm542_vm1, %v1075_v60, 0 }
 0x6a2   :  { %v3081_v43 = vpop.eup %3080 }
 0x6a3   :  { %v892_v44 = vsel %vm639_vm4, %v3081_v43, 0.0  ;;  %v1072_v1 = vpop.permute.xlu1 %1071 }
 0x6a4   :  { %893 = vadd.xlane.f32.xlu0 %v892_v44 }
 0x6ba   :  { %902 = vrot.lane.b32.xlu0 %v3790_v20, %s3488_s12 }
 0x6be   :  { %1019 = vrot.lane.b32.xlu0 %v3781_v15, %s3469_s3 }
 0x71d   :  { %v891_v45 = vpop.xlane.xlu0 %890 }
 0x71e   :  { %3082 = vrcp.f32 %v891_v45 }
 0x728   :  { %v3083_v46 = vpop.eup %3082 }
 0x729   :  { %v897_v48 = vmul.f32 %v3083_v46, %v3079_v36 }
 0x72b   :  { %v899_v52 = vpack.c.bf16 %v897_v48, %v897_v48 }
 0x731   :  { %v894_v47 = vpop.xlane.xlu0 %893 }
 0x732   :  { %3084 = vrcp.f32 %v894_v47 }
 0x735   :  { %v903_v49 = vpop.permute.xlu0 %902 }
 0x736   :  { %v908_v50 = vsel %vm667_vm2, %v903_v49, 0 }
 0x737   :  { %2839 = vmatpush3.bf16.msra.mxu0 %v908_v50 }
 0x738   :  { %2850 = vmatprep.subr.bf16.mxu0 %v3485_v4 }
 0x739   :  { %v1020_v0 = vpop.permute.xlu0 %1019 }
 0x73a   :  { %2841 = vmatmul.mubr.msk.bf16.vlgmr.msra.gmra.mrb[8].mxu0 %vm639_vm4, %v899_v52 }
 0x73b   :  { %2852 = vmatprep.mubr.msk.bf16.mxu0 %vm3487_vm0, %v3485_v4 }
 0x73c   :  { %v3085_v53 = vpop.eup %3084 }
 0x73d   :  { %v898_v59 = vmul.f32 %v3085_v53, %v3081_v43 }
 0x73f   :  { %v900_v62 = vpack.c.bf16 %v898_v59, %v898_v59 }
 0x740   :  { %2851 = vmatpush3.bf16.xpose.msra.mxu0 %v1028_v61 }
 0x741   :  { %2847 = vmatmul.mubr.msk.bf16.vlgmr.msra.gmra.mrb[24].mxu1 %vm639_vm4, %v900_v62  ;;  %2862 = vmatprep.subr.bf16.mxu0 %v3485_v4 }
 0x742   :  { %2857 = vmatpush3.bf16.xpose.msra.mxu1 %v1080_v63  ;;  %2858 = vmatprep.mubr.msk.bf16.mxu1 %vm3487_vm0, %v3485_v4 }
 0x743   :  { %2868 = vmatprep.subr.bf16.mxu1 %v3485_v4 }
 0x747   :  { %2853 = vmatmul.mubr.msk.bf16.vlgmr.msra.gmra.mrb[12].mxu0 %vm542_vm1, %v1020_v0 }
 0x748   :  { %2864 = vmatprep.mubr.msk.bf16.mxu0 %vm3487_vm0, %v3485_v4 }
 0x749   :  { %2859 = vmatmul.mubr.msk.bf16.vlgmr.msra.gmra.mrb[28].mxu1 %vm542_vm1, %v1072_v1 }
 0x74a   :  { %2870 = vmatprep.mubr.msk.bf16.mxu1 %vm3487_vm0, %v3485_v4 }
 0x80d   :  { %v3886_v2 = vpop.f32.mrb[8].mxu0 }
 0x80e   :  { %v2842_v3 = vpop.f32.mrb[9].mxu0 }
 0x80f   :  { %v947_v5 = vpop.f32.mrb[10].mxu0 }
 0x810   :  { %v2843_v6 = vpop.f32.mrb[11].mxu0 }
 0x814   :  { %v3888_v7 = vpop.f32.mrb[24].mxu1 }
 0x815   :  { %v999_v8 = vpack.c.bf16 %v3888_v7, %v3886_v2  ;;  %v2848_v9 = vpop.f32.mrb[25].mxu1 }
 0x816   :  { %v996_v11 = vpop.f32.mrb[26].mxu1 }
 0x817   :  { %v2849_v12 = vpop.f32.mrb[27].mxu1 }
 0x81a   :  { %v1064_v13 = vpop.f32.mrb[12].mxu0 }
 0x81b   :  { %v1122_v16 = vsel %vm3802_vm3, %v1064_v13, -1e+30  ;;  %v2854_v17 = vpop.f32.mrb[13].mxu0 }
 0x81c   :  { %v1067_v18 = vpop.f32.mrb[14].mxu0  ;;  %v1116_v19 = vpop.f32.mrb[28].mxu1  ;;  %v1124_v22 = vsel %vm639_vm4, %v1122_v16, -inf }
 0x81d   :  { %v1123_v23 = vsel %vm3802_vm3, %v1116_v19, -1e+30  ;;  %1125 = vmax.xlane.f32.xlu0 %v1124_v22  ;;  %v2855_v25 = vpop.f32.mrb[15].mxu0  ;;  %v2860_v26 = vpop.f32.mrb[29].mxu1 }
 0x81e   :  { %v1119_v27 = vpop.f32.mrb[30].mxu1  ;;  %v1127_v28 = vsel %vm639_vm4, %v1123_v23, -inf }
 0x81f   :  { %1128 = vmax.xlane.f32.xlu1 %v1127_v28  ;;  %v2861_v29 = vpop.f32.mrb[31].mxu1 }
 0x830   :  { %1198 = vrot.lane.b32.xlu1 %v3826_v56, %s3469_s3 }
 0x834   :  { %1269 = vrot.lane.b32.xlu1 %v3774_v10, %s3489_s9 }
 0x838   :  { %1321 = vrot.lane.b32.xlu1 %v3779_v14, %s3489_s9 }
 0x83c   :  { %1318 = vrot.lane.b32.xlu1 %v3792_v21, %s3489_s9 }
 0x8aa   :  { %v1126_v31 = vpop.xlane.xlu0 %1125 }
 0x8ab   :  { %v1130_v32 = vsub.f32 %v1122_v16, %v1126_v31 }
 0x8ac   :  { %v1129_v33 = vpop.xlane.xlu1 %1128 }
 0x8ad   :  { %v1132_v34 = vmul.f32 1.442695, %v1130_v32  ;;  %v1131_v35 = vsub.f32 %v1123_v23, %v1129_v33 }
 0x8af   :  { %3086 = vpow2.f32 %v1132_v34  ;;  %v1134_v36 = vmul.f32 1.442695, %v1131_v35 }
 0x8b0   :  { %v1199_v37 = vpop.permute.xlu1 %1198 }
 0x8b1   :  { %3088 = vpow2.f32 %v1134_v36  ;;  %v1204_v38 = vsel %vm667_vm2, %v1199_v37, 0 }
 0x8b2   :  { %2869 = vmatpush3.bf16.msra.mxu1 %v1204_v38 }
 0x8b3   :  { %2880 = vmatprep.subr.bf16.mxu1 %v3485_v4 }
 0x8b4   :  { %v1270_v45 = vpop.permute.xlu1 %1269 }
 0x8b8   :  { %v1322_v50 = vpop.permute.xlu1 %1321 }
 0x8b9   :  { %v3087_v10 = vpop.eup %3086  ;;  %v1327_v52 = vsel %vm542_vm1, %v1322_v50, 0  ;;  %v2985_v50 = vld [vmem:[#allocation13 + $0x38] sm:$0xff]  }
 0x8ba   :  { %v1136_v14 = vsel %vm639_vm4, %v3087_v10, 0.0 }
 0x8bb   :  { %v3089_v39 = vpop.eup %3088  ;;  %1137 = vadd.xlane.f32.xlu0 %v1136_v14 }
 0x8bc   :  { %v1139_v21 = vsel %vm639_vm4, %v3089_v39, 0.0  ;;  %v1319_v59 = vpop.permute.xlu1 %1318 }
 0x8bf   :  { %1140 = vadd.xlane.f32.xlu0 %v1139_v21 }
 0x8d5   :  { %1149 = vrot.lane.b32.xlu0 %v3790_v20, %s3469_s3 }
 0x8d9   :  { %1266 = vrot.lane.b32.xlu0 %v3781_v15, %s3489_s9  ;;  %v1275_v15 = vsel %vm542_vm1, %v1270_v45, 0  ;;  %v2980_v45 = vld [vmem:[#allocation13 + $0x10] sm:$0xff]  }
 0x948   :  { %v1138_v40 = vpop.xlane.xlu0 %1137 }
 0x949   :  { %3090 = vrcp.f32 %v1138_v40 }
 0x94c   :  { %v1141_v41 = vpop.xlane.xlu0 %1140 }
 0x94d   :  { %3092 = vrcp.f32 %v1141_v41 }
 0x950   :  { %v1150_v42 = vpop.permute.xlu0 %1149 }
 0x951   :  { %v1155_v43 = vsel %vm667_vm2, %v1150_v42, 0 }
 0x952   :  { %2863 = vmatpush3.bf16.msra.mxu0 %v1155_v43  ;;  %v2978_v43 = vld [vmem:[#allocation13] sm:$0xff]  }
 0x953   :  { %v3091_v44 = vpop.eup %3090  ;;  %2874 = vmatprep.subr.bf16.mxu0 %v3485_v4 }
 0x954   :  { %v1144_v46 = vmul.f32 %v3091_v44, %v3087_v10  ;;  %v1267_v53 = vpop.permute.xlu0 %1266  ;;  %v2979_v44 = vld [vmem:[#allocation13 + $0x8] sm:$0xff]  }
 0x956   :  { %v1146_v47 = vpack.c.bf16 %v1144_v46, %v1144_v46  ;;  %v2981_v46 = vld [vmem:[#allocation13 + $0x18] sm:$0xff]  }
 0x957   :  { %v3093_v48 = vpop.eup %3092 }
 0x958   :  { %v1145_v49 = vmul.f32 %v3093_v48, %v3089_v39  ;;  %2865 = vmatmul.mubr.msk.bf16.vlgmr.msra.gmra.mrb[16].mxu0 %vm639_vm4, %v1146_v47  ;;  %v2982_v47 = vld [vmem:[#allocation13 + $0x20] sm:$0xff]   ;;  %v2983_v48 = vld [vmem:[#allocation13 + $0x28] sm:$0xff]  }
 0x959   :  { %2876 = vmatprep.mubr.msk.bf16.mxu0 %vm3487_vm0, %v3485_v4 }
 0x95a   :  { %v1147_v51 = vpack.c.bf16 %v1145_v49, %v1145_v49  ;;  %v2984_v49 = vld [vmem:[#allocation13 + $0x30] sm:$0xff]  }
 0x95b   :  { %2875 = vmatpush3.bf16.xpose.msra.mxu0 %v1275_v15 }
 0x95c   :  { %2871 = vmatmul.mubr.msk.bf16.vlgmr.msra.gmra.mrb[32].mxu1 %vm639_vm4, %v1147_v51  ;;  %2886 = vmatprep.subr.bf16.mxu0 %v3485_v4 }
 0x95d   :  { %2881 = vmatpush3.bf16.xpose.msra.mxu1 %v1327_v52  ;;  %2882 = vmatprep.mubr.msk.bf16.mxu1 %vm3487_vm0, %v3485_v4 }
 0x95e   :  { %2892 = vmatprep.subr.bf16.mxu1 %v3485_v4 }
 0x962   :  { %2877 = vmatmul.mubr.msk.bf16.vlgmr.msra.gmra.mrb[20].mxu0 %vm542_vm1, %v1267_v53 }
 0x963   :  { %2888 = vmatprep.mubr.msk.bf16.mxu0 %vm3487_vm0, %v3485_v4 }
 0x964   :  { %2883 = vmatmul.mubr.msk.bf16.vlgmr.msra.gmra.mrb[36].mxu1 %vm542_vm1, %v1319_v59 }
 0x965   :  { %2894 = vmatprep.mubr.msk.bf16.mxu1 %vm3487_vm0, %v3485_v4 }
 0xa2b   :  { %v1191_v60 = vpop.f32.mrb[16].mxu0 }
 0xa2c   :  { %v2866_v61 = vpop.f32.mrb[17].mxu0 }
 0xa2d   :  { %v1194_v62 = vpop.f32.mrb[18].mxu0 }
 0xa2e   :  { %v2867_v63 = vpop.f32.mrb[19].mxu0 }
 0xa2f   :  { %v1240_v0 = vpop.f32.mrb[32].mxu1 }
 0xa30   :  { %v1246_v1 = vpack.c.bf16 %v1240_v0, %v1191_v60  ;;  %v2872_v3 = vpop.f32.mrb[33].mxu1 }
 0xa31   :  { %v1243_v5 = vpop.f32.mrb[34].mxu1 }
 0xa32   :  { %v2873_v6 = vpop.f32.mrb[35].mxu1 }
 0xa35   :  { %v1311_v9 = vpop.f32.mrb[20].mxu0 }
 0xa36   :  { %v1369_v11 = vsel %vm3802_vm3, %v1311_v9, -1e+30  ;;  %v2878_v12 = vpop.f32.mrb[21].mxu0 }
 0xa37   :  { %v1314_v13 = vpop.f32.mrb[22].mxu0  ;;  %v1363_v16 = vpop.f32.mrb[36].mxu1  ;;  %v1371_v17 = vsel %vm639_vm4, %v1369_v11, -inf }
 0xa38   :  { %v1370_v18 = vsel %vm3802_vm3, %v1363_v16, -1e+30  ;;  %1372 = vmax.xlane.f32.xlu0 %v1371_v17  ;;  %v2879_v19 = vpop.f32.mrb[23].mxu0  ;;  %v2884_v22 = vpop.f32.mrb[37].mxu1  ;;  %v3139_v17 = vld [vmem:[#allocation4 + $0x8] sm:$0xff] }
 0xa39   :  { %v1366_v23 = vpop.f32.mrb[38].mxu1  ;;  %v1374_v25 = vsel %vm639_vm4, %v1370_v18, -inf  ;;  %v2986_v19 = vld [vmem:[#allocation19] ss:$16 sps:$4 sm:$0xff]   ;;  %v2988_v22 = vld [vmem:[#allocation19 + $0x4] ss:$16 sps:$4 sm:$0xff]  }
 0xa3a   :  { %1375 = vmax.xlane.f32.xlu1 %v1374_v25  ;;  %v2885_v26 = vpop.f32.mrb[39].mxu1  ;;  %v2991_v23 = vld [vmem:[#allocation19 + $0xc] ss:$16 sps:$4 sm:$0xff]   ;;  %v2994_v25 = vld [vmem:[#allocation19 + $0x24] ss:$16 sps:$4 sm:$0xff]  }
 0xa3b   :  { %v2997_v26 = vld [vmem:[#allocation19 + $0x2c] ss:$16 sps:$4 sm:$0xff]  }
 0xa4b   :  { %1445 = vrot.lane.b32.xlu1 %v3826_v56, %s3489_s9 }
 0xa4f   :  { %1001 = vrot.lane.b32.xlu1 %v999_v8, %s3489_s9 }
 0xa53   :  { %1248 = vrot.lane.b32.xlu1 %v1246_v1, %s3469_s3  ;;  %s3491_s3 = smov [#allocation25]  }
 0xa54   :  { %s2522_s16 = sshll.u32 %s3491_s3, 4  ;;  %s2523_s16 = int_to_ptr.vmem [resolvable:$true] %s2522_s16 }
 0xa55   :  { %s3426_s18 = scalar_lea.vmem %s2523_s16, 256  ;;  %p3431_p7 = scmp.lt.s32.totalorder %s2523_s16, %s2523_s16 }
 0xa56   :  { %p3427_p6 = scmp.ne.s32.totalorder %s2523_s16, %s3426_s18  ;;  %p3432_p8 = scmp.lt.s32.totalorder %s3426_s18, %s3426_s18 }
 0xa58   :  { %p3433_p9 = por %p3432_p8, %p3431_p7 }
 0xa5a   :  { %p3434_p10 = pnand %p3433_p9, %p3427_p6 }
 0xac5   :  { %v1373_v24 = vpop.xlane.xlu0 %1372 }
 0xac6   :  { %v1377_v27 = vsub.f32 %v1369_v11, %v1373_v24  ;;  %v3138_v11 = vld [vmem:[#allocation4] sm:$0xff] }
 0xac7   :  { %v1376_v28 = vpop.xlane.xlu1 %1375  ;;  %v2992_v24 = vld [vmem:[#allocation19 + $0x20] ss:$16 sps:$4 sm:$0xff]  }
 0xac8   :  { %v1379_v29 = vmul.f32 1.442695, %v1377_v27  ;;  %v1378_v31 = vsub.f32 %v1370_v18, %v1376_v28  ;;  %v2995_v27 = vld [vmem:[#allocation19 + $0x28] ss:$16 sps:$4 sm:$0xff]  }
 0xaca   :  { %3094 = vpow2.f32 %v1379_v29  ;;  %v1381_v32 = vmul.f32 1.442695, %v1378_v31 }
 0xacb   :  { %v1446_v33 = vpop.permute.xlu1 %1445 }
 0xacc   :  { %3096 = vpow2.f32 %v1381_v32  ;;  %v1451_v34 = vsel %vm667_vm2, %v1446_v33, 0 }
 0xacd   :  { %2893 = vmatpush3.bf16.msra.mxu1 %v1451_v34 }
 0xace   :  { %1870 = vmatprep.subr.bf16.mxu1 %v2988_v22  ;;  %v3036_v22 = vld [vmem:[#allocation22] sm:$0xff]  }
 0xacf   :  { %v1002_v56 = vpop.permute.xlu1 %1001 }
 0xad0   :  { %1005 = vst.msk [vmem:[#allocation3] sm:$0xff] %vm1004_vm5, %v1002_v56 }
 0xad3   :  { %v1249_v2 = vpop.permute.xlu1 %1248 }
 0xad4   :  { %v3095_v7 = vpop.eup %3094  ;;  %1252 = vst.msk [vmem:[#allocation3] sm:$0xff] %vm1251_vm6, %v1249_v2 }
 0xad5   :  { %v1383_v8 = vsel %vm639_vm4, %v3095_v7, 0.0 }
 0xad6   :  { %v3097_v35 = vpop.eup %3096  ;;  %1384 = vadd.xlane.f32.xlu0 %v1383_v8  ;;  %v3003_v8 = vld [vmem:[#allocation19 + $0x4c] ss:$16 sps:$4 sm:$0xff]  }
 0xad7   :  { %v1386_v36 = vsel %vm639_vm4, %v3097_v35, 0.0 }
 0xada   :  { %1387 = vadd.xlane.f32.xlu0 %v1386_v36  ;;  %v3001_v36 = vld [vmem:[#allocation19 + $0x48] ss:$16 sps:$4 sm:$0xff]  }
 0xaf0   :  { %1396 = vrot.lane.b32.xlu0 %v3790_v20, %s3489_s9 }
 0xb63   :  { %v1385_v37 = vpop.xlane.xlu0 %1384 }
 0xb64   :  { %3098 = vrcp.f32 %v1385_v37  ;;  %v3006_v37 = vld [vmem:[#allocation19 + $0x64] ss:$16 sps:$4 sm:$0xff]  }
 0xb67   :  { %v1388_v38 = vpop.xlane.xlu0 %1387 }
 0xb68   :  { %3100 = vrcp.f32 %v1388_v38  ;;  %v3009_v38 = vld [vmem:[#allocation19 + $0x6c] ss:$16 sps:$4 sm:$0xff]  }
 0xb6b   :  { %v1397_v10 = vpop.permute.xlu0 %1396 }
 0xb6c   :  { %v1402_v14 = vsel %vm667_vm2, %v1397_v10, 0  ;;  %v3004_v10 = vld [vmem:[#allocation19 + $0x60] ss:$16 sps:$4 sm:$0xff]  }
 0xb6d   :  { %2887 = vmatpush3.bf16.msra.mxu0 %v1402_v14  ;;  %v3007_v14 = vld [vmem:[#allocation19 + $0x68] ss:$16 sps:$4 sm:$0xff]  }
 0xb6e   :  { %v3099_v39 = vpop.eup %3098  ;;  %2898 = vmatprep.subr.bf16.mxu0 %v3485_v4 }
 0xb6f   :  { %v1391_v21 = vmul.f32 %v3099_v39, %v3095_v7  ;;  %v3000_v7 = vld [vmem:[#allocation19 + $0x44] ss:$16 sps:$4 sm:$0xff]  }
 0xb70   :  { %v3012_v39 = vld [vmem:[#allocation19 + $0x84] ss:$16 sps:$4 sm:$0xff]  }
 0xb71   :  { %v1393_v40 = vpack.c.bf16 %v1391_v21, %v1391_v21  ;;  %v3015_v21 = vld [vmem:[#allocation19 + $0x8c] ss:$16 sps:$4 sm:$0xff]  }
 0xb72   :  { %v3101_v41 = vpop.eup %3100 }
 0xb73   :  { %v1392_v42 = vmul.f32 %v3101_v41, %v3097_v35  ;;  %2889 = vmatmul.mubr.msk.bf16.vlgmr.msra.gmra.mrb[24].mxu0 %vm639_vm4, %v1393_v40  ;;  %v2998_v35 = vld [vmem:[#allocation19 + $0x40] ss:$16 sps:$4 sm:$0xff]   ;;  %v3013_v41 = vld [vmem:[#allocation19 + $0x88] ss:$16 sps:$4 sm:$0xff]  }
 0xb74   :  { %2914 = vmatprep.mubr.msk.bf16.mxu0 %vm3487_vm0, %v3485_v4  ;;  %2899 = vmatpush3.bf16.msra.mxu0 %v2978_v43  ;;  %v3010_v40 = vld [vmem:[#allocation19 + $0x80] ss:$16 sps:$4 sm:$0xff]  }
 0xb75   :  { %v1394_v20 = vpack.c.bf16 %v1392_v42, %v1392_v42  ;;  %2900 = vmatprep.subr.bf16.mxu0 %v3485_v4  ;;  %v3018_v42 = vld [vmem:[#allocation19 + $0xa4] ss:$16 sps:$4 sm:$0xff]   ;;  %v3016_v43 = vld [vmem:[#allocation19 + $0xa0] ss:$16 sps:$4 sm:$0xff]  }
 0xb77   :  { %2895 = vmatmul.mubr.msk.bf16.vlgmr.msra.gmra.mrb[40].mxu1 %vm639_vm4, %v1394_v20  ;;  %v3021_v20 = vld [vmem:[#allocation19 + $0xac] ss:$16 sps:$4 sm:$0xff]  }
 0xb78   :  { %1902 = vmatprep.mubr.bf16.mxu1 %v3486_v30  ;;  %2901 = vmatpush3.bf16.msra.mxu0 %v2979_v44  ;;  %v3019_v44 = vld [vmem:[#allocation19 + $0xa8] ss:$16 sps:$4 sm:$0xff]  }
 0xb79   :  { %2902 = vmatprep.subr.bf16.mxu0 %v3485_v4  ;;  %1871 = vmatpush1.bf16.msra.mxu1 %v2986_v19  ;;  %v3035_v19 = vld [vmem:[#allocation22 + $0xc0] sm:$0xff]  }
 0xb7a   :  { %1872 = vmatprep.subr.bf16.mxu1 %v2994_v25  ;;  %v3039_v25 = vld [vmem:[#allocation22 + $0xc8] sm:$0xff]  }
 0xb7c   :  { %2903 = vmatpush3.bf16.msra.mxu0 %v2980_v45  ;;  %v3024_v45 = vld [vmem:[#allocation19 + $0xc4] ss:$16 sps:$4 sm:$0xff]  }
 0xb7d   :  { %2904 = vmatprep.subr.bf16.mxu0 %v3485_v4  ;;  %1873 = vmatpush1.bf16.msra.mxu1 %v2992_v24  ;;  %v3041_v24 = vld [vmem:[#allocation22 + $0x88] sm:$0xff]  }
 0xb7e   :  { %1874 = vmatprep.subr.bf16.mxu1 %v3000_v7  ;;  %v3051_v7 = vld [vmem:[#allocation22 + $0xe0] sm:$0xff]  }
 0xb80   :  { %2905 = vmatpush3.bf16.msra.mxu0 %v2981_v46  ;;  %v3027_v46 = vld [vmem:[#allocation19 + $0xcc] ss:$16 sps:$4 sm:$0xff]  }
 0xb81   :  { %2906 = vmatprep.subr.bf16.mxu0 %v3485_v4  ;;  %1875 = vmatpush1.bf16.msra.mxu1 %v2998_v35  ;;  %v3053_v35 = vld [vmem:[#allocation22 + $0xa0] sm:$0xff]  }
 0xb82   :  { %1876 = vmatprep.subr.bf16.mxu1 %v3006_v37  ;;  %v3055_v37 = vld [vmem:[#allocation22 + $0xe8] sm:$0xff]  }
 0xb84   :  { %2907 = vmatpush3.bf16.msra.mxu0 %v2982_v47  ;;  %v3022_v47 = vld [vmem:[#allocation19 + $0xc0] ss:$16 sps:$4 sm:$0xff]  }
 0xb85   :  { %2908 = vmatprep.subr.bf16.mxu0 %v3485_v4  ;;  %1877 = vmatpush1.bf16.msra.mxu1 %v3004_v10  ;;  %v3057_v10 = vld [vmem:[#allocation22 + $0xa8] sm:$0xff]  }
 0xb86   :  { %1878 = vmatprep.subr.bf16.mxu1 %v3012_v39  ;;  %v3059_v39 = vld [vmem:[#allocation22 + $0xf0] sm:$0xff]  }
 0xb88   :  { %2909 = vmatpush3.bf16.msra.mxu0 %v2983_v48  ;;  %v3025_v48 = vld [vmem:[#allocation19 + $0xc8] ss:$16 sps:$4 sm:$0xff]  }
 0xb89   :  { %2910 = vmatprep.subr.bf16.mxu0 %v3485_v4  ;;  %1879 = vmatpush1.bf16.msra.mxu1 %v3010_v40  ;;  %v3061_v40 = vld [vmem:[#allocation22 + $0xb0] sm:$0xff]  }
 0xb8a   :  { %1880 = vmatprep.subr.bf16.mxu1 %v3018_v42  ;;  %v3063_v42 = vld [vmem:[#allocation22 + $0xf8] sm:$0xff]  }
 0xb8c   :  { %2911 = vmatpush3.bf16.msra.mxu0 %v2984_v49  ;;  %v3030_v49 = vld [vmem:[#allocation19 + $0xe4] ss:$16 sps:$4 sm:$0xff]  }
 0xb8d   :  { %2912 = vmatprep.subr.bf16.mxu0 %v3485_v4  ;;  %v2606_v4 = vld [vmem:[#allocation15] ss:$0 sm:$0xff]  ;;  %1881 = vmatpush1.bf16.msra.mxu1 %v3016_v43  ;;  %v3065_v43 = vld [vmem:[#allocation22 + $0xb8] sm:$0xff]  }
 0xb8e   :  { %1882 = vmatprep.subr.bf16.mxu1 %v3024_v45  ;;  %v1704_v45 = vsub.s32 3, %v3761_v54 }
 0xb90   :  { %2913 = vmatpush3.bf16.msra.mxu0 %v2985_v50  ;;  %v3033_v50 = vld [vmem:[#allocation19 + $0xec] ss:$16 sps:$4 sm:$0xff]  }
 0xb91   :  { %1913 = vmatprep.subr.bf16.mxu0 %v2991_v23  ;;  %1883 = vmatpush1.bf16.msra.mxu1 %v3022_v47  ;;  %v3038_v23 = vld [vmem:[#allocation22 + $0x48] sm:$0xff]  }
 0xb92   :  { %1884 = vmatprep.subr.bf16.mxu1 %v3030_v49 }
 0xc46   :  { %v1438_v15 = vpop.f32.mrb[24].mxu0 }
 0xc47   :  { %v2890_v51 = vpop.f32.mrb[25].mxu0 }
 0xc48   :  { %v1441_v52 = vpop.f32.mrb[26].mxu0  ;;  %v3031_v51 = vld [vmem:[#allocation19 + $0xe8] ss:$16 sps:$4 sm:$0xff]  }
 0xc49   :  { %v2891_v53 = vpop.f32.mrb[27].mxu0 }
 0xc4a   :  { %v1487_v59 = vpop.f32.mrb[40].mxu1 }
 0xc4b   :  { %v1493_v60 = vpack.c.bf16 %v1487_v59, %v1438_v15  ;;  %v2896_v61 = vpop.f32.mrb[41].mxu1  ;;  %v3028_v15 = vld [vmem:[#allocation19 + $0xe0] ss:$16 sps:$4 sm:$0xff]  }
 0xc4c   :  { %v1490_v62 = vpop.f32.mrb[42].mxu1  ;;  %1885 = vmatpush1.bf16.msra.mxu1 %v3028_v15 }
 0xc4d   :  { %1495 = vrot.lane.b32.xlu0 %v1493_v60, %s3488_s12  ;;  %v2897_v63 = vpop.f32.mrb[43].mxu1 }
 0xcbf   :  { %v1496_v0 = vpop.permute.xlu0 %1495 }
 0xcc0   :  { %1499 = vst.msk [vmem:[#allocation3] sm:$0xff] %vm1498_vm7, %v1496_v0 }
 0xcc7   :  { %v1500_v1 = vld [vmem:[#allocation3] sm:$0xff] }
 0xcc8   :  { %2915 = vmatmul.mubr.bf16.vlgmr.msra.gmra.mrb[28].mxu0 %v1500_v1  ;;  %v2615_v1 = vld [vmem:[#allocation16] ss:$0 sm:$0xff] }
 0xcc9   :  { %1945 = vmatprep.mubr.bf16.mxu0 %v3486_v30  ;;  %v2989_v30 = vld [vmem:[#allocation19 + $0x8] ss:$16 sps:$4 sm:$0xff]  }
 0xcca   :  { %1914 = vmatpush1.bf16.msra.mxu0 %v2989_v30  ;;  %v3037_v30 = vld [vmem:[#allocation22 + $0x80] sm:$0xff]  }
 0xccb   :  { %1915 = vmatprep.subr.bf16.mxu0 %v2997_v26  ;;  %v3040_v26 = vld [vmem:[#allocation22 + $0x8] sm:$0xff]  }
 0xcce   :  { %1916 = vmatpush1.bf16.msra.mxu0 %v2995_v27  ;;  %v3042_v27 = vld [vmem:[#allocation22 + $0x50] sm:$0xff]  }
 0xccf   :  { %1917 = vmatprep.subr.bf16.mxu0 %v3003_v8  ;;  %v3052_v8 = vld [vmem:[#allocation22 + $0x20] sm:$0xff]  }
 0xcd2   :  { %1918 = vmatpush1.bf16.msra.mxu0 %v3001_v36  ;;  %v3054_v36 = vld [vmem:[#allocation22 + $0x68] sm:$0xff]  }
 0xcd3   :  { %1919 = vmatprep.subr.bf16.mxu0 %v3009_v38  ;;  %v3056_v38 = vld [vmem:[#allocation22 + $0x28] sm:$0xff]  }
 0xcd6   :  { %1920 = vmatpush1.bf16.msra.mxu0 %v3007_v14  ;;  %v3058_v14 = vld [vmem:[#allocation22 + $0x70] sm:$0xff]  }
 0xcd7   :  { %1921 = vmatprep.subr.bf16.mxu0 %v3015_v21  ;;  %v3060_v21 = vld [vmem:[#allocation22 + $0x30] sm:$0xff]  }
 0xcda   :  { %1922 = vmatpush1.bf16.msra.mxu0 %v3013_v41  ;;  %v3062_v41 = vld [vmem:[#allocation22 + $0x78] sm:$0xff]  }
 0xcdb   :  { %1923 = vmatprep.subr.bf16.mxu0 %v3021_v20  ;;  %v3064_v20 = vld [vmem:[#allocation22 + $0x38] sm:$0xff]  }
 0xcde   :  { %1924 = vmatpush1.bf16.msra.mxu0 %v3019_v44  ;;  %v1688_v44 = vld [vmem:[#allocation21] sm:$0xf] }
 0xcdf   :  { %1925 = vmatprep.subr.bf16.mxu0 %v3027_v46  ;;  %v1693_v46 = vrot.slane %v1688_v44, %v286_v57  ;;  %v1701_v47 = vrot.slane %v1688_v44, %v294_v58  ;;  %v1705_v49 = vrot.slane %v1688_v44, %v1704_v45 }
 0xce2   :  { %1926 = vmatpush1.bf16.msra.mxu0 %v3025_v48  ;;  %v1697_v48 = vrot.slane %v1688_v44, %v290_v55 }
 0xce3   :  { %1927 = vmatprep.subr.bf16.mxu0 %v3033_v50 }
 0xce6   :  { %1928 = vmatpush1.bf16.msra.mxu0 %v3031_v51 }
 0xce7   :  { %2760 = vmatprep.subr.bf16.mxu0 %v3035_v19 }
 0xd9b   :  { %v1606_v3 = vpop.f32.mrb[28].mxu0 }
 0xd9c   :  { %v1607_v5 = vadd.f32 %v2606_v4, %v1606_v3  ;;  %v2916_v6 = vpop.f32.mrb[29].mxu0 }
 0xd9d   :  { %v1609_v9 = vpop.f32.mrb[30].mxu0  ;;  %v2616_v6 = vld [vmem:[#allocation18] ss:$0 sm:$0xff] }
 0xd9e   :  { %v3966_v12 = vadd.f32 %v3138_v11, %v1607_v5  ;;  %v1610_v13 = vadd.f32 %v2606_v4, %v1609_v9  ;;  %v2917_v16 = vpop.f32.mrb[31].mxu0 }
 0xda0   :  { %v3968_v18 = vadd.f32 %v3139_v17, %v1610_v13  ;;  %1617 = vadd.xlane.f32.xlu1 %v3966_v12  ;;  %v3034_v17 = vld [vmem:[#allocation22 + $0x40] sm:$0xff]  }
 0xda1   :  { %2738 = vmatprep.subr.bf16.mxu1 %v3034_v17 }
 0xda2   :  { %1619 = vadd.xlane.f32.xlu0 %v3968_v18 }
 0xe2d   :  { %v1618_v28 = vpop.xlane.xlu1 %1617 }
 0xe2e   :  { %v1621_v29 = vmul.f32 0.0078125, %v1618_v28  ;;  %v3043_v28 = vld [vmem:[#allocation22 + $0xd0] sm:$0xff]  }
 0xe2f   :  { %v1620_v31 = vpop.xlane.xlu0 %1619 }
 0xe30   :  { %v3973_v32 = vsub.f32 %v3966_v12, %v1621_v29  ;;  %v1622_v33 = vmul.f32 0.0078125, %v1620_v31  ;;  %v3044_v29 = vld [vmem:[#allocation22 + $0x10] sm:$0xff]  }
 0xe31   :  { %v3045_v31 = vld [vmem:[#allocation22 + $0x90] sm:$0xff]  }
 0xe32   :  { %v3976_v34 = vsub.f32 %v3968_v18, %v1622_v33  ;;  %v1625_v56 = vmul.f32 %v3973_v32, %v3973_v32  ;;  %v3047_v33 = vld [vmem:[#allocation22 + $0xd8] sm:$0xff]  }
 0xe34   :  { %1627 = vadd.xlane.f32.xlu0 %v1625_v56  ;;  %v1626_v2 = vmul.f32 %v3976_v34, %v3976_v34  ;;  %v3049_v56 = vld [vmem:[#allocation22 + $0x98] sm:$0xff]  }
 0xe38   :  { %1629 = vadd.xlane.f32.xlu0 %v1626_v2  ;;  %v3050_v2 = vld [vmem:[#allocation22 + $0x60] sm:$0xff]  }
 0xec1   :  { %v1628_v52 = vpop.xlane.xlu0 %1627 }
 0xec2   :  { %v1631_v53 = vmul.f32 0.0078125, %v1628_v52 }
 0xec4   :  { %v1633_v59 = vadd.f32 1e-05, %v1631_v53 }
 0xec5   :  { %v1630_v60 = vpop.xlane.xlu0 %1629 }
 0xec6   :  { %3102 = vrsqrt.f32 %v1633_v59  ;;  %v1632_v61 = vmul.f32 0.0078125, %v1630_v60 }
 0xec8   :  { %v1634_v62 = vadd.f32 1e-05, %v1632_v61 }
 0xeca   :  { %3104 = vrsqrt.f32 %v1634_v62 }
 0xed0   :  { %v3103_v63 = vpop.eup %3102 }
 0xed1   :  { %v1637_v0 = vmul.f32 %v3103_v63, %v3973_v32  ;;  %v3046_v32 = vld [vmem:[#allocation22 + $0x58] sm:$0xff]  }
 0xed3   :  { %v1645_v5 = vmul.f32 %v2615_v1, %v1637_v0 }
 0xed4   :  { %v3105_v4 = vpop.eup %3104 }
 0xed5   :  { %v1638_v3 = vmul.f32 %v3105_v4, %v3976_v34  ;;  %v1653_v11 = vadd.f32 %v2616_v6, %v1645_v5  ;;  %v3048_v34 = vld [vmem:[#allocation22 + $0x18] sm:$0xff]  }
 0xed7   :  { %v1646_v9 = vmul.f32 %v2615_v1, %v1638_v3 }
 0xed9   :  { %v1654_v13 = vadd.f32 %v2616_v6, %v1646_v9 }
 0xedb   :  { %v1655_v16 = vpack.c.bf16 %v1654_v13, %v1653_v11 }
 0xedd   :  { %1903 = vmatmul.mubr.bf16.vlgmr.msra.gmra.mrb[44].mxu1 %v1655_v16  ;;  %1946 = vmatmul.mubr.bf16.vlgmr.msra.gmra.mrb[32].mxu0 %v1655_v16 }
 0xede   :  { %2739 = vmatpush3.bf16.msra.mxu1 %v3036_v22  ;;  %2761 = vmatpush3.bf16.msra.mxu0 %v3037_v30 }
 0xedf   :  { %2740 = vmatprep.subr.bf16.mxu1 %v3038_v23  ;;  %2762 = vmatprep.subr.bf16.mxu0 %v3039_v25 }
 0xee2   :  { %2741 = vmatpush3.bf16.msra.mxu1 %v3040_v26  ;;  %2763 = vmatpush3.bf16.msra.mxu0 %v3041_v24 }
 0xee3   :  { %2742 = vmatprep.subr.bf16.mxu1 %v3042_v27  ;;  %2764 = vmatprep.subr.bf16.mxu0 %v3043_v28 }
 0xee6   :  { %2743 = vmatpush3.bf16.msra.mxu1 %v3044_v29  ;;  %2765 = vmatpush3.bf16.msra.mxu0 %v3045_v31 }
 0xee7   :  { %2744 = vmatprep.subr.bf16.mxu1 %v3046_v32  ;;  %2766 = vmatprep.subr.bf16.mxu0 %v3047_v33 }
 0xeea   :  { %2745 = vmatpush3.bf16.msra.mxu1 %v3048_v34  ;;  %2767 = vmatpush3.bf16.msra.mxu0 %v3049_v56 }
 0xeeb   :  { %2746 = vmatprep.subr.bf16.mxu1 %v3050_v2  ;;  %2768 = vmatprep.subr.bf16.mxu0 %v3051_v7 }
 0xeee   :  { %2747 = vmatpush3.bf16.msra.mxu1 %v3052_v8  ;;  %2769 = vmatpush3.bf16.msra.mxu0 %v3053_v35 }
 0xeef   :  { %2748 = vmatprep.subr.bf16.mxu1 %v3054_v36  ;;  %2770 = vmatprep.subr.bf16.mxu0 %v3055_v37 }
 0xef2   :  { %2749 = vmatpush3.bf16.msra.mxu1 %v3056_v38  ;;  %2771 = vmatpush3.bf16.msra.mxu0 %v3057_v10 }
 0xef3   :  { %2750 = vmatprep.subr.bf16.mxu1 %v3058_v14  ;;  %2772 = vmatprep.subr.bf16.mxu0 %v3059_v39 }
 0xef6   :  { %2751 = vmatpush3.bf16.msra.mxu1 %v3060_v21  ;;  %2773 = vmatpush3.bf16.msra.mxu0 %v3061_v40 }
 0xef7   :  { %2752 = vmatprep.subr.bf16.mxu1 %v3062_v41  ;;  %2774 = vmatprep.subr.bf16.mxu0 %v3063_v42 }
 0xefa   :  { %2753 = vmatpush3.bf16.msra.mxu1 %v3064_v20  ;;  %2775 = vmatpush3.bf16.msra.mxu0 %v3065_v43 }
 0xfb0   :  { %v1904_v50 = vpop.f32.mrb[44].mxu1  ;;  %v1947_v15 = vpop.f32.mrb[32].mxu0 }
 0xfb1   :  { %v1905_v51 = vadd.f32 %v1904_v50, %v1693_v46  ;;  %v1948_v52 = vadd.f32 %v1947_v15, %v1701_v47  ;;  %v1906_v53 = vpop.f32.mrb[45].mxu1  ;;  %v1949_v59 = vpop.f32.mrb[33].mxu0 }
 0xfb2   :  { %v3991_v60 = vadd.f32 %v1906_v53, %v1697_v48  ;;  %v3993_v61 = vadd.f32 %v1949_v59, %v1705_v49  ;;  %v1908_v62 = vpop.f32.mrb[46].mxu1  ;;  %v1951_v63 = vpop.f32.mrb[34].mxu0 }
 0xfb3   :  { %v3995_v57 = vmul.f32 0.70710677, %v1905_v51  ;;  %v3997_v0 = vmul.f32 0.70710677, %v1948_v52  ;;  %v1910_v3 = vpop.f32.mrb[47].mxu1  ;;  %v1953_v11 = vpop.f32.mrb[35].mxu0  ;;  %v4009_v22 = vadd.f32 %v1908_v62, %v1693_v46  ;;  %v4014_v25 = vadd.f32 %v1951_v63, %v1701_v47 }
 0xfb4   :  { %v4000_v54 = vmul.f32 0.70710677, %v3991_v60  ;;  %v4006_v4 = vmul.f32 0.70710677, %v3993_v61  ;;  %v4016_v24 = vadd.f32 %v1910_v3, %v1697_v48  ;;  %v4026_v7 = vadd.f32 %v1953_v11, %v1705_v49 }
 0xfb5   :  { %v1988_v55 = vand.u32 2147483647, %v3995_v57  ;;  %v1990_v58 = vand.u32 2147483647, %v3997_v0  ;;  %v4012_v23 = vmul.f32 0.70710677, %v4009_v22 }
 0xfb6   :  { %v1989_v1 = vand.u32 2147483647, %v4000_v54  ;;  %v1991_v17 = vand.u32 2147483647, %v4006_v4  ;;  %v4020_v29 = vmul.f32 0.70710677, %v4014_v25 }
 0xfb7   :  { %v1996_v5 = vmul.f32 0.3275911, %v1988_v55  ;;  %v1998_v6 = vmul.f32 0.3275911, %v1990_v58  ;;  %v1992_v27 = vand.u32 2147483647, %v4012_v23 }
 0xfb8   :  { %v1997_v9 = vmul.f32 0.3275911, %v1989_v1  ;;  %v1999_v30 = vmul.f32 0.3275911, %v1991_v17  ;;  %v2092_v28 = vsub.f32 0.0, %v1988_v55  ;;  %v2094_v31 = vsub.f32 0.0, %v1990_v58 }
 0xfb9   :  { %v2004_v13 = vadd.f32 1.0, %v1996_v5  ;;  %v2006_v16 = vadd.f32 1.0, %v1998_v6  ;;  %v2000_v32 = vmul.f32 0.3275911, %v1992_v27  ;;  %v2093_v33 = vsub.f32 0.0, %v1989_v1 }
 0xfba   :  { %v2005_v19 = vadd.f32 1.0, %v1997_v9  ;;  %v2007_v26 = vadd.f32 1.0, %v1999_v30  ;;  %v1994_v34 = vand.u32 2147483647, %v4020_v29  ;;  %v4024_v56 = vmul.f32 0.70710677, %v4016_v24 }
 0xfbb   :  { %3106 = vrcp.f32 %v2004_v13  ;;  %v2008_v2 = vadd.f32 1.0, %v2000_v32  ;;  %v2100_v8 = vmul.f32 %v2092_v28, %v1988_v55  ;;  %v2102_v38 = vmul.f32 %v2094_v31, %v1990_v58 }
 0xfbc   :  { %3108 = vrcp.f32 %v2006_v16  ;;  %v2002_v35 = vmul.f32 0.3275911, %v1994_v34  ;;  %v4029_v36 = vand.u32 2147483647, %v4024_v56  ;;  %v2095_v10 = vsub.f32 0.0, %v1991_v17 }
 0xfbd   :  { %3110 = vrcp.f32 %v2005_v19  ;;  %v2101_v21 = vmul.f32 %v2093_v33, %v1989_v1  ;;  %v4037_v42 = vmul.f32 0.5, %v1905_v51  ;;  %v4039_v20 = vmul.f32 0.5, %v1948_v52 }
 0xfbe   :  { %3112 = vrcp.f32 %v2007_v26  ;;  %v2010_v40 = vadd.f32 1.0, %v2002_v35  ;;  %v2001_v41 = vmul.f32 0.3275911, %v4029_v36  ;;  %v4043_v44 = vmul.f32 0.70710677, %v4026_v7 }
 0xfbf   :  { %3114 = vrcp.f32 %v2008_v2  ;;  %v2108_v46 = vmul.f32 1.442695, %v2100_v8  ;;  %v2112_v50 = vmul.f32 1.442695, %v2102_v38  ;;  %v2103_v15 = vmul.f32 %v2095_v10, %v1991_v17 }
 0xfc0   :  { %3116 = vrcp.f32 %v2010_v40  ;;  %v2009_v47 = vadd.f32 1.0, %v2001_v41  ;;  %v4048_v53 = vand.u32 2147483647, %v4043_v44  ;;  %v2110_v59 = vmul.f32 1.442695, %v2101_v21 }
 0xfc1   :  { %v2096_v62 = vsub.f32 0.0, %v1992_v27  ;;  %v2098_v58 = vsub.f32 0.0, %v1994_v34  ;;  %v2114_v11 = vmul.f32 1.442695, %v2103_v15  ;;  %vm1972_vm8 = vcmp.ge.f32.partialorder %v3995_v57, 0.0 }
 0xfc2   :  { %3118 = vrcp.f32 %v2009_v47  ;;  %v2003_v1 = vmul.f32 0.3275911, %v4048_v53  ;;  %v2097_v38 = vsub.f32 0.0, %v4029_v36  ;;  %vm1974_vm9 = vcmp.ge.f32.partialorder %v3997_v0, 0.0 }
 0xfc3   :  { %3120 = vpow2.f32 %v2108_v46  ;;  %v2104_v28 = vmul.f32 %v2096_v62, %v1992_v27  ;;  %v2106_v31 = vmul.f32 %v2098_v58, %v1994_v34  ;;  %v2099_v62 = vsub.f32 0.0, %v4048_v53 }
 0xfc4   :  { %3122 = vpow2.f32 %v2112_v50  ;;  %v2011_v13 = vadd.f32 1.0, %v2003_v1  ;;  %vm1973_vm10 = vcmp.ge.f32.partialorder %v4000_v54, 0.0  ;;  %vm1976_vm11 = vcmp.ge.f32.partialorder %v4012_v23, 0.0 }
 0xfc5   :  { %v4031_v37 = vpop.eup %3106  ;;  %3124 = vpow2.f32 %v2110_v59  ;;  %v2116_v41 = vmul.f32 1.442695, %v2104_v28  ;;  %v2105_v59 = vmul.f32 %v2097_v38, %v4029_v36  ;;  %vm1978_vm12 = vcmp.ge.f32.partialorder %v4020_v29, 0.0 }
 0xfc6   :  { %v4033_v14 = vpop.eup %3108  ;;  %v2020_v39 = vmul.f32 1.0614054, %v4031_v37  ;;  %3126 = vrcp.f32 %v2011_v13  ;;  %vm1975_vm13 = vcmp.ge.f32.partialorder %v4006_v4, 0.0  ;;  %vm1977_vm14 = vcmp.ge.f32.partialorder %v4024_v56, 0.0 }
 0xfc7   :  { %v2022_v43 = vmul.f32 1.0614054, %v4033_v14  ;;  %v4045_v48 = vpop.eup %3110  ;;  %3128 = vpow2.f32 %v2114_v11  ;;  %vm1979_vm15 = vcmp.ge.f32.partialorder %v4043_v44, 0.0  ;;  %v1963_v44 = vmul.f32 0.5, %v4026_v7 }
 0xfc8   :  { %v2028_v45 = vadd.f32 -1.4531521, %v2020_v39  ;;  %v2021_v52 = vmul.f32 1.0614054, %v4045_v48  ;;  %v4052_v63 = vpop.eup %3112  ;;  %3130 = vpow2.f32 %v2116_v41 }
 0xfc9   :  { %v2030_v49 = vadd.f32 -1.4531521, %v2022_v43  ;;  %v2023_v6 = vmul.f32 1.0614054, %v4052_v63  ;;  %v4059_v30 = vpop.eup %3114 }
 0xfca   :  { %v2036_v51 = vmul.f32 %v4031_v37, %v2028_v45  ;;  %v2029_v5 = vadd.f32 -1.4531521, %v2021_v52  ;;  %v2024_v8 = vmul.f32 1.0614054, %v4059_v30  ;;  %v4066_v10 = vpop.eup %3116  ;;  %v2120_v45 = vmul.f32 1.442695, %v2106_v31 }
 0xfcb   :  { %v2038_v55 = vmul.f32 %v4033_v14, %v2030_v49  ;;  %v2031_v19 = vadd.f32 -1.4531521, %v2023_v6  ;;  %v2026_v43 = vmul.f32 1.0614054, %v4066_v10 }
 0xfcc   :  { %v2044_v3 = vadd.f32 1.4214138, %v2036_v51  ;;  %v2037_v17 = vmul.f32 %v4045_v48, %v2029_v5  ;;  %v2032_v21 = vadd.f32 -1.4531521, %v2024_v8  ;;  %v4074_v15 = vpop.eup %3118  ;;  %3132 = vpow2.f32 %v2120_v45 }
 0xfcd   :  { %v2046_v9 = vadd.f32 1.4214138, %v2038_v55  ;;  %v2039_v2 = vmul.f32 %v4052_v63, %v2031_v19  ;;  %v2034_v52 = vadd.f32 -1.4531521, %v2026_v43  ;;  %v3121_v55 = vpop.eup %3120  ;;  %v2025_v11 = vmul.f32 1.0614054, %v4074_v15 }
 0xfce   :  { %v2052_v16 = vmul.f32 %v4031_v37, %v2044_v3  ;;  %v2045_v33 = vadd.f32 1.4214138, %v2037_v17  ;;  %v2040_v50 = vmul.f32 %v4059_v30, %v2032_v21  ;;  %v3123_v6 = vpop.eup %3122  ;;  %v2118_v8 = vmul.f32 1.442695, %v2105_v59 }
 0xfcf   :  { %v2054_v26 = vmul.f32 %v4033_v14, %v2046_v9  ;;  %v2047_v34 = vadd.f32 1.4214138, %v2039_v2  ;;  %v2042_v9 = vmul.f32 %v4066_v10, %v2034_v52  ;;  %v3125_v13 = vpop.eup %3124 }
 0xfd0   :  { %v2060_v32 = vadd.f32 -0.28449672, %v2052_v16  ;;  %v2053_v27 = vmul.f32 %v4045_v48, %v2045_v33  ;;  %v2048_v5 = vadd.f32 1.4214138, %v2040_v50  ;;  %v4086_v19 = vpop.eup %3126  ;;  %3134 = vpow2.f32 %v2118_v8 }
 0xfd1   :  { %v2062_v35 = vadd.f32 -0.28449672, %v2054_v26  ;;  %v2055_v49 = vmul.f32 %v4052_v63, %v2047_v34  ;;  %v3490_v26 = vmov -1.0   ;;  %v2050_v31 = vadd.f32 1.4214138, %v2042_v9 }
 0xfd2   :  { %v2068_v39 = vmul.f32 %v4031_v37, %v2060_v32  ;;  %v2061_v47 = vadd.f32 -0.28449672, %v2053_v27  ;;  %v1980_v28 = vsel %vm1972_vm8, 1.0, %v3490_v26  ;;  %v2033_v32 = vadd.f32 -1.4531521, %v2025_v11 }
 0xfd3   :  { %v2070_v40 = vmul.f32 %v4033_v14, %v2062_v35  ;;  %v2063_v3 = vadd.f32 -0.28449672, %v2055_v49  ;;  %v3129_v35 = vpop.eup %3128  ;;  %v1982_v38 = vsel %vm1974_vm9, 1.0, %v3490_v26  ;;  %v2027_v57 = vmul.f32 1.0614054, %v4086_v19 }
 0xfd4   :  { %v2076_v46 = vadd.f32 0.2548296, %v2068_v39  ;;  %v2069_v1 = vmul.f32 %v4045_v48, %v2061_v47  ;;  %v2058_v39 = vmul.f32 %v4066_v10, %v2050_v31  ;;  %v2041_v27 = vmul.f32 %v4074_v15, %v2033_v32 }
 0xfd5   :  { %v2078_v51 = vadd.f32 0.2548296, %v2070_v40  ;;  %v2071_v17 = vmul.f32 %v4052_v63, %v2063_v3  ;;  %v1981_v54 = vsel %vm1973_vm10, 1.0, %v3490_v26  ;;  %v1984_v11 = vsel %vm1976_vm11, 1.0, %v3490_v26 }
 0xfd6   :  { %v2084_v58 = vmul.f32 %v4031_v37, %v2076_v46  ;;  %v2077_v16 = vadd.f32 0.2548296, %v2069_v1  ;;  %v2056_v37 = vmul.f32 %v4059_v30, %v2048_v5  ;;  %v2066_v43 = vadd.f32 -0.28449672, %v2058_v39 }
 0xfd7   :  { %v2086_v36 = vmul.f32 %v4033_v14, %v2078_v51  ;;  %v2107_v14 = vmul.f32 %v2099_v62, %v4048_v53  ;;  %v2079_v40 = vadd.f32 0.2548296, %v2071_v17  ;;  %v2049_v45 = vadd.f32 1.4214138, %v2041_v27  ;;  %v3131_v62 = vpop.eup %3130 }
 0xfd8   :  { %v2124_v33 = vmul.f32 %v3121_v55, %v2084_v58  ;;  %v2064_v2 = vadd.f32 -0.28449672, %v2056_v37  ;;  %v2085_v21 = vmul.f32 %v4045_v48, %v2077_v16  ;;  %v2035_v53 = vadd.f32 -1.4531521, %v2027_v57  ;;  %v3133_v9 = vpop.eup %3132 }
 0xfd9   :  { %v2126_v34 = vmul.f32 %v3123_v6, %v2086_v36  ;;  %v2122_v0 = vmul.f32 1.442695, %v2107_v14  ;;  %v2074_v49 = vmul.f32 %v4066_v10, %v2066_v43  ;;  %v2057_v50 = vmul.f32 %v4074_v15, %v2049_v45 }
 0xfda   :  { %v2072_v41 = vmul.f32 %v4059_v30, %v2064_v2  ;;  %v2132_v46 = vsub.f32 1.0, %v2124_v33  ;;  %v2043_v51 = vmul.f32 %v4086_v19, %v2035_v53  ;;  %v2125_v48 = vmul.f32 %v3125_v13, %v2085_v21  ;;  %v3135_v39 = vpop.eup %3134 }
 0xfdb   :  { %v2134_v52 = vsub.f32 1.0, %v2126_v34  ;;  %v2087_v55 = vmul.f32 %v4052_v63, %v2079_v40  ;;  %v2082_v58 = vadd.f32 0.2548296, %v2074_v49  ;;  %v2065_v1 = vadd.f32 -0.28449672, %v2057_v50 }
 0xfdc   :  { %v2080_v47 = vadd.f32 0.2548296, %v2072_v41  ;;  %v2051_v3 = vadd.f32 1.4214138, %v2043_v51  ;;  %v2140_v5 = vmul.f32 %v2132_v46, %v1980_v28  ;;  %3136 = vpow2.f32 %v2122_v0 }
 0xfdd   :  { %v2090_v13 = vmul.f32 %v4066_v10, %v2082_v58  ;;  %v2073_v23 = vmul.f32 %v4074_v15, %v2065_v1  ;;  %v2142_v36 = vmul.f32 %v2134_v52, %v1982_v38  ;;  %v2133_v16 = vsub.f32 1.0, %v2125_v48 }
 0xfde   :  { %v2088_v59 = vmul.f32 %v4059_v30, %v2080_v47  ;;  %v2059_v30 = vmul.f32 %v4086_v19, %v2051_v3  ;;  %v2127_v17 = vmul.f32 %v3129_v35, %v2087_v55  ;;  %v2148_v32 = vadd.f32 1.0, %v2140_v5 }
 0xfdf   :  { %v2130_v37 = vmul.f32 %v3133_v9, %v2090_v13  ;;  %v2081_v28 = vadd.f32 0.2548296, %v2073_v23  ;;  %v1960_v33 = vmul.f32 0.5, %v4009_v22  ;;  %v1986_v10 = vsel %vm1978_vm12, 1.0, %v3490_v26  ;;  %v2649_v13 = vld [vmem:[#allocation24] ss:$0 sm:$0xff] }
 0xfe0   :  { %v2128_v6 = vmul.f32 %v3131_v62, %v2088_v59  ;;  %v2067_v31 = vadd.f32 -0.28449672, %v2059_v30  ;;  %v2150_v27 = vadd.f32 1.0, %v2142_v36  ;;  %v2141_v29 = vmul.f32 %v2133_v16, %v1981_v54 }
 0xfe1   :  { %v2138_v8 = vsub.f32 1.0, %v2130_v37  ;;  %v2089_v14 = vmul.f32 %v4074_v15, %v2081_v28  ;;  %v2135_v57 = vsub.f32 1.0, %v2127_v17  ;;  %v2156_v22 = vmul.f32 %v2148_v32, %v4037_v42 }
 0xfe2   :  { %v2136_v63 = vsub.f32 1.0, %v2128_v6  ;;  %v2075_v38 = vmul.f32 %v4086_v19, %v2067_v31  ;;  %v1983_v41 = vsel %vm1975_vm13, 1.0, %v3490_v26  ;;  %v1962_v15 = vmul.f32 0.5, %v4014_v25 }
 0xfe3   :  { %v2146_v34 = vmul.f32 %v2138_v8, %v1986_v10  ;;  %v2129_v21 = vmul.f32 %v3135_v39, %v2089_v14  ;;  %v1985_v53 = vsel %vm1977_vm14, 1.0, %v3490_v26  ;;  %v2158_v0 = vmul.f32 %v2150_v27, %v4039_v20 }
 0xfe4   :  { %v2144_v2 = vmul.f32 %v2136_v63, %v1984_v11  ;;  %v2083_v40 = vadd.f32 0.2548296, %v2075_v38  ;;  %v2149_v49 = vadd.f32 1.0, %v2141_v29  ;;  %v2143_v42 = vmul.f32 %v2135_v57, %v1983_v41 }
 0xfe5   :  { %v2154_v45 = vadd.f32 1.0, %v2146_v34  ;;  %v2137_v46 = vsub.f32 1.0, %v2129_v21  ;;  %v1957_v48 = vmul.f32 0.5, %v3991_v60  ;;  %v1961_v59 = vmul.f32 0.5, %v4016_v24 }
 0xfe6   :  { %v2152_v35 = vadd.f32 1.0, %v2144_v2  ;;  %v2091_v47 = vmul.f32 %v4086_v19, %v2083_v40  ;;  %v3137_v56 = vpop.eup %3136  ;;  %v1987_v19 = vsel %vm1979_vm15, 1.0, %v3490_v26  ;;  %v2151_v1 = vadd.f32 1.0, %v2143_v42 }
 0xfe7   :  { %v2162_v51 = vmul.f32 %v2154_v45, %v1962_v15  ;;  %v2145_v4 = vmul.f32 %v2137_v46, %v1985_v53  ;;  %v2157_v58 = vmul.f32 %v2149_v49, %v1957_v48  ;;  %v1959_v5 = vmul.f32 0.5, %v3993_v61 }
 0xfe8   :  { %v2160_v43 = vmul.f32 %v2152_v35, %v1960_v33  ;;  %v2131_v52 = vmul.f32 %v3137_v56, %v2091_v47 }
 0xfe9   :  { %v2166_v25 = vpack.c.bf16 %v2162_v51, %v2158_v0  ;;  %v2153_v62 = vadd.f32 1.0, %v2145_v4  ;;  %v2159_v9 = vmul.f32 %v2151_v1, %v1959_v5 }
 0xfea   :  { %v2164_v50 = vpack.c.bf16 %v2160_v43, %v2156_v22  ;;  %v2139_v55 = vsub.f32 1.0, %v2131_v52 }
 0xfeb   :  { %v2161_v20 = vmul.f32 %v2153_v62, %v1961_v59 }
 0xfec   :  { %v2147_v3 = vmul.f32 %v2139_v55, %v1987_v19 }
 0xfed   :  { %v2165_v6 = vpack.c.bf16 %v2161_v20, %v2157_v58 }
 0xfee   :  { %v2155_v54 = vadd.f32 1.0, %v2147_v3 }
 0xfef   :  { %2463 = vmatprep.mubr.bf16.mxu1 %v2165_v6 }
 0xff0   :  { %v2163_v11 = vmul.f32 %v2155_v54, %v1963_v44  ;;  %2464 = vmatmul.mubr.bf16.vlgmr.msra.gmra.mrb[48].mxu1 %v2164_v50 }
 0xff2   :  { %v2167_v60 = vpack.c.bf16 %v2163_v11, %v2159_v9 }
 0xff4   :  { %2504 = vmatprep.mubr.bf16.mxu0 %v2167_v60 }
 0xff5   :  { %2505 = vmatmul.mubr.bf16.vlgmr.msra.gmra.mrb[36].mxu0 %v2166_v25 }
0x10c3   :  { %v2754_v24 = vpop.f32.mrb[48].mxu1 }
0x10c4   :  { %v2755_v26 = vpop.f32.mrb[49].mxu1 }
0x10c5   :  { %v2756_v23 = vadd.f32 %v2755_v26, %v2754_v24  ;;  %v2757_v30 = vpop.f32.mrb[50].mxu1 }
0x10c6   :  { %v2758_v36 = vpop.f32.mrb[51].mxu1 }
0x10c7   :  { %v2466_v63 = vadd.f32 %v2756_v23, %v2649_v13  ;;  %v2759_v61 = vadd.f32 %v2758_v36, %v2757_v30 }
0x10c8   :  { %v2776_v16 = vpop.f32.mrb[36].mxu0 }
0x10c9   :  { %v2777_v17 = vpop.f32.mrb[37].mxu0  ;;  %v2469_v28 = vadd.f32 %v2759_v61, %v2649_v13 }
0x10ca   :  { %v2778_v7 = vadd.f32 %v2777_v17, %v2776_v16  ;;  %v2779_v37 = vpop.f32.mrb[38].mxu0 }
0x10cb   :  { %v2780_v31 = vpop.f32.mrb[39].mxu0 }
0x10cc   :  { %v2507_v32 = vadd.f32 %v2778_v7, %v2466_v63  ;;  %v2781_v33 = vadd.f32 %v2780_v31, %v2779_v37 }
0x10ce   :  { %v2513_v2 = vadd.f32 %v2507_v32, %v3966_v12  ;;  %v2510_v10 = vadd.f32 %v2781_v33, %v2469_v28 }
0x10d0   :  { %2515 = vst [vmem:[#allocation25] sm:$0xff] %v2513_v2  ;;  %v2514_v8 = vadd.f32 %v2510_v10, %v3968_v18 }
0x10d2   :  { %2516 = vst [vmem:[#allocation25 + $0x8] sm:$0xff] %v2514_v8 }
0x10d3   :  { %3437 = shalt.err (!%p3434_p10)
}
0x10d4   :  { %s3438_s19 = scalar_lea.hbm %s4163_s13, 256 }
0x10d5   :  { %p3439_p11 = scmp.ne.s32.totalorder %s4163_s13, %s3438_s19  ;;  %p3442_p12 = scmp.lt.u32.totalorder %s3438_s19, %s4163_s13 }
0x10d7   :  { %p3444_p13 = pnand %p3442_p12, %p3439_p11 }
0x10d9   :  { %3447 = shalt.err (!%p3444_p13)
}
0x10da   :  { %2528 = dma.vmem_to_hbm [thread:$0]  %s2523_s16, 256, %s4163_s13, [#allocation6], %s3477_s11, %s3477_s11, %s3478_s28  }
0x10db   :  { %3462 = dma.done.wait [#allocation6], 256  }
0x10dc   :  { %3463 = vsyncadd [#allocation6], 4294967040 }
0x10dd   :  { %2532 = vsyncpa [#allocation5], 1 }
0x10de   :  { %2533 = vsyncpa [#allocation8], 1 }
0x10df   :  { %2534 = vsyncpa [#allocation11], 1 }
0x10e0   :  { %2535 = vsyncpa [#allocation14], 1 }
0x10e1   :  { %2536 = vsyncpa [#allocation17], 1 }
0x10e2   :  { %2537 = vsyncpa [#allocation20], 1 }
0x10e3   :  { %2538 = vsyncpa [#allocation23], 1 }
0x10e4   :  { %2539 = vsyncpa [#allocation6], 1 }

// kernel: tpu_custom_call.1
= control target key start
LH: loop header
LB: loop body
LE: loop exit
PB: predicated region body
PF: predicated region fallthrough
CT: control target
= control target key end

     0   :  { %18 = vsyncpa [#allocation5], 0  ;;  %s4150_s0 = inlined_call_operand.hbm [shape: f32[2,8,128], index: 0, kind: input, shape index: {}]   ;;  %s4151_s1 = inlined_call_operand.hbm [shape: f32[1,128], index: 1, kind: input, shape index: {}]   ;;  %s4152_s2 = inlined_call_operand.hbm [shape: f32[1,128], index: 2, kind: input, shape index: {}]   ;;  %s4153_s3 = inlined_call_operand.hbm [shape: bf16[128,384], index: 3, kind: input, shape index: {}]   ;;  %s4154_s4 = inlined_call_operand.hbm [shape: f32[1,384], index: 4, kind: input, shape index: {}]   ;;  %s4155_s5 = inlined_call_operand.hbm [shape: bf16[128,128], index: 5, kind: input, shape index: {}]   ;;  %s4156_s6 = inlined_call_operand.hbm [shape: f32[1,128], index: 6, kind: input, shape index: {}]   ;;  %s4157_s7 = inlined_call_operand.hbm [shape: f32[1,128], index: 7, kind: input, shape index: {}]   ;;  %s4158_s8 = inlined_call_operand.hbm [shape: f32[1,128], index: 8, kind: input, shape index: {}]   ;;  %s4159_s9 = inlined_call_operand.hbm [shape: bf16[128,512], index: 9, kind: input, shape index: {}]   ;;  %s4160_s10 = inlined_call_operand.hbm [shape: f32[1,512], index: 10, kind: input, shape index: {}]   ;;  %s4161_s11 = inlined_call_operand.hbm [shape: bf16[512,128], index: 11, kind: input, shape index: {}]   ;;  %s4162_s12 = inlined_call_operand.hbm [shape: f32[1,128], index: 12, kind: input, shape index: {}]   ;;  %s4163_s13 = inlined_call_operand.hbm [shape: f32[2,8,128], index: 13, kind: output, shape index: {}]  }
   0x1   :  { %19 = vsyncpa [#allocation8], 0 }
   0x2   :  { %20 = vsyncpa [#allocation11], 0 }
   0x3   :  { %21 = vsyncpa [#allocation14], 0 }
   0x4   :  { %22 = vsyncpa [#allocation17], 0 }
   0x5   :  { %23 = vsyncpa [#allocation20], 0 }
   0x6   :  { %24 = vsyncpa [#allocation23], 0 }
   0x7   :  { %25 = vsyncpa [#allocation6], 0  ;;  %s3464_s25 = smov [#allocation7]   ;;  %s3465_s27 = smov [#allocation10]  }
   0x8   :  { %s44_s26 = sshll.u32 %s3464_s25, 4  ;;  %s63_s28 = sshll.u32 %s3465_s27, 4  ;;  %s45_s26 = int_to_ptr.vmem [resolvable:$true] %s44_s26  ;;  %s3562_s28 = int_to_ptr.vmem [resolvable:$true] %s63_s28 }
   0x9   :  { %s3140_s14 = scalar_lea.hbm %s4151_s1, 16 }
   0xa   :  { %p3141_p0 = scmp.ne.s32.totalorder %s4151_s1, %s3140_s14  ;;  %p3144_p1 = scmp.lt.u32.totalorder %s3140_s14, %s4151_s1 }
   0xc   :  { %p3146_p2 = pnand %p3144_p1, %p3141_p0 }
   0xe   :  { %3149 = shalt.err (!%p3146_p2)
}
   0xf   :  { %s3150_s19 = scalar_lea.vmem %s45_s26, 16  ;;  %s3154_s20 = scalar_lea.vmem %s45_s26, 32 }
  0x10   :  { %p3151_p3 = scmp.ne.s32.totalorder %s45_s26, %s3150_s19  ;;  %p3155_p4 = scmp.lt.s32.totalorder %s45_s26, %s45_s26 }
  0x11   :  { %p3156_p5 = scmp.lt.s32.totalorder %s3154_s20, %s3150_s19 }
  0x13   :  { %p3157_p6 = por %p3156_p5, %p3155_p4 }
  0x15   :  { %p3158_p7 = pnand %p3157_p6, %p3151_p3 }
  0x17   :  { %3161 = shalt.err (!%p3158_p7)
}
  0x18   :  { %47 = dma.hbm_to_vmem [thread:$0]  %s4151_s1, 16, %s45_s26, [#allocation8]  }
  0x19   :  { %s3162_s25 = scalar_lea.hbm %s4153_s3, 3072 }
  0x1a   :  { %p3163_p8 = scmp.ne.s32.totalorder %s4153_s3, %s3162_s25  ;;  %p3166_p9 = scmp.lt.u32.totalorder %s3162_s25, %s4153_s3 }
  0x1c   :  { %p3168_p10 = pnand %p3166_p9, %p3163_p8 }
  0x1e   :  { %3171 = shalt.err (!%p3168_p10)
}
  0x1f   :  { %s3172_s15 = scalar_lea.vmem %s3562_s28, 3072  ;;  %p3177_p12 = scmp.lt.s32.totalorder %s3562_s28, %s3562_s28 }
  0x20   :  { %p3173_p11 = scmp.ne.s32.totalorder %s3562_s28, %s3172_s15  ;;  %p3178_p13 = scmp.lt.s32.totalorder %s3172_s15, %s3172_s15 }
  0x22   :  { %p3179_p0 = por %p3178_p13, %p3177_p12 }
  0x24   :  { %p3180_p1 = pnand %p3179_p0, %p3173_p11 }
  0x26   :  { %3183 = shalt.err (!%p3180_p1)
}
  0x27   :  { %s3466_s1 = smov 192   ;;  %s3467_s26 = smov 12  }
  0x28   :  { %69 = dma.hbm_to_vmem [thread:$0]  %s4153_s3, 3072, %s3562_s28, [#allocation11], %s3466_s1, %s3466_s1, %s3467_s26  }
  0x29   :  { %s3468_s18 = smov [#allocation13]   ;;  %s3184_s22 = scalar_lea.hbm %s4155_s5, 1024 }
  0x2a   :  { %s85_s19 = sshll.u32 %s3468_s18, 4  ;;  %p3185_p2 = scmp.ne.s32.totalorder %s4155_s5, %s3184_s22  ;;  %s86_s19 = int_to_ptr.vmem [resolvable:$true] %s85_s19 }
  0x2b   :  { %p3188_p3 = scmp.lt.u32.totalorder %s3184_s22, %s4155_s5 }
  0x2d   :  { %p3190_p4 = pnand %p3188_p3, %p3185_p2 }
  0x2f   :  { %3193 = shalt.err (!%p3190_p4)
}
  0x30   :  { %s3194_s29 = scalar_lea.vmem %s86_s19, 1024  ;;  %p3199_p6 = scmp.lt.s32.totalorder %s86_s19, %s86_s19 }
  0x31   :  { %p3195_p5 = scmp.ne.s32.totalorder %s86_s19, %s3194_s29  ;;  %p3200_p7 = scmp.lt.s32.totalorder %s3194_s29, %s3194_s29 }
  0x33   :  { %p3201_p8 = por %p3200_p7, %p3199_p6 }
  0x35   :  { %p3202_p9 = pnand %p3201_p8, %p3195_p5 }
  0x37   :  { %3205 = shalt.err (!%p3202_p9)
}
  0x38   :  { %s3469_s3 = smov 64   ;;  %s3470_s28 = smov 4  }
  0x39   :  { %91 = dma.hbm_to_vmem [thread:$0]  %s4155_s5, 1024, %s86_s19, [#allocation14], %s3469_s3, %s3469_s3, %s3470_s28  }
  0x3a   :  { %s3471_s15 = smov [#allocation16]   ;;  %s3472_s26 = smov [#allocation19]  }
  0x3b   :  { %s108_s1 = sshll.u32 %s3471_s15, 4  ;;  %s127_s16 = sshll.u32 %s3472_s26, 4  ;;  %s109_s1 = int_to_ptr.vmem [resolvable:$true] %s108_s1  ;;  %s128_s16 = int_to_ptr.vmem [resolvable:$true] %s127_s16 }
  0x3c   :  { %s3206_s20 = scalar_lea.hbm %s4157_s7, 16 }
  0x3d   :  { %p3207_p10 = scmp.ne.s32.totalorder %s4157_s7, %s3206_s20  ;;  %p3210_p11 = scmp.lt.u32.totalorder %s3206_s20, %s4157_s7 }
  0x3f   :  { %p3212_p12 = pnand %p3210_p11, %p3207_p10 }
  0x41   :  { %3215 = shalt.err (!%p3212_p12)
}
  0x42   :  { %s3216_s5 = scalar_lea.vmem %s109_s1, 16  ;;  %s3220_s19 = scalar_lea.vmem %s109_s1, 32 }
  0x43   :  { %p3217_p13 = scmp.ne.s32.totalorder %s109_s1, %s3216_s5  ;;  %p3221_p0 = scmp.lt.s32.totalorder %s109_s1, %s109_s1 }
  0x44   :  { %p3222_p1 = scmp.lt.s32.totalorder %s3220_s19, %s3216_s5 }
  0x46   :  { %p3223_p2 = por %p3222_p1, %p3221_p0 }
  0x48   :  { %p3224_p3 = pnand %p3223_p2, %p3217_p13 }
  0x4a   :  { %3227 = shalt.err (!%p3224_p3)
}
  0x4b   :  { %111 = dma.hbm_to_vmem [thread:$0]  %s4157_s7, 16, %s109_s1, [#allocation17]  }
  0x4c   :  { %s3228_s14 = scalar_lea.hbm %s4159_s9, 4096 }
  0x4d   :  { %p3229_p4 = scmp.ne.s32.totalorder %s4159_s9, %s3228_s14  ;;  %p3232_p5 = scmp.lt.u32.totalorder %s3228_s14, %s4159_s9 }
  0x4f   :  { %p3234_p6 = pnand %p3232_p5, %p3229_p4 }
  0x51   :  { %3237 = shalt.err (!%p3234_p6)
}
  0x52   :  { %s3238_s20 = scalar_lea.vmem %s128_s16, 4096  ;;  %p3243_p8 = scmp.lt.s32.totalorder %s128_s16, %s128_s16 }
  0x53   :  { %p3239_p7 = scmp.ne.s32.totalorder %s128_s16, %s3238_s20  ;;  %p3244_p9 = scmp.lt.s32.totalorder %s3238_s20, %s3238_s20 }
  0x55   :  { %p3245_p10 = por %p3244_p9, %p3243_p8 }
  0x57   :  { %p3246_p11 = pnand %p3245_p10, %p3239_p7 }
  0x59   :  { %3249 = shalt.err (!%p3246_p11)
}
  0x5a   :  { %s3473_s7 = smov 256   ;;  %s3474_s1 = smov 16  }
  0x5b   :  { %133 = dma.hbm_to_vmem [thread:$0]  %s4159_s9, 4096, %s128_s16, [#allocation20], %s3473_s7, %s3473_s7, %s3474_s1  }
  0x5c   :  { %s3475_s23 = smov [#allocation22]   ;;  %s3476_s5 = smov [#allocation4]  }
  0x5d   :  { %s149_s24 = sshll.u32 %s3475_s23, 4  ;;  %s31_s19 = sshll.u32 %s3476_s5, 4  ;;  %s150_s24 = int_to_ptr.vmem [resolvable:$true] %s149_s24  ;;  %s32_s19 = int_to_ptr.vmem [resolvable:$true] %s31_s19 }
  0x5e   :  { %s3250_s29 = scalar_lea.hbm %s4161_s11, 4096 }
  0x5f   :  { %p3251_p12 = scmp.ne.s32.totalorder %s4161_s11, %s3250_s29  ;;  %p3254_p13 = scmp.lt.u32.totalorder %s3250_s29, %s4161_s11 }
  0x61   :  { %p3256_p0 = pnand %p3254_p13, %p3251_p12 }
  0x63   :  { %3259 = shalt.err (!%p3256_p0)
}
  0x64   :  { %s3260_s9 = scalar_lea.vmem %s150_s24, 4096  ;;  %p3265_p2 = scmp.lt.s32.totalorder %s150_s24, %s150_s24 }
  0x65   :  { %p3261_p1 = scmp.ne.s32.totalorder %s150_s24, %s3260_s9  ;;  %p3266_p3 = scmp.lt.s32.totalorder %s3260_s9, %s3260_s9 }
  0x67   :  { %p3267_p4 = por %p3266_p3, %p3265_p2 }
  0x69   :  { %p3268_p5 = pnand %p3267_p4, %p3261_p1 }
  0x6b   :  { %3271 = shalt.err (!%p3268_p5)
}
  0x6c   :  { %155 = dma.hbm_to_vmem [thread:$0]  %s4161_s11, 4096, %s150_s24, [#allocation23], %s3469_s3, %s3469_s3, %s3470_s28  }
  0x6d   :  { %s3272_s7 = scalar_lea.hbm %s4150_s0, 256 }
  0x6e   :  { %p3273_p6 = scmp.ne.s32.totalorder %s4150_s0, %s3272_s7  ;;  %p3276_p7 = scmp.lt.u32.totalorder %s3272_s7, %s4150_s0 }
  0x70   :  { %p3278_p8 = pnand %p3276_p7, %p3273_p6 }
  0x72   :  { %3281 = shalt.err (!%p3278_p8)
}
  0x73   :  { %s3282_s5 = scalar_lea.vmem %s32_s19, 256  ;;  %p3287_p10 = scmp.lt.s32.totalorder %s32_s19, %s32_s19 }
  0x74   :  { %p3283_p9 = scmp.ne.s32.totalorder %s32_s19, %s3282_s5  ;;  %p3288_p11 = scmp.lt.s32.totalorder %s3282_s5, %s3282_s5 }
  0x76   :  { %p3289_p12 = por %p3288_p11, %p3287_p10 }
  0x78   :  { %p3290_p13 = pnand %p3289_p12, %p3283_p9 }
  0x7a   :  { %3293 = shalt.err (!%p3290_p13)
}
  0x7b   :  { %s3477_s11 = smov 128   ;;  %s3478_s28 = smov 8  }
  0x7c   :  { %37 = dma.hbm_to_vmem [thread:$0]  %s4150_s0, 256, %s32_s19, [#allocation5], %s3477_s11, %s3477_s11, %s3478_s28  }
  0x7d   :  { %s3479_s27 = smov [#allocation9]   ;;  %s3480_s30 = smov [#allocation12]  }
  0x7e   :  { %s54_s29 = sshll.u32 %s3479_s27, 4  ;;  %s76_s14 = sshll.u32 %s3480_s30, 4  ;;  %s55_s29 = int_to_ptr.vmem [resolvable:$true] %s54_s29  ;;  %s77_s14 = int_to_ptr.vmem [resolvable:$true] %s76_s14 }
  0x7f   :  { %s3294_s9 = scalar_lea.hbm %s4152_s2, 16 }
  0x80   :  { %p3295_p0 = scmp.ne.s32.totalorder %s4152_s2, %s3294_s9  ;;  %p3298_p1 = scmp.lt.u32.totalorder %s3294_s9, %s4152_s2 }
  0x82   :  { %p3300_p2 = pnand %p3298_p1, %p3295_p0 }
  0x84   :  { %3303 = shalt.err (!%p3300_p2)
}
  0x85   :  { %s3304_s0 = scalar_lea.vmem %s55_s29, 16  ;;  %s3308_s19 = scalar_lea.vmem %s55_s29, 32 }
  0x86   :  { %p3305_p3 = scmp.ne.s32.totalorder %s55_s29, %s3304_s0  ;;  %p3309_p4 = scmp.lt.s32.totalorder %s55_s29, %s55_s29 }
  0x87   :  { %p3310_p5 = scmp.lt.s32.totalorder %s3308_s19, %s3304_s0 }
  0x89   :  { %p3311_p6 = por %p3310_p5, %p3309_p4 }
  0x8b   :  { %p3312_p7 = pnand %p3311_p6, %p3305_p3 }
  0x8d   :  { %3315 = shalt.err (!%p3312_p7)
}
  0x8e   :  { %57 = dma.hbm_to_vmem [thread:$0]  %s4152_s2, 16, %s55_s29, [#allocation8]  }
  0x8f   :  { %s3316_s23 = scalar_lea.hbm %s4154_s4, 48 }
  0x90   :  { %p3317_p8 = scmp.ne.s32.totalorder %s4154_s4, %s3316_s23  ;;  %p3320_p9 = scmp.lt.u32.totalorder %s3316_s23, %s4154_s4 }
  0x92   :  { %p3322_p10 = pnand %p3320_p9, %p3317_p8 }
  0x94   :  { %3325 = shalt.err (!%p3322_p10)
}
  0x95   :  { %s3326_s30 = scalar_lea.vmem %s77_s14, 48  ;;  %s3330_s15 = scalar_lea.vmem %s77_s14, 64 }
  0x96   :  { %p3327_p11 = scmp.ne.s32.totalorder %s77_s14, %s3326_s30  ;;  %p3331_p12 = scmp.lt.s32.totalorder %s77_s14, %s77_s14 }
  0x97   :  { %p3332_p13 = scmp.lt.s32.totalorder %s3330_s15, %s3326_s30 }
  0x99   :  { %p3333_p0 = por %p3332_p13, %p3331_p12 }
  0x9b   :  { %p3334_p1 = pnand %p3333_p0, %p3327_p11 }
  0x9d   :  { %3337 = shalt.err (!%p3334_p1)
}
  0x9e   :  { %79 = dma.hbm_to_vmem [thread:$0]  %s4154_s4, 48, %s77_s14, [#allocation11]  }
  0x9f   :  { %s3481_s26 = smov [#allocation15]   ;;  %s3482_s16 = smov [#allocation18]  }
  0xa0   :  { %s98_s9 = sshll.u32 %s3481_s26, 4  ;;  %s118_s17 = sshll.u32 %s3482_s16, 4  ;;  %s99_s9 = int_to_ptr.vmem [resolvable:$true] %s98_s9  ;;  %s119_s17 = int_to_ptr.vmem [resolvable:$true] %s118_s17 }
  0xa1   :  { %s3338_s0 = scalar_lea.hbm %s4156_s6, 16 }
  0xa2   :  { %p3339_p2 = scmp.ne.s32.totalorder %s4156_s6, %s3338_s0  ;;  %p3342_p3 = scmp.lt.u32.totalorder %s3338_s0, %s4156_s6 }
  0xa4   :  { %p3344_p4 = pnand %p3342_p3, %p3339_p2 }
  0xa6   :  { %3347 = shalt.err (!%p3344_p4)
}
  0xa7   :  { %s3348_s4 = scalar_lea.vmem %s99_s9, 16  ;;  %s3352_s14 = scalar_lea.vmem %s99_s9, 32 }
  0xa8   :  { %p3349_p5 = scmp.ne.s32.totalorder %s99_s9, %s3348_s4  ;;  %p3353_p6 = scmp.lt.s32.totalorder %s99_s9, %s99_s9 }
  0xa9   :  { %p3354_p7 = scmp.lt.s32.totalorder %s3352_s14, %s3348_s4 }
  0xab   :  { %p3355_p8 = por %p3354_p7, %p3353_p6 }
  0xad   :  { %p3356_p9 = pnand %p3355_p8, %p3349_p5 }
  0xaf   :  { %3359 = shalt.err (!%p3356_p9)
}
  0xb0   :  { %101 = dma.hbm_to_vmem [thread:$0]  %s4156_s6, 16, %s99_s9, [#allocation14]  }
  0xb1   :  { %s3360_s25 = scalar_lea.hbm %s4158_s8, 16 }
  0xb2   :  { %p3361_p10 = scmp.ne.s32.totalorder %s4158_s8, %s3360_s25  ;;  %p3364_p11 = scmp.lt.u32.totalorder %s3360_s25, %s4158_s8 }
  0xb4   :  { %p3366_p12 = pnand %p3364_p11, %p3361_p10 }
  0xb6   :  { %3369 = shalt.err (!%p3366_p12)
}
  0xb7   :  { %s3370_s29 = scalar_lea.vmem %s119_s17, 16  ;;  %s3374_s26 = scalar_lea.vmem %s119_s17, 32 }
  0xb8   :  { %p3371_p13 = scmp.ne.s32.totalorder %s119_s17, %s3370_s29  ;;  %p3375_p0 = scmp.lt.s32.totalorder %s119_s17, %s119_s17 }
  0xb9   :  { %p3376_p1 = scmp.lt.s32.totalorder %s3374_s26, %s3370_s29 }
  0xbb   :  { %p3377_p2 = por %p3376_p1, %p3375_p0 }
  0xbd   :  { %p3378_p3 = pnand %p3377_p2, %p3371_p13 }
  0xbf   :  { %3381 = shalt.err (!%p3378_p3)
}
  0xc0   :  { %121 = dma.hbm_to_vmem [thread:$0]  %s4158_s8, 16, %s119_s17, [#allocation17]  }
  0xc1   :  { %s3483_s16 = smov [#allocation21]   ;;  %s3484_s20 = smov [#allocation24]  }
  0xc2   :  { %s140_s18 = sshll.u32 %s3483_s16, 4  ;;  %s162_s0 = sshll.u32 %s3484_s20, 4  ;;  %s141_s18 = int_to_ptr.vmem [resolvable:$true] %s140_s18  ;;  %s163_s0 = int_to_ptr.vmem [resolvable:$true] %s162_s0 }
  0xc3   :  { %s3382_s1 = scalar_lea.hbm %s4160_s10, 64 }
  0xc4   :  { %p3383_p4 = scmp.ne.s32.totalorder %s4160_s10, %s3382_s1  ;;  %p3386_p5 = scmp.lt.u32.totalorder %s3382_s1, %s4160_s10 }
  0xc6   :  { %p3388_p6 = pnand %p3386_p5, %p3383_p4 }
  0xc8   :  { %3391 = shalt.err (!%p3388_p6)
}
  0xc9   :  { %s3392_s8 = scalar_lea.vmem %s141_s18, 64  ;;  %p3397_p8 = scmp.lt.s32.totalorder %s141_s18, %s141_s18 }
  0xca   :  { %p3393_p7 = scmp.ne.s32.totalorder %s141_s18, %s3392_s8  ;;  %p3398_p9 = scmp.lt.s32.totalorder %s3392_s8, %s3392_s8 }
  0xcc   :  { %p3399_p10 = por %p3398_p9, %p3397_p8 }
  0xce   :  { %p3400_p11 = pnand %p3399_p10, %p3393_p7 }
  0xd0   :  { %3403 = shalt.err (!%p3400_p11)
}
  0xd1   :  { %143 = dma.hbm_to_vmem [thread:$0]  %s4160_s10, 64, %s141_s18, [#allocation20]  }
  0xd2   :  { %s3404_s25 = scalar_lea.hbm %s4162_s12, 16 }
  0xd3   :  { %p3405_p12 = scmp.ne.s32.totalorder %s4162_s12, %s3404_s25  ;;  %p3408_p13 = scmp.lt.u32.totalorder %s3404_s25, %s4162_s12 }
  0xd5   :  { %p3410_p0 = pnand %p3408_p13, %p3405_p12 }
  0xd7   :  { %3413 = shalt.err (!%p3410_p0)
}
  0xd8   :  { %s3414_s29 = scalar_lea.vmem %s163_s0, 16  ;;  %s3418_s26 = scalar_lea.vmem %s163_s0, 32 }
  0xd9   :  { %p3415_p1 = scmp.ne.s32.totalorder %s163_s0, %s3414_s29  ;;  %p3419_p2 = scmp.lt.s32.totalorder %s163_s0, %s163_s0 }
  0xda   :  { %p3420_p3 = scmp.lt.s32.totalorder %s3418_s26, %s3414_s29 }
  0xdc   :  { %p3421_p4 = por %p3420_p3, %p3419_p2 }
  0xde   :  { %p3422_p5 = pnand %p3421_p4, %p3415_p1 }
  0xe0   :  { %3425 = shalt.err (!%p3422_p5)
}
  0xe1   :  { %165 = dma.hbm_to_vmem [thread:$0]  %s4162_s12, 16, %s163_s0, [#allocation23]  }
  0xe2   :  { %3448 = dma.done.wait [#allocation5], 256  }
  0xe3   :  { %3449 = vsyncadd [#allocation5], 4294967040 }
  0xe4   :  { %3450 = dma.done.wait [#allocation8], 32  }
  0xe5   :  { %3451 = vsyncadd [#allocation8], 4294967264 }
  0xe6   :  { %3452 = dma.done.wait [#allocation11], 3120  }
  0xe7   :  { %3453 = vsyncadd [#allocation11], 4294964176 }
  0xe8   :  { %3454 = dma.done.wait [#allocation14], 1040  }
  0xe9   :  { %3455 = vsyncadd [#allocation14], 4294966256 }
  0xea   :  { %3456 = dma.done.wait [#allocation17], 32  }
  0xeb   :  { %3457 = vsyncadd [#allocation17], 4294967264 }
  0xec   :  { %3458 = dma.done.wait [#allocation20], 4160  }
  0xed   :  { %3459 = vsyncadd [#allocation20], 4294963136 }
  0xee   :  { %3460 = dma.done.wait [#allocation23], 4112  }
  0xef   :  { %3461 = vsyncadd [#allocation23], 4294963184  ;;  %v206_v0 = vld [vmem:[#allocation4] sm:$0xff]  ;;  %v207_v1 = vld [vmem:[#allocation4 + $0x8] sm:$0xff]  ;;  %v3485_v4 = vmov 0.0   ;;  %v3486_v30 = vmov 0   ;;  %v284_v53 = vlaneseq }
  0xf0   :  { %210 = vadd.xlane.f32.xlu0 %v206_v0  ;;  %v2946_v2 = vld [vmem:[#allocation10 + $0x4] ss:$12 sps:$4 sm:$0xff]   ;;  %v2948_v3 = vld [vmem:[#allocation10] ss:$12 sps:$4 sm:$0xff]   ;;  %2782 = vmatprep.subr.bf16.mxu1 %v3485_v4  ;;  %v2949_v5 = vld [vmem:[#allocation10 + $0x8] ss:$12 sps:$4 sm:$0xff]  }
  0xf1   :  { %v2950_v6 = vld [vmem:[#allocation10 + $0x1c] ss:$12 sps:$4 sm:$0xff]   ;;  %427 = vmatprep.subr.bf16.mxu0 %v2946_v2  ;;  %2783 = vmatpush3.bf16.msra.mxu1 %v2949_v5  ;;  %v2952_v15 = vld [vmem:[#allocation10 + $0x18] ss:$12 sps:$4 sm:$0xff]   ;;  %v2953_v16 = vld [vmem:[#allocation10 + $0x20] ss:$12 sps:$4 sm:$0xff]  }
  0xf2   :  { %428 = vmatpush1.bf16.msra.mxu0 %v2948_v3  ;;  %2784 = vmatprep.subr.bf16.mxu1 %v3485_v4  ;;  %v2954_v17 = vld [vmem:[#allocation10 + $0x34] ss:$12 sps:$4 sm:$0xff]   ;;  %v2956_v18 = vld [vmem:[#allocation10 + $0x30] ss:$12 sps:$4 sm:$0xff]   ;;  %v2957_v19 = vld [vmem:[#allocation10 + $0x38] ss:$12 sps:$4 sm:$0xff]  }
  0xf3   :  { %429 = vmatprep.subr.bf16.mxu0 %v2950_v6  ;;  %v2958_v20 = vld [vmem:[#allocation10 + $0x4c] ss:$12 sps:$4 sm:$0xff]   ;;  %v2960_v21 = vld [vmem:[#allocation10 + $0x48] ss:$12 sps:$4 sm:$0xff]   ;;  %v2961_v22 = vld [vmem:[#allocation10 + $0x50] ss:$12 sps:$4 sm:$0xff]   ;;  %459 = vmatprep.mubr.bf16.mxu0 %v3486_v30 }
  0xf4   :  { %212 = vadd.xlane.f32.xlu0 %v207_v1  ;;  %v2962_v23 = vld [vmem:[#allocation10 + $0x64] ss:$12 sps:$4 sm:$0xff]   ;;  %v2964_v24 = vld [vmem:[#allocation10 + $0x60] ss:$12 sps:$4 sm:$0xff]   ;;  %v2965_v25 = vld [vmem:[#allocation10 + $0x68] ss:$12 sps:$4 sm:$0xff]  }
  0xf5   :  { %2785 = vmatpush3.bf16.msra.mxu1 %v2953_v16  ;;  %v2966_v26 = vld [vmem:[#allocation10 + $0x7c] ss:$12 sps:$4 sm:$0xff]   ;;  %v2968_v27 = vld [vmem:[#allocation10 + $0x78] ss:$12 sps:$4 sm:$0xff]   ;;  %v2969_v28 = vld [vmem:[#allocation10 + $0x80] ss:$12 sps:$4 sm:$0xff]  }
  0xf6   :  { %430 = vmatpush1.bf16.msra.mxu0 %v2952_v15  ;;  %2786 = vmatprep.subr.bf16.mxu1 %v3485_v4  ;;  %v2970_v29 = vld [vmem:[#allocation10 + $0x94] ss:$12 sps:$4 sm:$0xff]   ;;  %vm3487_vm0 = vmmov 0   ;;  %v2972_v31 = vld [vmem:[#allocation10 + $0x90] ss:$12 sps:$4 sm:$0xff]   ;;  %v3761_v54 = vshrl.u32 %v284_v53, 7 }
  0xf7   :  { %431 = vmatprep.subr.bf16.mxu0 %v2954_v17  ;;  %2798 = vmatprep.mubr.msk.bf16.mxu1 %vm3487_vm0, %v3485_v4  ;;  %v2973_v32 = vld [vmem:[#allocation10 + $0x98] ss:$12 sps:$4 sm:$0xff]   ;;  %v2976_v34 = vld [vmem:[#allocation10 + $0xa8] ss:$12 sps:$4 sm:$0xff]   ;;  %v2977_v35 = vld [vmem:[#allocation10 + $0xb0] ss:$12 sps:$4 sm:$0xff]  }
  0xf8   :  { %v2974_v33 = vld [vmem:[#allocation10 + $0xac] ss:$12 sps:$4 sm:$0xff]   ;;  %v2540_v44 = vld [vmem:[#allocation7] ss:$0 sm:$0xff]  ;;  %v2541_v48 = vld [vmem:[#allocation9] ss:$0 sm:$0xff] }
  0xf9   :  { %2787 = vmatpush3.bf16.msra.mxu1 %v2957_v19  ;;  %v290_v55 = vsub.s32 1, %v3761_v54  ;;  %v282_v56 = vld [vmem:[#allocation12] sm:$0x7]  ;;  %v286_v57 = vsub.s32 0, %v3761_v54  ;;  %v294_v58 = vsub.s32 2, %v3761_v54  ;;  %vm542_vm1 = vcmask 261120  }
  0xfa   :  { %432 = vmatpush1.bf16.msra.mxu0 %v2956_v18  ;;  %2788 = vmatprep.subr.bf16.mxu1 %v3485_v4  ;;  %vm667_vm2 = vcmask 1043456   ;;  %vm639_vm4 = vcmask 64512   ;;  %s3488_s12 = smov 96   ;;  %s3489_s9 = smov 32   ;;  %vm1004_vm5 = vcmask 523520   ;;  %vm1251_vm6 = vcmask 785920  }
  0xfb   :  { %433 = vmatprep.subr.bf16.mxu0 %v2958_v20  ;;  %v291_v59 = vrot.slane %v282_v56, %v290_v55  ;;  %v287_v60 = vrot.slane %v282_v56, %v286_v57  ;;  %v295_v63 = vrot.slane %v282_v56, %v294_v58  ;;  %vm1498_vm7 = vcmask 1048320  }
  0xfd   :  { %2789 = vmatpush3.bf16.msra.mxu1 %v2961_v22 }
  0xfe   :  { %434 = vmatpush1.bf16.msra.mxu0 %v2960_v21  ;;  %2790 = vmatprep.subr.bf16.mxu1 %v3485_v4 }
  0xff   :  { %435 = vmatprep.subr.bf16.mxu0 %v2962_v23  ;;  %v522_v23 = vand.u32 127, %v284_v53 }
 0x101   :  { %2791 = vmatpush3.bf16.msra.mxu1 %v2965_v25  ;;  %vm3802_vm3 = vcmp.ge.s32.totalorder %v3761_v54, %v522_v23 }
 0x102   :  { %436 = vmatpush1.bf16.msra.mxu0 %v2964_v24  ;;  %2792 = vmatprep.subr.bf16.mxu1 %v3485_v4 }
 0x103   :  { %437 = vmatprep.subr.bf16.mxu0 %v2966_v26 }
 0x105   :  { %2793 = vmatpush3.bf16.msra.mxu1 %v2969_v28 }
 0x106   :  { %438 = vmatpush1.bf16.msra.mxu0 %v2968_v27  ;;  %2794 = vmatprep.subr.bf16.mxu1 %v3485_v4 }
 0x107   :  { %439 = vmatprep.subr.bf16.mxu0 %v2970_v29 }
 0x109   :  { %2795 = vmatpush3.bf16.msra.mxu1 %v2973_v32 }
 0x10a   :  { %440 = vmatpush1.bf16.msra.mxu0 %v2972_v31  ;;  %2796 = vmatprep.subr.bf16.mxu1 %v3485_v4 }
 0x10b   :  { %441 = vmatprep.subr.bf16.mxu0 %v2974_v33 }
 0x10d   :  { %2797 = vmatpush3.bf16.msra.mxu1 %v2977_v35 }
 0x10e   :  { %442 = vmatpush1.bf16.msra.mxu0 %v2976_v34  ;;  %2802 = vmatprep.subr.bf16.mxu1 %v3485_v4 }
 0x10f   :  { %2826 = vmatprep.subr.bf16.mxu0 %v3485_v4 }
 0x17d   :  { %v211_v7 = vpop.xlane.xlu0 %210 }
 0x17e   :  { %v215_v8 = vmul.f32 0.0078125, %v211_v7 }
 0x180   :  { %v3736_v9 = vsub.f32 %v206_v0, %v215_v8 }
 0x181   :  { %v213_v10 = vpop.xlane.xlu0 %212 }
 0x182   :  { %v216_v11 = vmul.f32 0.0078125, %v213_v10  ;;  %v219_v12 = vmul.f32 %v3736_v9, %v3736_v9 }
 0x184   :  { %v3740_v13 = vsub.f32 %v207_v1, %v216_v11  ;;  %221 = vadd.xlane.f32.xlu1 %v219_v12 }
 0x186   :  { %v220_v14 = vmul.f32 %v3740_v13, %v3740_v13 }
 0x188   :  { %223 = vadd.xlane.f32.xlu1 %v220_v14 }
 0x211   :  { %v222_v36 = vpop.xlane.xlu1 %221 }
 0x212   :  { %v225_v37 = vmul.f32 0.0078125, %v222_v36 }
 0x214   :  { %v227_v38 = vadd.f32 1e-05, %v225_v37 }
 0x215   :  { %v224_v39 = vpop.xlane.xlu1 %223 }
 0x216   :  { %3066 = vrsqrt.f32 %v227_v38  ;;  %v226_v40 = vmul.f32 0.0078125, %v224_v39 }
 0x218   :  { %v228_v41 = vadd.f32 1e-05, %v226_v40 }
 0x21a   :  { %3068 = vrsqrt.f32 %v228_v41 }
 0x220   :  { %v3067_v42 = vpop.eup %3066 }
 0x221   :  { %v231_v43 = vmul.f32 %v3067_v42, %v3736_v9 }
 0x223   :  { %v239_v47 = vmul.f32 %v2540_v44, %v231_v43 }
 0x224   :  { %v3069_v45 = vpop.eup %3068 }
 0x225   :  { %v232_v46 = vmul.f32 %v3069_v45, %v3740_v13  ;;  %v247_v50 = vadd.f32 %v2541_v48, %v239_v47 }
 0x227   :  { %v240_v49 = vmul.f32 %v2540_v44, %v232_v46 }
 0x229   :  { %v248_v51 = vadd.f32 %v2541_v48, %v240_v49 }
 0x22b   :  { %v249_v52 = vpack.c.bf16 %v248_v51, %v247_v50 }
 0x22d   :  { %460 = vmatmul.mubr.bf16.vlgmr.msra.gmra.mrb[0].mxu0 %v249_v52  ;;  %2799 = vmatmul.mubr.bf16.vlgmr.msra.gmra.mrb[0].mxu1 %v249_v52 }
 0x22e   :  { %2804 = vmatprep.mubr.msk.bf16.mxu1 %vm3487_vm0, %v3485_v4  ;;  %2828 = vmatprep.mubr.msk.bf16.mxu0 %vm3487_vm0, %v3485_v4 }
 0x300   :  { %v461_v61 = vpop.f32.mrb[0].mxu0  ;;  %v504_v62 = vpop.f32.mrb[0].mxu1 }
 0x301   :  { %v463_v0 = vpop.f32.mrb[1].mxu0  ;;  %v2800_v1 = vpop.f32.mrb[1].mxu1  ;;  %v462_v9 = vadd.f32 %v461_v61, %v287_v60  ;;  %v505_v17 = vadd.f32 %v504_v62, %v295_v63 }
 0x302   :  { %v464_v2 = vadd.f32 %v463_v0, %v291_v59  ;;  %v465_v3 = vpop.f32.mrb[2].mxu0  ;;  %v507_v5 = vpop.f32.mrb[2].mxu1 }
 0x303   :  { %v3772_v6 = vadd.f32 %v507_v5, %v295_v63  ;;  %v467_v7 = vpop.f32.mrb[3].mxu0  ;;  %v2801_v8 = vpop.f32.mrb[3].mxu1  ;;  %v511_v13 = vmul.f32 0.17677669, %v462_v9  ;;  %v466_v16 = vadd.f32 %v465_v3, %v287_v60  ;;  %v3790_v20 = vpack.c.bf16 %v505_v17, %v505_v17 }
 0x304   :  { %v3774_v10 = vpack.c.bf16 %v464_v2, %v464_v2  ;;  %v468_v11 = vadd.f32 %v467_v7, %v291_v59 }
 0x305   :  { %v3781_v15 = vpack.c.bf16 %v511_v13, %v511_v13  ;;  %v512_v19 = vmul.f32 0.17677669, %v466_v16  ;;  %v669_v22 = vsel %vm667_vm2, %v3790_v20, 0  ;;  %v3826_v56 = vpack.c.bf16 %v3772_v6, %v3772_v6 }
 0x306   :  { %v547_v12 = vsel %vm542_vm1, %v3774_v10, 0  ;;  %v3779_v14 = vpack.c.bf16 %v468_v11, %v468_v11 }
 0x307   :  { %2803 = vmatpush3.bf16.xpose.msra.mxu1 %v547_v12  ;;  %v3792_v21 = vpack.c.bf16 %v512_v19, %v512_v19  ;;  %v715_v62 = vsel %vm667_vm2, %v3826_v56, 0 }
 0x308   :  { %2808 = vmatprep.subr.bf16.mxu1 %v3485_v4  ;;  %v593_v18 = vsel %vm542_vm1, %v3779_v14, 0 }
 0x30e   :  { %2805 = vmatmul.mubr.msk.bf16.vlgmr.msra.gmra.mrb[4].mxu1 %vm542_vm1, %v3781_v15 }
 0x30f   :  { %2809 = vmatpush3.bf16.xpose.msra.mxu1 %v593_v18  ;;  %2810 = vmatprep.mubr.msk.bf16.mxu1 %vm3487_vm0, %v3485_v4 }
 0x310   :  { %2814 = vmatprep.subr.bf16.mxu1 %v3485_v4 }
 0x316   :  { %2811 = vmatmul.mubr.msk.bf16.vlgmr.msra.gmra.mrb[8].mxu1 %vm542_vm1, %v3792_v21 }
 0x317   :  { %2815 = vmatpush3.bf16.msra.mxu1 %v669_v22  ;;  %2816 = vmatprep.mubr.msk.bf16.mxu1 %vm3487_vm0, %v3485_v4 }
 0x318   :  { %2820 = vmatprep.subr.bf16.mxu1 %v3485_v4 }
 0x3e1   :  { %v583_v25 = vpop.f32.mrb[4].mxu1 }
 0x3e2   :  { %v637_v26 = vsel %vm3802_vm3, %v583_v25, -1e+30  ;;  %v2806_v27 = vpop.f32.mrb[5].mxu1 }
 0x3e3   :  { %v586_v28 = vpop.f32.mrb[6].mxu1  ;;  %v640_v29 = vsel %vm639_vm4, %v637_v26, -inf }
 0x3e4   :  { %641 = vmax.xlane.f32.xlu0 %v640_v29  ;;  %v2807_v31 = vpop.f32.mrb[7].mxu1 }
 0x3e9   :  { %v629_v32 = vpop.f32.mrb[8].mxu1 }
 0x3ea   :  { %v638_v33 = vsel %vm3802_vm3, %v629_v32, -1e+30  ;;  %v2812_v34 = vpop.f32.mrb[9].mxu1 }
 0x3eb   :  { %v632_v35 = vpop.f32.mrb[10].mxu1  ;;  %v643_v36 = vsel %vm639_vm4, %v638_v33, -inf }
 0x3ec   :  { %644 = vmax.xlane.f32.xlu1 %v643_v36  ;;  %v2813_v37 = vpop.f32.mrb[11].mxu1 }
 0x3fd   :  { %827 = vrot.lane.b32.xlu1 %v3779_v14, %s3488_s12 }
 0x471   :  { %v642_v38 = vpop.xlane.xlu0 %641 }
 0x472   :  { %v646_v39 = vsub.f32 %v637_v26, %v642_v38 }
 0x474   :  { %v648_v40 = vmul.f32 1.442695, %v646_v39 }
 0x476   :  { %3070 = vpow2.f32 %v648_v40 }
 0x479   :  { %v645_v41 = vpop.xlane.xlu1 %644 }
 0x47a   :  { %v647_v42 = vsub.f32 %v638_v33, %v645_v41 }
 0x47c   :  { %v650_v43 = vmul.f32 1.442695, %v647_v42 }
 0x47d   :  { %v828_v49 = vpop.permute.xlu1 %827 }
 0x47e   :  { %3072 = vpow2.f32 %v650_v43  ;;  %v833_v2 = vsel %vm542_vm1, %v828_v49, 0 }
 0x480   :  { %v3071_v44 = vpop.eup %3070 }
 0x481   :  { %v652_v45 = vsel %vm639_vm4, %v3071_v44, 0.0 }
 0x482   :  { %653 = vadd.xlane.f32.xlu0 %v652_v45 }
 0x488   :  { %v3073_v46 = vpop.eup %3072 }
 0x489   :  { %v655_v47 = vsel %vm639_vm4, %v3073_v46, 0.0 }
 0x48a   :  { %656 = vadd.xlane.f32.xlu1 %v655_v47 }
 0x498   :  { %775 = vrot.lane.b32.xlu0 %v3774_v10, %s3488_s12 }
 0x49b   :  { %772 = vrot.lane.b32.xlu1 %v3781_v15, %s3488_s12 }
 0x49f   :  { %824 = vrot.lane.b32.xlu1 %v3792_v21, %s3488_s12 }
 0x50f   :  { %v654_v48 = vpop.xlane.xlu0 %653 }
 0x510   :  { %3074 = vrcp.f32 %v654_v48 }
 0x513   :  { %v776_v50 = vpop.permute.xlu0 %775 }
 0x514   :  { %v781_v51 = vsel %vm542_vm1, %v776_v50, 0 }
 0x515   :  { %2827 = vmatpush3.bf16.xpose.msra.mxu0 %v781_v51 }
 0x516   :  { %2838 = vmatprep.subr.bf16.mxu0 %v3485_v4 }
 0x517   :  { %v657_v52 = vpop.xlane.xlu1 %656 }
 0x518   :  { %3076 = vrcp.f32 %v657_v52 }
 0x51a   :  { %v3075_v53 = vpop.eup %3074 }
 0x51b   :  { %v660_v59 = vmul.f32 %v3075_v53, %v3071_v44  ;;  %v773_v60 = vpop.permute.xlu1 %772 }
 0x51c   :  { %2829 = vmatmul.mubr.msk.bf16.vlgmr.msra.gmra.mrb[4].mxu0 %vm542_vm1, %v773_v60 }
 0x51d   :  { %v662_v61 = vpack.c.bf16 %v660_v59, %v660_v59  ;;  %2840 = vmatprep.mubr.msk.bf16.mxu0 %vm3487_vm0, %v3485_v4 }
 0x51f   :  { %2817 = vmatmul.mubr.msk.bf16.vlgmr.msra.gmra.mrb[12].mxu1 %vm639_vm4, %v662_v61  ;;  %v825_v3 = vpop.permute.xlu1 %824 }
 0x520   :  { %2821 = vmatpush3.bf16.msra.mxu1 %v715_v62  ;;  %2822 = vmatprep.mubr.msk.bf16.mxu1 %vm3487_vm0, %v3485_v4 }
 0x521   :  { %2832 = vmatprep.subr.bf16.mxu1 %v3485_v4 }
 0x522   :  { %v3077_v63 = vpop.eup %3076 }
 0x523   :  { %v661_v0 = vmul.f32 %v3077_v63, %v3073_v46 }
 0x525   :  { %v663_v1 = vpack.c.bf16 %v661_v0, %v661_v0 }
 0x527   :  { %2823 = vmatmul.mubr.msk.bf16.vlgmr.msra.gmra.mrb[16].mxu1 %vm639_vm4, %v663_v1 }
 0x528   :  { %2834 = vmatprep.mubr.msk.bf16.mxu1 %vm3487_vm0, %v3485_v4 }
 0x529   :  { %2833 = vmatpush3.bf16.xpose.msra.mxu1 %v833_v2 }
 0x52a   :  { %2844 = vmatprep.subr.bf16.mxu1 %v3485_v4 }
 0x530   :  { %2835 = vmatmul.mubr.msk.bf16.vlgmr.msra.gmra.mrb[20].mxu1 %vm542_vm1, %v825_v3 }
 0x531   :  { %2846 = vmatprep.mubr.msk.bf16.mxu1 %vm3487_vm0, %v3485_v4 }
 0x5ef   :  { %v817_v5 = vpop.f32.mrb[4].mxu0 }
 0x5f0   :  { %v875_v6 = vsel %vm3802_vm3, %v817_v5, -1e+30  ;;  %v2830_v7 = vpop.f32.mrb[5].mxu0 }
 0x5f1   :  { %v820_v8 = vpop.f32.mrb[6].mxu0  ;;  %v877_v9 = vsel %vm639_vm4, %v875_v6, -inf }
 0x5f2   :  { %878 = vmax.xlane.f32.xlu0 %v877_v9  ;;  %v705_v11 = vpop.f32.mrb[12].mxu1  ;;  %v2831_v12 = vpop.f32.mrb[7].mxu0 }
 0x5f3   :  { %v2818_v13 = vpop.f32.mrb[13].mxu1 }
 0x5f4   :  { %v708_v16 = vpop.f32.mrb[14].mxu1 }
 0x5f5   :  { %v2819_v17 = vpop.f32.mrb[15].mxu1 }
 0x5fa   :  { %v751_v18 = vpop.f32.mrb[16].mxu1 }
 0x5fb   :  { %v757_v19 = vpack.c.bf16 %v751_v18, %v705_v11  ;;  %v2824_v22 = vpop.f32.mrb[17].mxu1 }
 0x5fc   :  { %v754_v23 = vpop.f32.mrb[18].mxu1 }
 0x5fd   :  { %758 = vst.msk [vmem:[#allocation3] sm:$0xff] %vm542_vm1, %v757_v19  ;;  %v2825_v25 = vpop.f32.mrb[19].mxu1 }
 0x603   :  { %v869_v26 = vpop.f32.mrb[20].mxu1 }
 0x604   :  { %v876_v27 = vsel %vm3802_vm3, %v869_v26, -1e+30  ;;  %v2836_v28 = vpop.f32.mrb[21].mxu1 }
 0x605   :  { %v872_v29 = vpop.f32.mrb[22].mxu1  ;;  %v880_v31 = vsel %vm639_vm4, %v876_v27, -inf }
 0x606   :  { %881 = vmax.xlane.f32.xlu1 %v880_v31  ;;  %v2837_v32 = vpop.f32.mrb[23].mxu1 }
 0x617   :  { %951 = vrot.lane.b32.xlu1 %v3826_v56, %s3488_s12 }
 0x61b   :  { %1022 = vrot.lane.b32.xlu1 %v3774_v10, %s3469_s3 }
 0x61f   :  { %1074 = vrot.lane.b32.xlu1 %v3779_v14, %s3469_s3 }
 0x623   :  { %1071 = vrot.lane.b32.xlu1 %v3792_v21, %s3469_s3 }
 0x67f   :  { %v879_v33 = vpop.xlane.xlu0 %878 }
 0x680   :  { %v883_v34 = vsub.f32 %v875_v6, %v879_v33 }
 0x682   :  { %v885_v35 = vmul.f32 1.442695, %v883_v34 }
 0x684   :  { %3078 = vpow2.f32 %v885_v35 }
 0x68e   :  { %v3079_v36 = vpop.eup %3078 }
 0x68f   :  { %v889_v37 = vsel %vm639_vm4, %v3079_v36, 0.0 }
 0x690   :  { %890 = vadd.xlane.f32.xlu0 %v889_v37 }
 0x693   :  { %v882_v38 = vpop.xlane.xlu1 %881 }
 0x694   :  { %v884_v39 = vsub.f32 %v876_v27, %v882_v38 }
 0x696   :  { %v887_v40 = vmul.f32 1.442695, %v884_v39 }
 0x697   :  { %v952_v41 = vpop.permute.xlu1 %951 }
 0x698   :  { %3080 = vpow2.f32 %v887_v40  ;;  %v957_v42 = vsel %vm667_vm2, %v952_v41, 0 }
 0x699   :  { %2845 = vmatpush3.bf16.msra.mxu1 %v957_v42 }
 0x69a   :  { %2856 = vmatprep.subr.bf16.mxu1 %v3485_v4 }
 0x69b   :  { %v1023_v51 = vpop.permute.xlu1 %1022 }
 0x69c   :  { %v1028_v61 = vsel %vm542_vm1, %v1023_v51, 0 }
 0x69f   :  { %v1075_v60 = vpop.permute.xlu1 %1074 }
 0x6a0   :  { %v1080_v63 = vsel %vm542_vm1, %v1075_v60, 0 }
 0x6a2   :  { %v3081_v43 = vpop.eup %3080 }
 0x6a3   :  { %v892_v44 = vsel %vm639_vm4, %v3081_v43, 0.0  ;;  %v1072_v1 = vpop.permute.xlu1 %1071 }
 0x6a4   :  { %893 = vadd.xlane.f32.xlu0 %v892_v44 }
 0x6ba   :  { %902 = vrot.lane.b32.xlu0 %v3790_v20, %s3488_s12 }
 0x6be   :  { %1019 = vrot.lane.b32.xlu0 %v3781_v15, %s3469_s3 }
 0x71d   :  { %v891_v45 = vpop.xlane.xlu0 %890 }
 0x71e   :  { %3082 = vrcp.f32 %v891_v45 }
 0x728   :  { %v3083_v46 = vpop.eup %3082 }
 0x729   :  { %v897_v48 = vmul.f32 %v3083_v46, %v3079_v36 }
 0x72b   :  { %v899_v52 = vpack.c.bf16 %v897_v48, %v897_v48 }
 0x731   :  { %v894_v47 = vpop.xlane.xlu0 %893 }
 0x732   :  { %3084 = vrcp.f32 %v894_v47 }
 0x735   :  { %v903_v49 = vpop.permute.xlu0 %902 }
 0x736   :  { %v908_v50 = vsel %vm667_vm2, %v903_v49, 0 }
 0x737   :  { %2839 = vmatpush3.bf16.msra.mxu0 %v908_v50 }
 0x738   :  { %2850 = vmatprep.subr.bf16.mxu0 %v3485_v4 }
 0x739   :  { %v1020_v0 = vpop.permute.xlu0 %1019 }
 0x73a   :  { %2841 = vmatmul.mubr.msk.bf16.vlgmr.msra.gmra.mrb[8].mxu0 %vm639_vm4, %v899_v52 }
 0x73b   :  { %2852 = vmatprep.mubr.msk.bf16.mxu0 %vm3487_vm0, %v3485_v4 }
 0x73c   :  { %v3085_v53 = vpop.eup %3084 }
 0x73d   :  { %v898_v59 = vmul.f32 %v3085_v53, %v3081_v43 }
 0x73f   :  { %v900_v62 = vpack.c.bf16 %v898_v59, %v898_v59 }
 0x740   :  { %2851 = vmatpush3.bf16.xpose.msra.mxu0 %v1028_v61 }
 0x741   :  { %2847 = vmatmul.mubr.msk.bf16.vlgmr.msra.gmra.mrb[24].mxu1 %vm639_vm4, %v900_v62  ;;  %2862 = vmatprep.subr.bf16.mxu0 %v3485_v4 }
 0x742   :  { %2857 = vmatpush3.bf16.xpose.msra.mxu1 %v1080_v63  ;;  %2858 = vmatprep.mubr.msk.bf16.mxu1 %vm3487_vm0, %v3485_v4 }
 0x743   :  { %2868 = vmatprep.subr.bf16.mxu1 %v3485_v4 }
 0x747   :  { %2853 = vmatmul.mubr.msk.bf16.vlgmr.msra.gmra.mrb[12].mxu0 %vm542_vm1, %v1020_v0 }
 0x748   :  { %2864 = vmatprep.mubr.msk.bf16.mxu0 %vm3487_vm0, %v3485_v4 }
 0x749   :  { %2859 = vmatmul.mubr.msk.bf16.vlgmr.msra.gmra.mrb[28].mxu1 %vm542_vm1, %v1072_v1 }
 0x74a   :  { %2870 = vmatprep.mubr.msk.bf16.mxu1 %vm3487_vm0, %v3485_v4 }
 0x80d   :  { %v3886_v2 = vpop.f32.mrb[8].mxu0 }
 0x80e   :  { %v2842_v3 = vpop.f32.mrb[9].mxu0 }
 0x80f   :  { %v947_v5 = vpop.f32.mrb[10].mxu0 }
 0x810   :  { %v2843_v6 = vpop.f32.mrb[11].mxu0 }
 0x814   :  { %v3888_v7 = vpop.f32.mrb[24].mxu1 }
 0x815   :  { %v999_v8 = vpack.c.bf16 %v3888_v7, %v3886_v2  ;;  %v2848_v9 = vpop.f32.mrb[25].mxu1 }
 0x816   :  { %v996_v11 = vpop.f32.mrb[26].mxu1 }
 0x817   :  { %v2849_v12 = vpop.f32.mrb[27].mxu1 }
 0x81a   :  { %v1064_v13 = vpop.f32.mrb[12].mxu0 }
 0x81b   :  { %v1122_v16 = vsel %vm3802_vm3, %v1064_v13, -1e+30  ;;  %v2854_v17 = vpop.f32.mrb[13].mxu0 }
 0x81c   :  { %v1067_v18 = vpop.f32.mrb[14].mxu0  ;;  %v1116_v19 = vpop.f32.mrb[28].mxu1  ;;  %v1124_v22 = vsel %vm639_vm4, %v1122_v16, -inf }
 0x81d   :  { %v1123_v23 = vsel %vm3802_vm3, %v1116_v19, -1e+30  ;;  %1125 = vmax.xlane.f32.xlu0 %v1124_v22  ;;  %v2855_v25 = vpop.f32.mrb[15].mxu0  ;;  %v2860_v26 = vpop.f32.mrb[29].mxu1 }
 0x81e   :  { %v1119_v27 = vpop.f32.mrb[30].mxu1  ;;  %v1127_v28 = vsel %vm639_vm4, %v1123_v23, -inf }
 0x81f   :  { %1128 = vmax.xlane.f32.xlu1 %v1127_v28  ;;  %v2861_v29 = vpop.f32.mrb[31].mxu1 }
 0x830   :  { %1198 = vrot.lane.b32.xlu1 %v3826_v56, %s3469_s3 }
 0x834   :  { %1269 = vrot.lane.b32.xlu1 %v3774_v10, %s3489_s9 }
 0x838   :  { %1321 = vrot.lane.b32.xlu1 %v3779_v14, %s3489_s9 }
 0x83c   :  { %1318 = vrot.lane.b32.xlu1 %v3792_v21, %s3489_s9 }
 0x8aa   :  { %v1126_v31 = vpop.xlane.xlu0 %1125 }
 0x8ab   :  { %v1130_v32 = vsub.f32 %v1122_v16, %v1126_v31 }
 0x8ac   :  { %v1129_v33 = vpop.xlane.xlu1 %1128 }
 0x8ad   :  { %v1132_v34 = vmul.f32 1.442695, %v1130_v32  ;;  %v1131_v35 = vsub.f32 %v1123_v23, %v1129_v33 }
 0x8af   :  { %3086 = vpow2.f32 %v1132_v34  ;;  %v1134_v36 = vmul.f32 1.442695, %v1131_v35 }
 0x8b0   :  { %v1199_v37 = vpop.permute.xlu1 %1198 }
 0x8b1   :  { %3088 = vpow2.f32 %v1134_v36  ;;  %v1204_v38 = vsel %vm667_vm2, %v1199_v37, 0 }
 0x8b2   :  { %2869 = vmatpush3.bf16.msra.mxu1 %v1204_v38 }
 0x8b3   :  { %2880 = vmatprep.subr.bf16.mxu1 %v3485_v4 }
 0x8b4   :  { %v1270_v45 = vpop.permute.xlu1 %1269 }
 0x8b8   :  { %v1322_v50 = vpop.permute.xlu1 %1321 }
 0x8b9   :  { %v3087_v10 = vpop.eup %3086  ;;  %v1327_v52 = vsel %vm542_vm1, %v1322_v50, 0  ;;  %v2985_v50 = vld [vmem:[#allocation13 + $0x38] sm:$0xff]  }
 0x8ba   :  { %v1136_v14 = vsel %vm639_vm4, %v3087_v10, 0.0 }
 0x8bb   :  { %v3089_v39 = vpop.eup %3088  ;;  %1137 = vadd.xlane.f32.xlu0 %v1136_v14 }
 0x8bc   :  { %v1139_v21 = vsel %vm639_vm4, %v3089_v39, 0.0  ;;  %v1319_v59 = vpop.permute.xlu1 %1318 }
 0x8bf   :  { %1140 = vadd.xlane.f32.xlu0 %v1139_v21 }
 0x8d5   :  { %1149 = vrot.lane.b32.xlu0 %v3790_v20, %s3469_s3 }
 0x8d9   :  { %1266 = vrot.lane.b32.xlu0 %v3781_v15, %s3489_s9  ;;  %v1275_v15 = vsel %vm542_vm1, %v1270_v45, 0  ;;  %v2980_v45 = vld [vmem:[#allocation13 + $0x10] sm:$0xff]  }
 0x948   :  { %v1138_v40 = vpop.xlane.xlu0 %1137 }
 0x949   :  { %3090 = vrcp.f32 %v1138_v40 }
 0x94c   :  { %v1141_v41 = vpop.xlane.xlu0 %1140 }
 0x94d   :  { %3092 = vrcp.f32 %v1141_v41 }
 0x950   :  { %v1150_v42 = vpop.permute.xlu0 %1149 }
 0x951   :  { %v1155_v43 = vsel %vm667_vm2, %v1150_v42, 0 }
 0x952   :  { %2863 = vmatpush3.bf16.msra.mxu0 %v1155_v43  ;;  %v2978_v43 = vld [vmem:[#allocation13] sm:$0xff]  }
 0x953   :  { %v3091_v44 = vpop.eup %3090  ;;  %2874 = vmatprep.subr.bf16.mxu0 %v3485_v4 }
 0x954   :  { %v1144_v46 = vmul.f32 %v3091_v44, %v3087_v10  ;;  %v1267_v53 = vpop.permute.xlu0 %1266  ;;  %v2979_v44 = vld [vmem:[#allocation13 + $0x8] sm:$0xff]  }
 0x956   :  { %v1146_v47 = vpack.c.bf16 %v1144_v46, %v1144_v46  ;;  %v2981_v46 = vld [vmem:[#allocation13 + $0x18] sm:$0xff]  }
 0x957   :  { %v3093_v48 = vpop.eup %3092 }
 0x958   :  { %v1145_v49 = vmul.f32 %v3093_v48, %v3089_v39  ;;  %2865 = vmatmul.mubr.msk.bf16.vlgmr.msra.gmra.mrb[16].mxu0 %vm639_vm4, %v1146_v47  ;;  %v2982_v47 = vld [vmem:[#allocation13 + $0x20] sm:$0xff]   ;;  %v2983_v48 = vld [vmem:[#allocation13 + $0x28] sm:$0xff]  }
 0x959   :  { %2876 = vmatprep.mubr.msk.bf16.mxu0 %vm3487_vm0, %v3485_v4 }
 0x95a   :  { %v1147_v51 = vpack.c.bf16 %v1145_v49, %v1145_v49  ;;  %v2984_v49 = vld [vmem:[#allocation13 + $0x30] sm:$0xff]  }
 0x95b   :  { %2875 = vmatpush3.bf16.xpose.msra.mxu0 %v1275_v15 }
 0x95c   :  { %2871 = vmatmul.mubr.msk.bf16.vlgmr.msra.gmra.mrb[32].mxu1 %vm639_vm4, %v1147_v51  ;;  %2886 = vmatprep.subr.bf16.mxu0 %v3485_v4 }
 0x95d   :  { %2881 = vmatpush3.bf16.xpose.msra.mxu1 %v1327_v52  ;;  %2882 = vmatprep.mubr.msk.bf16.mxu1 %vm3487_vm0, %v3485_v4 }
 0x95e   :  { %2892 = vmatprep.subr.bf16.mxu1 %v3485_v4 }
 0x962   :  { %2877 = vmatmul.mubr.msk.bf16.vlgmr.msra.gmra.mrb[20].mxu0 %vm542_vm1, %v1267_v53 }
 0x963   :  { %2888 = vmatprep.mubr.msk.bf16.mxu0 %vm3487_vm0, %v3485_v4 }
 0x964   :  { %2883 = vmatmul.mubr.msk.bf16.vlgmr.msra.gmra.mrb[36].mxu1 %vm542_vm1, %v1319_v59 }
 0x965   :  { %2894 = vmatprep.mubr.msk.bf16.mxu1 %vm3487_vm0, %v3485_v4 }
 0xa2b   :  { %v1191_v60 = vpop.f32.mrb[16].mxu0 }
 0xa2c   :  { %v2866_v61 = vpop.f32.mrb[17].mxu0 }
 0xa2d   :  { %v1194_v62 = vpop.f32.mrb[18].mxu0 }
 0xa2e   :  { %v2867_v63 = vpop.f32.mrb[19].mxu0 }
 0xa2f   :  { %v1240_v0 = vpop.f32.mrb[32].mxu1 }
 0xa30   :  { %v1246_v1 = vpack.c.bf16 %v1240_v0, %v1191_v60  ;;  %v2872_v3 = vpop.f32.mrb[33].mxu1 }
 0xa31   :  { %v1243_v5 = vpop.f32.mrb[34].mxu1 }
 0xa32   :  { %v2873_v6 = vpop.f32.mrb[35].mxu1 }
 0xa35   :  { %v1311_v9 = vpop.f32.mrb[20].mxu0 }
 0xa36   :  { %v1369_v11 = vsel %vm3802_vm3, %v1311_v9, -1e+30  ;;  %v2878_v12 = vpop.f32.mrb[21].mxu0 }
 0xa37   :  { %v1314_v13 = vpop.f32.mrb[22].mxu0  ;;  %v1363_v16 = vpop.f32.mrb[36].mxu1  ;;  %v1371_v17 = vsel %vm639_vm4, %v1369_v11, -inf }
 0xa38   :  { %v1370_v18 = vsel %vm3802_vm3, %v1363_v16, -1e+30  ;;  %1372 = vmax.xlane.f32.xlu0 %v1371_v17  ;;  %v2879_v19 = vpop.f32.mrb[23].mxu0  ;;  %v2884_v22 = vpop.f32.mrb[37].mxu1  ;;  %v3139_v17 = vld [vmem:[#allocation4 + $0x8] sm:$0xff] }
 0xa39   :  { %v1366_v23 = vpop.f32.mrb[38].mxu1  ;;  %v1374_v25 = vsel %vm639_vm4, %v1370_v18, -inf  ;;  %v2986_v19 = vld [vmem:[#allocation19] ss:$16 sps:$4 sm:$0xff]   ;;  %v2988_v22 = vld [vmem:[#allocation19 + $0x4] ss:$16 sps:$4 sm:$0xff]  }
 0xa3a   :  { %1375 = vmax.xlane.f32.xlu1 %v1374_v25  ;;  %v2885_v26 = vpop.f32.mrb[39].mxu1  ;;  %v2991_v23 = vld [vmem:[#allocation19 + $0xc] ss:$16 sps:$4 sm:$0xff]   ;;  %v2994_v25 = vld [vmem:[#allocation19 + $0x24] ss:$16 sps:$4 sm:$0xff]  }
 0xa3b   :  { %v2997_v26 = vld [vmem:[#allocation19 + $0x2c] ss:$16 sps:$4 sm:$0xff]  }
 0xa4b   :  { %1445 = vrot.lane.b32.xlu1 %v3826_v56, %s3489_s9 }
 0xa4f   :  { %1001 = vrot.lane.b32.xlu1 %v999_v8, %s3489_s9 }
 0xa53   :  { %1248 = vrot.lane.b32.xlu1 %v1246_v1, %s3469_s3  ;;  %s3491_s3 = smov [#allocation25]  }
 0xa54   :  { %s2522_s16 = sshll.u32 %s3491_s3, 4  ;;  %s2523_s16 = int_to_ptr.vmem [resolvable:$true] %s2522_s16 }
 0xa55   :  { %s3426_s18 = scalar_lea.vmem %s2523_s16, 256  ;;  %p3431_p7 = scmp.lt.s32.totalorder %s2523_s16, %s2523_s16 }
 0xa56   :  { %p3427_p6 = scmp.ne.s32.totalorder %s2523_s16, %s3426_s18  ;;  %p3432_p8 = scmp.lt.s32.totalorder %s3426_s18, %s3426_s18 }
 0xa58   :  { %p3433_p9 = por %p3432_p8, %p3431_p7 }
 0xa5a   :  { %p3434_p10 = pnand %p3433_p9, %p3427_p6 }
 0xac5   :  { %v1373_v24 = vpop.xlane.xlu0 %1372 }
 0xac6   :  { %v1377_v27 = vsub.f32 %v1369_v11, %v1373_v24  ;;  %v3138_v11 = vld [vmem:[#allocation4] sm:$0xff] }
 0xac7   :  { %v1376_v28 = vpop.xlane.xlu1 %1375  ;;  %v2992_v24 = vld [vmem:[#allocation19 + $0x20] ss:$16 sps:$4 sm:$0xff]  }
 0xac8   :  { %v1379_v29 = vmul.f32 1.442695, %v1377_v27  ;;  %v1378_v31 = vsub.f32 %v1370_v18, %v1376_v28  ;;  %v2995_v27 = vld [vmem:[#allocation19 + $0x28] ss:$16 sps:$4 sm:$0xff]  }
 0xaca   :  { %3094 = vpow2.f32 %v1379_v29  ;;  %v1381_v32 = vmul.f32 1.442695, %v1378_v31 }
 0xacb   :  { %v1446_v33 = vpop.permute.xlu1 %1445 }
 0xacc   :  { %3096 = vpow2.f32 %v1381_v32  ;;  %v1451_v34 = vsel %vm667_vm2, %v1446_v33, 0 }
 0xacd   :  { %2893 = vmatpush3.bf16.msra.mxu1 %v1451_v34 }
 0xace   :  { %1870 = vmatprep.subr.bf16.mxu1 %v2988_v22  ;;  %v3036_v22 = vld [vmem:[#allocation22] sm:$0xff]  }
 0xacf   :  { %v1002_v56 = vpop.permute.xlu1 %1001 }
 0xad0   :  { %1005 = vst.msk [vmem:[#allocation3] sm:$0xff] %vm1004_vm5, %v1002_v56 }
 0xad3   :  { %v1249_v2 = vpop.permute.xlu1 %1248 }
 0xad4   :  { %v3095_v7 = vpop.eup %3094  ;;  %1252 = vst.msk [vmem:[#allocation3] sm:$0xff] %vm1251_vm6, %v1249_v2 }
 0xad5   :  { %v1383_v8 = vsel %vm639_vm4, %v3095_v7, 0.0 }
 0xad6   :  { %v3097_v35 = vpop.eup %3096  ;;  %1384 = vadd.xlane.f32.xlu0 %v1383_v8  ;;  %v3003_v8 = vld [vmem:[#allocation19 + $0x4c] ss:$16 sps:$4 sm:$0xff]  }
 0xad7   :  { %v1386_v36 = vsel %vm639_vm4, %v3097_v35, 0.0 }
 0xada   :  { %1387 = vadd.xlane.f32.xlu0 %v1386_v36  ;;  %v3001_v36 = vld [vmem:[#allocation19 + $0x48] ss:$16 sps:$4 sm:$0xff]  }
 0xaf0   :  { %1396 = vrot.lane.b32.xlu0 %v3790_v20, %s3489_s9 }
 0xb63   :  { %v1385_v37 = vpop.xlane.xlu0 %1384 }
 0xb64   :  { %3098 = vrcp.f32 %v1385_v37  ;;  %v3006_v37 = vld [vmem:[#allocation19 + $0x64] ss:$16 sps:$4 sm:$0xff]  }
 0xb67   :  { %v1388_v38 = vpop.xlane.xlu0 %1387 }
 0xb68   :  { %3100 = vrcp.f32 %v1388_v38  ;;  %v3009_v38 = vld [vmem:[#allocation19 + $0x6c] ss:$16 sps:$4 sm:$0xff]  }
 0xb6b   :  { %v1397_v10 = vpop.permute.xlu0 %1396 }
 0xb6c   :  { %v1402_v14 = vsel %vm667_vm2, %v1397_v10, 0  ;;  %v3004_v10 = vld [vmem:[#allocation19 + $0x60] ss:$16 sps:$4 sm:$0xff]  }
 0xb6d   :  { %2887 = vmatpush3.bf16.msra.mxu0 %v1402_v14  ;;  %v3007_v14 = vld [vmem:[#allocation19 + $0x68] ss:$16 sps:$4 sm:$0xff]  }
 0xb6e   :  { %v3099_v39 = vpop.eup %3098  ;;  %2898 = vmatprep.subr.bf16.mxu0 %v3485_v4 }
 0xb6f   :  { %v1391_v21 = vmul.f32 %v3099_v39, %v3095_v7  ;;  %v3000_v7 = vld [vmem:[#allocation19 + $0x44] ss:$16 sps:$4 sm:$0xff]  }
 0xb70   :  { %v3012_v39 = vld [vmem:[#allocation19 + $0x84] ss:$16 sps:$4 sm:$0xff]  }
 0xb71   :  { %v1393_v40 = vpack.c.bf16 %v1391_v21, %v1391_v21  ;;  %v3015_v21 = vld [vmem:[#allocation19 + $0x8c] ss:$16 sps:$4 sm:$0xff]  }
 0xb72   :  { %v3101_v41 = vpop.eup %3100 }
 0xb73   :  { %v1392_v42 = vmul.f32 %v3101_v41, %v3097_v35  ;;  %2889 = vmatmul.mubr.msk.bf16.vlgmr.msra.gmra.mrb[24].mxu0 %vm639_vm4, %v1393_v40  ;;  %v2998_v35 = vld [vmem:[#allocation19 + $0x40] ss:$16 sps:$4 sm:$0xff]   ;;  %v3013_v41 = vld [vmem:[#allocation19 + $0x88] ss:$16 sps:$4 sm:$0xff]  }
 0xb74   :  { %2914 = vmatprep.mubr.msk.bf16.mxu0 %vm3487_vm0, %v3485_v4  ;;  %2899 = vmatpush3.bf16.msra.mxu0 %v2978_v43  ;;  %v3010_v40 = vld [vmem:[#allocation19 + $0x80] ss:$16 sps:$4 sm:$0xff]  }
 0xb75   :  { %v1394_v20 = vpack.c.bf16 %v1392_v42, %v1392_v42  ;;  %2900 = vmatprep.subr.bf16.mxu0 %v3485_v4  ;;  %v3018_v42 = vld [vmem:[#allocation19 + $0xa4] ss:$16 sps:$4 sm:$0xff]   ;;  %v3016_v43 = vld [vmem:[#allocation19 + $0xa0] ss:$16 sps:$4 sm:$0xff]  }
 0xb77   :  { %2895 = vmatmul.mubr.msk.bf16.vlgmr.msra.gmra.mrb[40].mxu1 %vm639_vm4, %v1394_v20  ;;  %v3021_v20 = vld [vmem:[#allocation19 + $0xac] ss:$16 sps:$4 sm:$0xff]  }
 0xb78   :  { %1902 = vmatprep.mubr.bf16.mxu1 %v3486_v30  ;;  %2901 = vmatpush3.bf16.msra.mxu0 %v2979_v44  ;;  %v3019_v44 = vld [vmem:[#allocation19 + $0xa8] ss:$16 sps:$4 sm:$0xff]  }
 0xb79   :  { %2902 = vmatprep.subr.bf16.mxu0 %v3485_v4  ;;  %1871 = vmatpush1.bf16.msra.mxu1 %v2986_v19  ;;  %v3035_v19 = vld [vmem:[#allocation22 + $0xc0] sm:$0xff]  }
 0xb7a   :  { %1872 = vmatprep.subr.bf16.mxu1 %v2994_v25  ;;  %v3039_v25 = vld [vmem:[#allocation22 + $0xc8] sm:$0xff]  }
 0xb7c   :  { %2903 = vmatpush3.bf16.msra.mxu0 %v2980_v45  ;;  %v3024_v45 = vld [vmem:[#allocation19 + $0xc4] ss:$16 sps:$4 sm:$0xff]  }
 0xb7d   :  { %2904 = vmatprep.subr.bf16.mxu0 %v3485_v4  ;;  %1873 = vmatpush1.bf16.msra.mxu1 %v2992_v24  ;;  %v3041_v24 = vld [vmem:[#allocation22 + $0x88] sm:$0xff]  }
 0xb7e   :  { %1874 = vmatprep.subr.bf16.mxu1 %v3000_v7  ;;  %v3051_v7 = vld [vmem:[#allocation22 + $0xe0] sm:$0xff]  }
 0xb80   :  { %2905 = vmatpush3.bf16.msra.mxu0 %v2981_v46  ;;  %v3027_v46 = vld [vmem:[#allocation19 + $0xcc] ss:$16 sps:$4 sm:$0xff]  }
 0xb81   :  { %2906 = vmatprep.subr.bf16.mxu0 %v3485_v4  ;;  %1875 = vmatpush1.bf16.msra.mxu1 %v2998_v35  ;;  %v3053_v35 = vld [vmem:[#allocation22 + $0xa0] sm:$0xff]  }
 0xb82   :  { %1876 = vmatprep.subr.bf16.mxu1 %v3006_v37  ;;  %v3055_v37 = vld [vmem:[#allocation22 + $0xe8] sm:$0xff]  }
 0xb84   :  { %2907 = vmatpush3.bf16.msra.mxu0 %v2982_v47  ;;  %v3022_v47 = vld [vmem:[#allocation19 + $0xc0] ss:$16 sps:$4 sm:$0xff]  }
 0xb85   :  { %2908 = vmatprep.subr.bf16.mxu0 %v3485_v4  ;;  %1877 = vmatpush1.bf16.msra.mxu1 %v3004_v10  ;;  %v3057_v10 = vld [vmem:[#allocation22 + $0xa8] sm:$0xff]  }
 0xb86   :  { %1878 = vmatprep.subr.bf16.mxu1 %v3012_v39  ;;  %v3059_v39 = vld [vmem:[#allocation22 + $0xf0] sm:$0xff]  }
 0xb88   :  { %2909 = vmatpush3.bf16.msra.mxu0 %v2983_v48  ;;  %v3025_v48 = vld [vmem:[#allocation19 + $0xc8] ss:$16 sps:$4 sm:$0xff]  }
 0xb89   :  { %2910 = vmatprep.subr.bf16.mxu0 %v3485_v4  ;;  %1879 = vmatpush1.bf16.msra.mxu1 %v3010_v40  ;;  %v3061_v40 = vld [vmem:[#allocation22 + $0xb0] sm:$0xff]  }
 0xb8a   :  { %1880 = vmatprep.subr.bf16.mxu1 %v3018_v42  ;;  %v3063_v42 = vld [vmem:[#allocation22 + $0xf8] sm:$0xff]  }
 0xb8c   :  { %2911 = vmatpush3.bf16.msra.mxu0 %v2984_v49  ;;  %v3030_v49 = vld [vmem:[#allocation19 + $0xe4] ss:$16 sps:$4 sm:$0xff]  }
 0xb8d   :  { %2912 = vmatprep.subr.bf16.mxu0 %v3485_v4  ;;  %v2606_v4 = vld [vmem:[#allocation15] ss:$0 sm:$0xff]  ;;  %1881 = vmatpush1.bf16.msra.mxu1 %v3016_v43  ;;  %v3065_v43 = vld [vmem:[#allocation22 + $0xb8] sm:$0xff]  }
 0xb8e   :  { %1882 = vmatprep.subr.bf16.mxu1 %v3024_v45  ;;  %v1704_v45 = vsub.s32 3, %v3761_v54 }
 0xb90   :  { %2913 = vmatpush3.bf16.msra.mxu0 %v2985_v50  ;;  %v3033_v50 = vld [vmem:[#allocation19 + $0xec] ss:$16 sps:$4 sm:$0xff]  }
 0xb91   :  { %1913 = vmatprep.subr.bf16.mxu0 %v2991_v23  ;;  %1883 = vmatpush1.bf16.msra.mxu1 %v3022_v47  ;;  %v3038_v23 = vld [vmem:[#allocation22 + $0x48] sm:$0xff]  }
 0xb92   :  { %1884 = vmatprep.subr.bf16.mxu1 %v3030_v49 }
 0xc46   :  { %v1438_v15 = vpop.f32.mrb[24].mxu0 }
 0xc47   :  { %v2890_v51 = vpop.f32.mrb[25].mxu0 }
 0xc48   :  { %v1441_v52 = vpop.f32.mrb[26].mxu0  ;;  %v3031_v51 = vld [vmem:[#allocation19 + $0xe8] ss:$16 sps:$4 sm:$0xff]  }
 0xc49   :  { %v2891_v53 = vpop.f32.mrb[27].mxu0 }
 0xc4a   :  { %v1487_v59 = vpop.f32.mrb[40].mxu1 }
 0xc4b   :  { %v1493_v60 = vpack.c.bf16 %v1487_v59, %v1438_v15  ;;  %v2896_v61 = vpop.f32.mrb[41].mxu1  ;;  %v3028_v15 = vld [vmem:[#allocation19 + $0xe0] ss:$16 sps:$4 sm:$0xff]  }
 0xc4c   :  { %v1490_v62 = vpop.f32.mrb[42].mxu1  ;;  %1885 = vmatpush1.bf16.msra.mxu1 %v3028_v15 }
 0xc4d   :  { %1495 = vrot.lane.b32.xlu0 %v1493_v60, %s3488_s12  ;;  %v2897_v63 = vpop.f32.mrb[43].mxu1 }
 0xcbf   :  { %v1496_v0 = vpop.permute.xlu0 %1495 }
 0xcc0   :  { %1499 = vst.msk [vmem:[#allocation3] sm:$0xff] %vm1498_vm7, %v1496_v0 }
 0xcc7   :  { %v1500_v1 = vld [vmem:[#allocation3] sm:$0xff] }
 0xcc8   :  { %2915 = vmatmul.mubr.bf16.vlgmr.msra.gmra.mrb[28].mxu0 %v1500_v1  ;;  %v2615_v1 = vld [vmem:[#allocation16] ss:$0 sm:$0xff] }
 0xcc9   :  { %1945 = vmatprep.mubr.bf16.mxu0 %v3486_v30  ;;  %v2989_v30 = vld [vmem:[#allocation19 + $0x8] ss:$16 sps:$4 sm:$0xff]  }
 0xcca   :  { %1914 = vmatpush1.bf16.msra.mxu0 %v2989_v30  ;;  %v3037_v30 = vld [vmem:[#allocation22 + $0x80] sm:$0xff]  }
 0xccb   :  { %1915 = vmatprep.subr.bf16.mxu0 %v2997_v26  ;;  %v3040_v26 = vld [vmem:[#allocation22 + $0x8] sm:$0xff]  }
 0xcce   :  { %1916 = vmatpush1.bf16.msra.mxu0 %v2995_v27  ;;  %v3042_v27 = vld [vmem:[#allocation22 + $0x50] sm:$0xff]  }
 0xccf   :  { %1917 = vmatprep.subr.bf16.mxu0 %v3003_v8  ;;  %v3052_v8 = vld [vmem:[#allocation22 + $0x20] sm:$0xff]  }
 0xcd2   :  { %1918 = vmatpush1.bf16.msra.mxu0 %v3001_v36  ;;  %v3054_v36 = vld [vmem:[#allocation22 + $0x68] sm:$0xff]  }
 0xcd3   :  { %1919 = vmatprep.subr.bf16.mxu0 %v3009_v38  ;;  %v3056_v38 = vld [vmem:[#allocation22 + $0x28] sm:$0xff]  }
 0xcd6   :  { %1920 = vmatpush1.bf16.msra.mxu0 %v3007_v14  ;;  %v3058_v14 = vld [vmem:[#allocation22 + $0x70] sm:$0xff]  }
 0xcd7   :  { %1921 = vmatprep.subr.bf16.mxu0 %v3015_v21  ;;  %v3060_v21 = vld [vmem:[#allocation22 + $0x30] sm:$0xff]  }
 0xcda   :  { %1922 = vmatpush1.bf16.msra.mxu0 %v3013_v41  ;;  %v3062_v41 = vld [vmem:[#allocation22 + $0x78] sm:$0xff]  }
 0xcdb   :  { %1923 = vmatprep.subr.bf16.mxu0 %v3021_v20  ;;  %v3064_v20 = vld [vmem:[#allocation22 + $0x38] sm:$0xff]  }
 0xcde   :  { %1924 = vmatpush1.bf16.msra.mxu0 %v3019_v44  ;;  %v1688_v44 = vld [vmem:[#allocation21] sm:$0xf] }
 0xcdf   :  { %1925 = vmatprep.subr.bf16.mxu0 %v3027_v46  ;;  %v1693_v46 = vrot.slane %v1688_v44, %v286_v57  ;;  %v1701_v47 = vrot.slane %v1688_v44, %v294_v58  ;;  %v1705_v49 = vrot.slane %v1688_v44, %v1704_v45 }
 0xce2   :  { %1926 = vmatpush1.bf16.msra.mxu0 %v3025_v48  ;;  %v1697_v48 = vrot.slane %v1688_v44, %v290_v55 }
 0xce3   :  { %1927 = vmatprep.subr.bf16.mxu0 %v3033_v50 }
 0xce6   :  { %1928 = vmatpush1.bf16.msra.mxu0 %v3031_v51 }
 0xce7   :  { %2760 = vmatprep.subr.bf16.mxu0 %v3035_v19 }
 0xd9b   :  { %v1606_v3 = vpop.f32.mrb[28].mxu0 }
 0xd9c   :  { %v1607_v5 = vadd.f32 %v2606_v4, %v1606_v3  ;;  %v2916_v6 = vpop.f32.mrb[29].mxu0 }
 0xd9d   :  { %v1609_v9 = vpop.f32.mrb[30].mxu0  ;;  %v2616_v6 = vld [vmem:[#allocation18] ss:$0 sm:$0xff] }
 0xd9e   :  { %v3966_v12 = vadd.f32 %v3138_v11, %v1607_v5  ;;  %v1610_v13 = vadd.f32 %v2606_v4, %v1609_v9  ;;  %v2917_v16 = vpop.f32.mrb[31].mxu0 }
 0xda0   :  { %v3968_v18 = vadd.f32 %v3139_v17, %v1610_v13  ;;  %1617 = vadd.xlane.f32.xlu1 %v3966_v12  ;;  %v3034_v17 = vld [vmem:[#allocation22 + $0x40] sm:$0xff]  }
 0xda1   :  { %2738 = vmatprep.subr.bf16.mxu1 %v3034_v17 }
 0xda2   :  { %1619 = vadd.xlane.f32.xlu0 %v3968_v18 }
 0xe2d   :  { %v1618_v28 = vpop.xlane.xlu1 %1617 }
 0xe2e   :  { %v1621_v29 = vmul.f32 0.0078125, %v1618_v28  ;;  %v3043_v28 = vld [vmem:[#allocation22 + $0xd0] sm:$0xff]  }
 0xe2f   :  { %v1620_v31 = vpop.xlane.xlu0 %1619 }
 0xe30   :  { %v3973_v32 = vsub.f32 %v3966_v12, %v1621_v29  ;;  %v1622_v33 = vmul.f32 0.0078125, %v1620_v31  ;;  %v3044_v29 = vld [vmem:[#allocation22 + $0x10] sm:$0xff]  }
 0xe31   :  { %v3045_v31 = vld [vmem:[#allocation22 + $0x90] sm:$0xff]  }
 0xe32   :  { %v3976_v34 = vsub.f32 %v3968_v18, %v1622_v33  ;;  %v1625_v56 = vmul.f32 %v3973_v32, %v3973_v32  ;;  %v3047_v33 = vld [vmem:[#allocation22 + $0xd8] sm:$0xff]  }
 0xe34   :  { %1627 = vadd.xlane.f32.xlu0 %v1625_v56  ;;  %v1626_v2 = vmul.f32 %v3976_v34, %v3976_v34  ;;  %v3049_v56 = vld [vmem:[#allocation22 + $0x98] sm:$0xff]  }
 0xe38   :  { %1629 = vadd.xlane.f32.xlu0 %v1626_v2  ;;  %v3050_v2 = vld [vmem:[#allocation22 + $0x60] sm:$0xff]  }
 0xec1   :  { %v1628_v52 = vpop.xlane.xlu0 %1627 }
 0xec2   :  { %v1631_v53 = vmul.f32 0.0078125, %v1628_v52 }
 0xec4   :  { %v1633_v59 = vadd.f32 1e-05, %v1631_v53 }
 0xec5   :  { %v1630_v60 = vpop.xlane.xlu0 %1629 }
 0xec6   :  { %3102 = vrsqrt.f32 %v1633_v59  ;;  %v1632_v61 = vmul.f32 0.0078125, %v1630_v60 }
 0xec8   :  { %v1634_v62 = vadd.f32 1e-05, %v1632_v61 }
 0xeca   :  { %3104 = vrsqrt.f32 %v1634_v62 }
 0xed0   :  { %v3103_v63 = vpop.eup %3102 }
 0xed1   :  { %v1637_v0 = vmul.f32 %v3103_v63, %v3973_v32  ;;  %v3046_v32 = vld [vmem:[#allocation22 + $0x58] sm:$0xff]  }
 0xed3   :  { %v1645_v5 = vmul.f32 %v2615_v1, %v1637_v0 }
 0xed4   :  { %v3105_v4 = vpop.eup %3104 }
 0xed5   :  { %v1638_v3 = vmul.f32 %v3105_v4, %v3976_v34  ;;  %v1653_v11 = vadd.f32 %v2616_v6, %v1645_v5  ;;  %v3048_v34 = vld [vmem:[#allocation22 + $0x18] sm:$0xff]  }
 0xed7   :  { %v1646_v9 = vmul.f32 %v2615_v1, %v1638_v3 }
 0xed9   :  { %v1654_v13 = vadd.f32 %v2616_v6, %v1646_v9 }
 0xedb   :  { %v1655_v16 = vpack.c.bf16 %v1654_v13, %v1653_v11 }
 0xedd   :  { %1903 = vmatmul.mubr.bf16.vlgmr.msra.gmra.mrb[44].mxu1 %v1655_v16  ;;  %1946 = vmatmul.mubr.bf16.vlgmr.msra.gmra.mrb[32].mxu0 %v1655_v16 }
 0xede   :  { %2739 = vmatpush3.bf16.msra.mxu1 %v3036_v22  ;;  %2761 = vmatpush3.bf16.msra.mxu0 %v3037_v30 }
 0xedf   :  { %2740 = vmatprep.subr.bf16.mxu1 %v3038_v23  ;;  %2762 = vmatprep.subr.bf16.mxu0 %v3039_v25 }
 0xee2   :  { %2741 = vmatpush3.bf16.msra.mxu1 %v3040_v26  ;;  %2763 = vmatpush3.bf16.msra.mxu0 %v3041_v24 }
 0xee3   :  { %2742 = vmatprep.subr.bf16.mxu1 %v3042_v27  ;;  %2764 = vmatprep.subr.bf16.mxu0 %v3043_v28 }
 0xee6   :  { %2743 = vmatpush3.bf16.msra.mxu1 %v3044_v29  ;;  %2765 = vmatpush3.bf16.msra.mxu0 %v3045_v31 }
 0xee7   :  { %2744 = vmatprep.subr.bf16.mxu1 %v3046_v32  ;;  %2766 = vmatprep.subr.bf16.mxu0 %v3047_v33 }
 0xeea   :  { %2745 = vmatpush3.bf16.msra.mxu1 %v3048_v34  ;;  %2767 = vmatpush3.bf16.msra.mxu0 %v3049_v56 }
 0xeeb   :  { %2746 = vmatprep.subr.bf16.mxu1 %v3050_v2  ;;  %2768 = vmatprep.subr.bf16.mxu0 %v3051_v7 }
 0xeee   :  { %2747 = vmatpush3.bf16.msra.mxu1 %v3052_v8  ;;  %2769 = vmatpush3.bf16.msra.mxu0 %v3053_v35 }
 0xeef   :  { %2748 = vmatprep.subr.bf16.mxu1 %v3054_v36  ;;  %2770 = vmatprep.subr.bf16.mxu0 %v3055_v37 }
 0xef2   :  { %2749 = vmatpush3.bf16.msra.mxu1 %v3056_v38  ;;  %2771 = vmatpush3.bf16.msra.mxu0 %v3057_v10 }
 0xef3   :  { %2750 = vmatprep.subr.bf16.mxu1 %v3058_v14  ;;  %2772 = vmatprep.subr.bf16.mxu0 %v3059_v39 }
 0xef6   :  { %2751 = vmatpush3.bf16.msra.mxu1 %v3060_v21  ;;  %2773 = vmatpush3.bf16.msra.mxu0 %v3061_v40 }
 0xef7   :  { %2752 = vmatprep.subr.bf16.mxu1 %v3062_v41  ;;  %2774 = vmatprep.subr.bf16.mxu0 %v3063_v42 }
 0xefa   :  { %2753 = vmatpush3.bf16.msra.mxu1 %v3064_v20  ;;  %2775 = vmatpush3.bf16.msra.mxu0 %v3065_v43 }
 0xfb0   :  { %v1904_v50 = vpop.f32.mrb[44].mxu1  ;;  %v1947_v15 = vpop.f32.mrb[32].mxu0 }
 0xfb1   :  { %v1905_v51 = vadd.f32 %v1904_v50, %v1693_v46  ;;  %v1948_v52 = vadd.f32 %v1947_v15, %v1701_v47  ;;  %v1906_v53 = vpop.f32.mrb[45].mxu1  ;;  %v1949_v59 = vpop.f32.mrb[33].mxu0 }
 0xfb2   :  { %v3991_v60 = vadd.f32 %v1906_v53, %v1697_v48  ;;  %v3993_v61 = vadd.f32 %v1949_v59, %v1705_v49  ;;  %v1908_v62 = vpop.f32.mrb[46].mxu1  ;;  %v1951_v63 = vpop.f32.mrb[34].mxu0 }
 0xfb3   :  { %v3995_v57 = vmul.f32 0.70710677, %v1905_v51  ;;  %v3997_v0 = vmul.f32 0.70710677, %v1948_v52  ;;  %v1910_v3 = vpop.f32.mrb[47].mxu1  ;;  %v1953_v11 = vpop.f32.mrb[35].mxu0  ;;  %v4009_v22 = vadd.f32 %v1908_v62, %v1693_v46  ;;  %v4014_v25 = vadd.f32 %v1951_v63, %v1701_v47 }
 0xfb4   :  { %v4000_v54 = vmul.f32 0.70710677, %v3991_v60  ;;  %v4006_v4 = vmul.f32 0.70710677, %v3993_v61  ;;  %v4016_v24 = vadd.f32 %v1910_v3, %v1697_v48  ;;  %v4026_v7 = vadd.f32 %v1953_v11, %v1705_v49 }
 0xfb5   :  { %v1988_v55 = vand.u32 2147483647, %v3995_v57  ;;  %v1990_v58 = vand.u32 2147483647, %v3997_v0  ;;  %v4012_v23 = vmul.f32 0.70710677, %v4009_v22 }
 0xfb6   :  { %v1989_v1 = vand.u32 2147483647, %v4000_v54  ;;  %v1991_v17 = vand.u32 2147483647, %v4006_v4  ;;  %v4020_v29 = vmul.f32 0.70710677, %v4014_v25 }
 0xfb7   :  { %v1996_v5 = vmul.f32 0.3275911, %v1988_v55  ;;  %v1998_v6 = vmul.f32 0.3275911, %v1990_v58  ;;  %v1992_v27 = vand.u32 2147483647, %v4012_v23 }
 0xfb8   :  { %v1997_v9 = vmul.f32 0.3275911, %v1989_v1  ;;  %v1999_v30 = vmul.f32 0.3275911, %v1991_v17  ;;  %v2092_v28 = vsub.f32 0.0, %v1988_v55  ;;  %v2094_v31 = vsub.f32 0.0, %v1990_v58 }
 0xfb9   :  { %v2004_v13 = vadd.f32 1.0, %v1996_v5  ;;  %v2006_v16 = vadd.f32 1.0, %v1998_v6  ;;  %v2000_v32 = vmul.f32 0.3275911, %v1992_v27  ;;  %v2093_v33 = vsub.f32 0.0, %v1989_v1 }
 0xfba   :  { %v2005_v19 = vadd.f32 1.0, %v1997_v9  ;;  %v2007_v26 = vadd.f32 1.0, %v1999_v30  ;;  %v1994_v34 = vand.u32 2147483647, %v4020_v29  ;;  %v4024_v56 = vmul.f32 0.70710677, %v4016_v24 }
 0xfbb   :  { %3106 = vrcp.f32 %v2004_v13  ;;  %v2008_v2 = vadd.f32 1.0, %v2000_v32  ;;  %v2100_v8 = vmul.f32 %v2092_v28, %v1988_v55  ;;  %v2102_v38 = vmul.f32 %v2094_v31, %v1990_v58 }
 0xfbc   :  { %3108 = vrcp.f32 %v2006_v16  ;;  %v2002_v35 = vmul.f32 0.3275911, %v1994_v34  ;;  %v4029_v36 = vand.u32 2147483647, %v4024_v56  ;;  %v2095_v10 = vsub.f32 0.0, %v1991_v17 }
 0xfbd   :  { %3110 = vrcp.f32 %v2005_v19  ;;  %v2101_v21 = vmul.f32 %v2093_v33, %v1989_v1  ;;  %v4037_v42 = vmul.f32 0.5, %v1905_v51  ;;  %v4039_v20 = vmul.f32 0.5, %v1948_v52 }
 0xfbe   :  { %3112 = vrcp.f32 %v2007_v26  ;;  %v2010_v40 = vadd.f32 1.0, %v2002_v35  ;;  %v2001_v41 = vmul.f32 0.3275911, %v4029_v36  ;;  %v4043_v44 = vmul.f32 0.70710677, %v4026_v7 }
 0xfbf   :  { %3114 = vrcp.f32 %v2008_v2  ;;  %v2108_v46 = vmul.f32 1.442695, %v2100_v8  ;;  %v2112_v50 = vmul.f32 1.442695, %v2102_v38  ;;  %v2103_v15 = vmul.f32 %v2095_v10, %v1991_v17 }
 0xfc0   :  { %3116 = vrcp.f32 %v2010_v40  ;;  %v2009_v47 = vadd.f32 1.0, %v2001_v41  ;;  %v4048_v53 = vand.u32 2147483647, %v4043_v44  ;;  %v2110_v59 = vmul.f32 1.442695, %v2101_v21 }
 0xfc1   :  { %v2096_v62 = vsub.f32 0.0, %v1992_v27  ;;  %v2098_v58 = vsub.f32 0.0, %v1994_v34  ;;  %v2114_v11 = vmul.f32 1.442695, %v2103_v15  ;;  %vm1972_vm8 = vcmp.ge.f32.partialorder %v3995_v57, 0.0 }
 0xfc2   :  { %3118 = vrcp.f32 %v2009_v47  ;;  %v2003_v1 = vmul.f32 0.3275911, %v4048_v53  ;;  %v2097_v38 = vsub.f32 0.0, %v4029_v36  ;;  %vm1974_vm9 = vcmp.ge.f32.partialorder %v3997_v0, 0.0 }
 0xfc3   :  { %3120 = vpow2.f32 %v2108_v46  ;;  %v2104_v28 = vmul.f32 %v2096_v62, %v1992_v27  ;;  %v2106_v31 = vmul.f32 %v2098_v58, %v1994_v34  ;;  %v2099_v62 = vsub.f32 0.0, %v4048_v53 }
 0xfc4   :  { %3122 = vpow2.f32 %v2112_v50  ;;  %v2011_v13 = vadd.f32 1.0, %v2003_v1  ;;  %vm1973_vm10 = vcmp.ge.f32.partialorder %v4000_v54, 0.0  ;;  %vm1976_vm11 = vcmp.ge.f32.partialorder %v4012_v23, 0.0 }
 0xfc5   :  { %v4031_v37 = vpop.eup %3106  ;;  %3124 = vpow2.f32 %v2110_v59  ;;  %v2116_v41 = vmul.f32 1.442695, %v2104_v28  ;;  %v2105_v59 = vmul.f32 %v2097_v38, %v4029_v36  ;;  %vm1978_vm12 = vcmp.ge.f32.partialorder %v4020_v29, 0.0 }
 0xfc6   :  { %v4033_v14 = vpop.eup %3108  ;;  %v2020_v39 = vmul.f32 1.0614054, %v4031_v37  ;;  %3126 = vrcp.f32 %v2011_v13  ;;  %vm1975_vm13 = vcmp.ge.f32.partialorder %v4006_v4, 0.0  ;;  %vm1977_vm14 = vcmp.ge.f32.partialorder %v4024_v56, 0.0 }
 0xfc7   :  { %v2022_v43 = vmul.f32 1.0614054, %v4033_v14  ;;  %v4045_v48 = vpop.eup %3110  ;;  %3128 = vpow2.f32 %v2114_v11  ;;  %vm1979_vm15 = vcmp.ge.f32.partialorder %v4043_v44, 0.0  ;;  %v1963_v44 = vmul.f32 0.5, %v4026_v7 }
 0xfc8   :  { %v2028_v45 = vadd.f32 -1.4531521, %v2020_v39  ;;  %v2021_v52 = vmul.f32 1.0614054, %v4045_v48  ;;  %v4052_v63 = vpop.eup %3112  ;;  %3130 = vpow2.f32 %v2116_v41 }
 0xfc9   :  { %v2030_v49 = vadd.f32 -1.4531521, %v2022_v43  ;;  %v2023_v6 = vmul.f32 1.0614054, %v4052_v63  ;;  %v4059_v30 = vpop.eup %3114 }
 0xfca   :  { %v2036_v51 = vmul.f32 %v4031_v37, %v2028_v45  ;;  %v2029_v5 = vadd.f32 -1.4531521, %v2021_v52  ;;  %v2024_v8 = vmul.f32 1.0614054, %v4059_v30  ;;  %v4066_v10 = vpop.eup %3116  ;;  %v2120_v45 = vmul.f32 1.442695, %v2106_v31 }
 0xfcb   :  { %v2038_v55 = vmul.f32 %v4033_v14, %v2030_v49  ;;  %v2031_v19 = vadd.f32 -1.4531521, %v2023_v6  ;;  %v2026_v43 = vmul.f32 1.0614054, %v4066_v10 }
 0xfcc   :  { %v2044_v3 = vadd.f32 1.4214138, %v2036_v51  ;;  %v2037_v17 = vmul.f32 %v4045_v48, %v2029_v5  ;;  %v2032_v21 = vadd.f32 -1.4531521, %v2024_v8  ;;  %v4074_v15 = vpop.eup %3118  ;;  %3132 = vpow2.f32 %v2120_v45 }
 0xfcd   :  { %v2046_v9 = vadd.f32 1.4214138, %v2038_v55  ;;  %v2039_v2 = vmul.f32 %v4052_v63, %v2031_v19  ;;  %v2034_v52 = vadd.f32 -1.4531521, %v2026_v43  ;;  %v3121_v55 = vpop.eup %3120  ;;  %v2025_v11 = vmul.f32 1.0614054, %v4074_v15 }
 0xfce   :  { %v2052_v16 = vmul.f32 %v4031_v37, %v2044_v3  ;;  %v2045_v33 = vadd.f32 1.4214138, %v2037_v17  ;;  %v2040_v50 = vmul.f32 %v4059_v30, %v2032_v21  ;;  %v3123_v6 = vpop.eup %3122  ;;  %v2118_v8 = vmul.f32 1.442695, %v2105_v59 }
 0xfcf   :  { %v2054_v26 = vmul.f32 %v4033_v14, %v2046_v9  ;;  %v2047_v34 = vadd.f32 1.4214138, %v2039_v2  ;;  %v2042_v9 = vmul.f32 %v4066_v10, %v2034_v52  ;;  %v3125_v13 = vpop.eup %3124 }
 0xfd0   :  { %v2060_v32 = vadd.f32 -0.28449672, %v2052_v16  ;;  %v2053_v27 = vmul.f32 %v4045_v48, %v2045_v33  ;;  %v2048_v5 = vadd.f32 1.4214138, %v2040_v50  ;;  %v4086_v19 = vpop.eup %3126  ;;  %3134 = vpow2.f32 %v2118_v8 }
 0xfd1   :  { %v2062_v35 = vadd.f32 -0.28449672, %v2054_v26  ;;  %v2055_v49 = vmul.f32 %v4052_v63, %v2047_v34  ;;  %v3490_v26 = vmov -1.0   ;;  %v2050_v31 = vadd.f32 1.4214138, %v2042_v9 }
 0xfd2   :  { %v2068_v39 = vmul.f32 %v4031_v37, %v2060_v32  ;;  %v2061_v47 = vadd.f32 -0.28449672, %v2053_v27  ;;  %v1980_v28 = vsel %vm1972_vm8, 1.0, %v3490_v26  ;;  %v2033_v32 = vadd.f32 -1.4531521, %v2025_v11 }
 0xfd3   :  { %v2070_v40 = vmul.f32 %v4033_v14, %v2062_v35  ;;  %v2063_v3 = vadd.f32 -0.28449672, %v2055_v49  ;;  %v3129_v35 = vpop.eup %3128  ;;  %v1982_v38 = vsel %vm1974_vm9, 1.0, %v3490_v26  ;;  %v2027_v57 = vmul.f32 1.0614054, %v4086_v19 }
 0xfd4   :  { %v2076_v46 = vadd.f32 0.2548296, %v2068_v39  ;;  %v2069_v1 = vmul.f32 %v4045_v48, %v2061_v47  ;;  %v2058_v39 = vmul.f32 %v4066_v10, %v2050_v31  ;;  %v2041_v27 = vmul.f32 %v4074_v15, %v2033_v32 }
 0xfd5   :  { %v2078_v51 = vadd.f32 0.2548296, %v2070_v40  ;;  %v2071_v17 = vmul.f32 %v4052_v63, %v2063_v3  ;;  %v1981_v54 = vsel %vm1973_vm10, 1.0, %v3490_v26  ;;  %v1984_v11 = vsel %vm1976_vm11, 1.0, %v3490_v26 }
 0xfd6   :  { %v2084_v58 = vmul.f32 %v4031_v37, %v2076_v46  ;;  %v2077_v16 = vadd.f32 0.2548296, %v2069_v1  ;;  %v2056_v37 = vmul.f32 %v4059_v30, %v2048_v5  ;;  %v2066_v43 = vadd.f32 -0.28449672, %v2058_v39 }
 0xfd7   :  { %v2086_v36 = vmul.f32 %v4033_v14, %v2078_v51  ;;  %v2107_v14 = vmul.f32 %v2099_v62, %v4048_v53  ;;  %v2079_v40 = vadd.f32 0.2548296, %v2071_v17  ;;  %v2049_v45 = vadd.f32 1.4214138, %v2041_v27  ;;  %v3131_v62 = vpop.eup %3130 }
 0xfd8   :  { %v2124_v33 = vmul.f32 %v3121_v55, %v2084_v58  ;;  %v2064_v2 = vadd.f32 -0.28449672, %v2056_v37  ;;  %v2085_v21 = vmul.f32 %v4045_v48, %v2077_v16  ;;  %v2035_v53 = vadd.f32 -1.4531521, %v2027_v57  ;;  %v3133_v9 = vpop.eup %3132 }
 0xfd9   :  { %v2126_v34 = vmul.f32 %v3123_v6, %v2086_v36  ;;  %v2122_v0 = vmul.f32 1.442695, %v2107_v14  ;;  %v2074_v49 = vmul.f32 %v4066_v10, %v2066_v43  ;;  %v2057_v50 = vmul.f32 %v4074_v15, %v2049_v45 }
 0xfda   :  { %v2072_v41 = vmul.f32 %v4059_v30, %v2064_v2  ;;  %v2132_v46 = vsub.f32 1.0, %v2124_v33  ;;  %v2043_v51 = vmul.f32 %v4086_v19, %v2035_v53  ;;  %v2125_v48 = vmul.f32 %v3125_v13, %v2085_v21  ;;  %v3135_v39 = vpop.eup %3134 }
 0xfdb   :  { %v2134_v52 = vsub.f32 1.0, %v2126_v34  ;;  %v2087_v55 = vmul.f32 %v4052_v63, %v2079_v40  ;;  %v2082_v58 = vadd.f32 0.2548296, %v2074_v49  ;;  %v2065_v1 = vadd.f32 -0.28449672, %v2057_v50 }
 0xfdc   :  { %v2080_v47 = vadd.f32 0.2548296, %v2072_v41  ;;  %v2051_v3 = vadd.f32 1.4214138, %v2043_v51  ;;  %v2140_v5 = vmul.f32 %v2132_v46, %v1980_v28  ;;  %3136 = vpow2.f32 %v2122_v0 }
 0xfdd   :  { %v2090_v13 = vmul.f32 %v4066_v10, %v2082_v58  ;;  %v2073_v23 = vmul.f32 %v4074_v15, %v2065_v1  ;;  %v2142_v36 = vmul.f32 %v2134_v52, %v1982_v38  ;;  %v2133_v16 = vsub.f32 1.0, %v2125_v48 }
 0xfde   :  { %v2088_v59 = vmul.f32 %v4059_v30, %v2080_v47  ;;  %v2059_v30 = vmul.f32 %v4086_v19, %v2051_v3  ;;  %v2127_v17 = vmul.f32 %v3129_v35, %v2087_v55  ;;  %v2148_v32 = vadd.f32 1.0, %v2140_v5 }
 0xfdf   :  { %v2130_v37 = vmul.f32 %v3133_v9, %v2090_v13  ;;  %v2081_v28 = vadd.f32 0.2548296, %v2073_v23  ;;  %v1960_v33 = vmul.f32 0.5, %v4009_v22  ;;  %v1986_v10 = vsel %vm1978_vm12, 1.0, %v3490_v26  ;;  %v2649_v13 = vld [vmem:[#allocation24] ss:$0 sm:$0xff] }
 0xfe0   :  { %v2128_v6 = vmul.f32 %v3131_v62, %v2088_v59  ;;  %v2067_v31 = vadd.f32 -0.28449672, %v2059_v30  ;;  %v2150_v27 = vadd.f32 1.0, %v2142_v36  ;;  %v2141_v29 = vmul.f32 %v2133_v16, %v1981_v54 }
 0xfe1   :  { %v2138_v8 = vsub.f32 1.0, %v2130_v37  ;;  %v2089_v14 = vmul.f32 %v4074_v15, %v2081_v28  ;;  %v2135_v57 = vsub.f32 1.0, %v2127_v17  ;;  %v2156_v22 = vmul.f32 %v2148_v32, %v4037_v42 }
 0xfe2   :  { %v2136_v63 = vsub.f32 1.0, %v2128_v6  ;;  %v2075_v38 = vmul.f32 %v4086_v19, %v2067_v31  ;;  %v1983_v41 = vsel %vm1975_vm13, 1.0, %v3490_v26  ;;  %v1962_v15 = vmul.f32 0.5, %v4014_v25 }
 0xfe3   :  { %v2146_v34 = vmul.f32 %v2138_v8, %v1986_v10  ;;  %v2129_v21 = vmul.f32 %v3135_v39, %v2089_v14  ;;  %v1985_v53 = vsel %vm1977_vm14, 1.0, %v3490_v26  ;;  %v2158_v0 = vmul.f32 %v2150_v27, %v4039_v20 }
 0xfe4   :  { %v2144_v2 = vmul.f32 %v2136_v63, %v1984_v11  ;;  %v2083_v40 = vadd.f32 0.2548296, %v2075_v38  ;;  %v2149_v49 = vadd.f32 1.0, %v2141_v29  ;;  %v2143_v42 = vmul.f32 %v2135_v57, %v1983_v41 }
 0xfe5   :  { %v2154_v45 = vadd.f32 1.0, %v2146_v34  ;;  %v2137_v46 = vsub.f32 1.0, %v2129_v21  ;;  %v1957_v48 = vmul.f32 0.5, %v3991_v60  ;;  %v1961_v59 = vmul.f32 0.5, %v4016_v24 }
 0xfe6   :  { %v2152_v35 = vadd.f32 1.0, %v2144_v2  ;;  %v2091_v47 = vmul.f32 %v4086_v19, %v2083_v40  ;;  %v3137_v56 = vpop.eup %3136  ;;  %v1987_v19 = vsel %vm1979_vm15, 1.0, %v3490_v26  ;;  %v2151_v1 = vadd.f32 1.0, %v2143_v42 }
 0xfe7   :  { %v2162_v51 = vmul.f32 %v2154_v45, %v1962_v15  ;;  %v2145_v4 = vmul.f32 %v2137_v46, %v1985_v53  ;;  %v2157_v58 = vmul.f32 %v2149_v49, %v1957_v48  ;;  %v1959_v5 = vmul.f32 0.5, %v3993_v61 }
 0xfe8   :  { %v2160_v43 = vmul.f32 %v2152_v35, %v1960_v33  ;;  %v2131_v52 = vmul.f32 %v3137_v56, %v2091_v47 }
 0xfe9   :  { %v2166_v25 = vpack.c.bf16 %v2162_v51, %v2158_v0  ;;  %v2153_v62 = vadd.f32 1.0, %v2145_v4  ;;  %v2159_v9 = vmul.f32 %v2151_v1, %v1959_v5 }
 0xfea   :  { %v2164_v50 = vpack.c.bf16 %v2160_v43, %v2156_v22  ;;  %v2139_v55 = vsub.f32 1.0, %v2131_v52 }
 0xfeb   :  { %v2161_v20 = vmul.f32 %v2153_v62, %v1961_v59 }
 0xfec   :  { %v2147_v3 = vmul.f32 %v2139_v55, %v1987_v19 }
 0xfed   :  { %v2165_v6 = vpack.c.bf16 %v2161_v20, %v2157_v58 }
 0xfee   :  { %v2155_v54 = vadd.f32 1.0, %v2147_v3 }
 0xfef   :  { %2463 = vmatprep.mubr.bf16.mxu1 %v2165_v6 }
 0xff0   :  { %v2163_v11 = vmul.f32 %v2155_v54, %v1963_v44  ;;  %2464 = vmatmul.mubr.bf16.vlgmr.msra.gmra.mrb[48].mxu1 %v2164_v50 }
 0xff2   :  { %v2167_v60 = vpack.c.bf16 %v2163_v11, %v2159_v9 }
 0xff4   :  { %2504 = vmatprep.mubr.bf16.mxu0 %v2167_v60 }
 0xff5   :  { %2505 = vmatmul.mubr.bf16.vlgmr.msra.gmra.mrb[36].mxu0 %v2166_v25 }
0x10c3   :  { %v2754_v24 = vpop.f32.mrb[48].mxu1 }
0x10c4   :  { %v2755_v26 = vpop.f32.mrb[49].mxu1 }
0x10c5   :  { %v2756_v23 = vadd.f32 %v2755_v26, %v2754_v24  ;;  %v2757_v30 = vpop.f32.mrb[50].mxu1 }
0x10c6   :  { %v2758_v36 = vpop.f32.mrb[51].mxu1 }
0x10c7   :  { %v2466_v63 = vadd.f32 %v2756_v23, %v2649_v13  ;;  %v2759_v61 = vadd.f32 %v2758_v36, %v2757_v30 }
0x10c8   :  { %v2776_v16 = vpop.f32.mrb[36].mxu0 }
0x10c9   :  { %v2777_v17 = vpop.f32.mrb[37].mxu0  ;;  %v2469_v28 = vadd.f32 %v2759_v61, %v2649_v13 }
0x10ca   :  { %v2778_v7 = vadd.f32 %v2777_v17, %v2776_v16  ;;  %v2779_v37 = vpop.f32.mrb[38].mxu0 }
0x10cb   :  { %v2780_v31 = vpop.f32.mrb[39].mxu0 }
0x10cc   :  { %v2507_v32 = vadd.f32 %v2778_v7, %v2466_v63  ;;  %v2781_v33 = vadd.f32 %v2780_v31, %v2779_v37 }
0x10ce   :  { %v2513_v2 = vadd.f32 %v2507_v32, %v3966_v12  ;;  %v2510_v10 = vadd.f32 %v2781_v33, %v2469_v28 }
0x10d0   :  { %2515 = vst [vmem:[#allocation25] sm:$0xff] %v2513_v2  ;;  %v2514_v8 = vadd.f32 %v2510_v10, %v3968_v18 }
0x10d2   :  { %2516 = vst [vmem:[#allocation25 + $0x8] sm:$0xff] %v2514_v8 }
0x10d3   :  { %3437 = shalt.err (!%p3434_p10)
}
0x10d4   :  { %s3438_s19 = scalar_lea.hbm %s4163_s13, 256 }
0x10d5   :  { %p3439_p11 = scmp.ne.s32.totalorder %s4163_s13, %s3438_s19  ;;  %p3442_p12 = scmp.lt.u32.totalorder %s3438_s19, %s4163_s13 }
0x10d7   :  { %p3444_p13 = pnand %p3442_p12, %p3439_p11 }
0x10d9   :  { %3447 = shalt.err (!%p3444_p13)
}
0x10da   :  { %2528 = dma.vmem_to_hbm [thread:$0]  %s2523_s16, 256, %s4163_s13, [#allocation6], %s3477_s11, %s3477_s11, %s3478_s28  }
0x10db   :  { %3462 = dma.done.wait [#allocation6], 256  }
0x10dc   :  { %3463 = vsyncadd [#allocation6], 4294967040 }
0x10dd   :  { %2532 = vsyncpa [#allocation5], 1 }
0x10de   :  { %2533 = vsyncpa [#allocation8], 1 }
0x10df   :  { %2534 = vsyncpa [#allocation11], 1 }
0x10e0   :  { %2535 = vsyncpa [#allocation14], 1 }
0x10e1   :  { %2536 = vsyncpa [#allocation17], 1 }
0x10e2   :  { %2537 = vsyncpa [#allocation20], 1 }
0x10e3   :  { %2538 = vsyncpa [#allocation23], 1 }
0x10e4   :  { %2539 = vsyncpa [#allocation6], 1 }

</bundles_post_ra>
